<compile_context>
chip_gen: v7x
topology: tpu7x:2x2x1
jax: 0.10.0
libtpu: 0.0.40
codegen_flags: <defaults>
</compile_context>

<pallas_src>
import functools

import jax
import jax.numpy as jnp
from jax import lax
from jax.experimental import pallas as pl
from jax.experimental.pallas import tpu as pltpu


# ----------------------------------------------------------------------------
# Kernel helpers
# ----------------------------------------------------------------------------
def _leaky(x):
    return jnp.where(x > 0, x, 0.2 * x)


def _conv3_same(x, w_ref, b_ref):
    """Conv1d(kernel=3, padding=1) as three accumulated MXU dots.

    x: (T, Cin) f32.  w_ref: (3, Cin, Cout) (bf16 or f32).  b_ref: (1, Cout) f32.
    Returns f32 (T, Cout).
    """
    t, cin = x.shape
    xq = x.astype(w_ref.dtype)                       # narrow MXU operands only
    zero = jnp.zeros((1, cin), dtype=xq.dtype)
    x_prev = jnp.concatenate([zero, xq[:-1, :]], axis=0)   # x[t-1], 0 at t=0
    x_next = jnp.concatenate([xq[1:, :], zero], axis=0)    # x[t+1], 0 at t=T-1
    acc = jnp.dot(xq, w_ref[1], preferred_element_type=jnp.float32)
    acc = acc + jnp.dot(x_prev, w_ref[0], preferred_element_type=jnp.float32)
    acc = acc + jnp.dot(x_next, w_ref[2], preferred_element_type=jnp.float32)
    return acc + b_ref[...]


# ----------------------------------------------------------------------------
# Fused kernel: AE_e -> AE_d, channel gates -> filter_feat -> attention head
# ----------------------------------------------------------------------------
def _fused_kernel(v_ref, f_ref,
                  wae_e_ref, bae_e_ref, wae_d_ref, bae_d_ref,
                  wcc_ref, bcc_ref,
                  wa1_ref, ba1_ref, wa2_ref, ba2_ref, wa3_ref, ba3_ref,
                  atn_ref, filt_ref, new_ref):
    v = v_ref[0]                                            # (T, C) f32
    f = f_ref[0]                                            # (T, C) f32

    # ---- AE_e -> AE_d (reconstruction branch) ------------------------------
    fusion = _leaky(_conv3_same(f, wae_e_ref, bae_e_ref))
    new_feat = _leaky(_conv3_same(fusion, wae_d_ref, bae_d_ref))
    new_ref[0] = new_feat.astype(new_ref.dtype)

    # ---- channel gates: AvgPool1d(1) -> centre-tap conv -> LeakyReLU -> sigmoid
    inv_t = 1.0 / v.shape[0]
    wcc = wcc_ref[...]
    v_mean = (jnp.sum(v, axis=0, keepdims=True) * inv_t).astype(wcc.dtype)
    f_mean = (jnp.sum(f, axis=0, keepdims=True) * inv_t).astype(wcc.dtype)
    ca = _leaky(jnp.dot(v_mean, wcc, preferred_element_type=jnp.float32)
                + bcc_ref[...])
    ba = _leaky(jnp.dot(f_mean, wcc, preferred_element_type=jnp.float32)
                + bcc_ref[...])
    gate = jax.nn.sigmoid(ca) * jax.nn.sigmoid(ba)          # (1, E) == (1, C)
    filt = gate * v                                         # (T, C) f32
    filt_ref[0] = filt.astype(filt_ref.dtype)

    # ---- attention head (stays in VMEM end-to-end) -------------------------
    a1 = _leaky(_conv3_same(filt, wa1_ref, ba1_ref))
    a2 = _leaky(_conv3_same(a1, wa2_ref, ba2_ref))
    # Conv1d(H, 1, kernel=1): (1,H) . (T,H)^T -> lane-dense (1, T) logits row.
    logits = lax.dot_general(wa3_ref[...], a2,
                             dimension_numbers=(((1,), (1,)), ((), ())),
                             preferred_element_type=jnp.float32) + ba3_ref[...]
    atn_ref[0] = jax.nn.sigmoid(logits).astype(atn_ref.dtype)


# ----------------------------------------------------------------------------
# Wrappers
# ----------------------------------------------------------------------------
def _stack3(w_oik, dtype):
    """PyTorch Conv1d weight (Cout, Cin, 3) -> tap-major (3, Cin, Cout)."""
    return jnp.transpose(w_oik, (2, 1, 0)).astype(dtype)


def _default_vmem_limit_bytes():
    try:
        cap = int(pltpu.get_tpu_info().vmem_capacity_bytes)
    except Exception:                                       # noqa: BLE001
        cap = 64 * 1024 * 1024                              # v7x-sized fallback
    # Leave ~8 MiB headroom; cap at ~110 MiB on 128-MiB parts.
    return min(cap - 8 * 1024 * 1024, 110 * 1024 * 1024)


def pallas_forward_ntc(v_ntc, f_ntc, p, *, matmul_dtype=jnp.bfloat16,
                       single_buffer_weights=True):
    """Channels-last forward.  v_ntc, f_ntc: (B, T, C).

    Returns (x_atn (B,1,T), filter_feat (B,T,C), new_feat (B,T,C), v_ntc).
    """
    B, T, C = v_ntc.shape
    E = p["cc_w"].shape[0]
    if E != C:
        raise ValueError("filter_feat broadcast requires embed_dim == n_feature "
                         f"(got embed_dim={E}, n_feature={C})")
    H_ae = p["ae_e_w"].shape[0]
    H_at = p["a1_w"].shape[0]
    dt = v_ntc.dtype

    # Weight prep: tap-major stacks, bf16 (or f32) matmul operands, f32 biases.
    wae_e, bae_e = _stack3(p["ae_e_w"], matmul_dtype), p["ae_e_b"].reshape(1, H_ae)
    wae_d, bae_d = _stack3(p["ae_d_w"], matmul_dtype), p["ae_d_b"].reshape(1, C)
    wcc = jnp.transpose(p["cc_w"][:, :, 1]).astype(matmul_dtype)   # centre tap only
    bcc = p["cc_b"].reshape(1, E)
    wa1, ba1 = _stack3(p["a1_w"], matmul_dtype), p["a1_b"].reshape(1, H_at)
    wa2, ba2 = _stack3(p["a2_w"], matmul_dtype), p["a2_b"].reshape(1, H_at)
    wa3, ba3 = p["a3_w"][:, :, 0], p["a3_b"].reshape(1, 1)          # tiny head, f32

    dspec = pl.BlockSpec((1, T, C), lambda b: (b, 0, 0))

    def wspec(shape):
        imap = lambda b: (0,) * len(shape)
        if single_buffer_weights:
            # Grid-invariant weights: single-buffer to halve their VMEM footprint.
            return pl.BlockSpec(shape, imap,
                                pipeline_mode=pl.Buffered(buffer_count=1))
        return pl.BlockSpec(shape, imap)

    # Advisory cost estimate for the XLA scheduler.
    flops = (2 * B * T * (3 * C * H_ae + 3 * H_ae * C + 3 * E * H_at
                          + 3 * H_at * H_at + H_at) + 4 * B * C * E)
    transcendentals = B * (2 * E + T)
    w_itemsize = jnp.dtype(matmul_dtype).itemsize
    weight_elems = (3 * C * H_ae + 3 * H_ae * C + C * E + 3 * E * H_at
                    + 3 * H_at * H_at)
    bytes_accessed = (4 * 2 * B * T * C                      # v, f reads
                      + 4 * (2 * B * T * C + B * T)          # filt, new, atn writes
                      + w_itemsize * weight_elems
                      + 4 * (H_ae + C + E + 3 * H_at + 1))   # biases + 1x1 head

    atn, filt, new_feat = pl.pallas_call(
        _fused_kernel,
        out_shape=(
            jax.ShapeDtypeStruct((B, 1, T), dt),             # x_atn (lane-dense)
            jax.ShapeDtypeStruct((B, T, C), dt),             # filter_feat
            jax.ShapeDtypeStruct((B, T, C), dt),             # new_feat
        ),
        grid=(B,),
        in_specs=[
            dspec, dspec,
            wspec((3, C, H_ae)), wspec((1, H_ae)),
            wspec((3, H_ae, C)), wspec((1, C)),
            wspec((C, E)), wspec((1, E)),
            wspec((3, E, H_at)), wspec((1, H_at)),
            wspec((3, H_at, H_at)), wspec((1, H_at)),
            wspec((1, H_at)), wspec((1, 1)),
        ],
        out_specs=(
            pl.BlockSpec((1, 1, T), lambda b: (b, 0, 0)),
            pl.BlockSpec((1, T, C), lambda b: (b, 0, 0)),
            pl.BlockSpec((1, T, C), lambda b: (b, 0, 0)),
        ),
        compiler_params=pltpu.CompilerParams(
            dimension_semantics=("parallel",),
            vmem_limit_bytes=_default_vmem_limit_bytes(),
        ),
        cost_estimate=pl.CostEstimate(
            flops=flops, transcendentals=transcendentals,
            bytes_accessed=bytes_accessed),
    )(v_ntc, f_ntc, wae_e, bae_e, wae_d, bae_d, wcc, bcc,
      wa1, ba1, wa2, ba2, wa3, ba3)

    return atn, filt, new_feat, v_ntc


def pallas_forward(vfeat_nct, ffeat_nct, p, *, matmul_dtype=jnp.bfloat16,
                   single_buffer_weights=True):
    """PyTorch-compatible NCW interface: inputs/outputs are (B, C, T)."""
    v = jnp.transpose(vfeat_nct, (0, 2, 1))                  # (B, T, C)
    f = jnp.transpose(ffeat_nct, (0, 2, 1))
    atn, filt, new_feat, _ = pallas_forward_ntc(
        v, f, p, matmul_dtype=matmul_dtype,
        single_buffer_weights=single_buffer_weights)
    to_nct = lambda x: jnp.transpose(x, (0, 2, 1))
    # x_atn is already (B, 1, T) == NCW; no transpose needed for it.
    return atn, to_nct(filt), to_nct(new_feat), vfeat_nct


# ----------------------------------------------------------------------------
# Pure-JAX reference (for correctness check)
# ----------------------------------------------------------------------------
def _ref_conv1d(x_nct, w, b, pad):
    y = lax.conv_general_dilated(
        x_nct, w, window_strides=(1,), padding=((pad, pad),),
        dimension_numbers=("NCH", "OIH", "NCH"),
        precision=lax.Precision.HIGHEST)
    return y + b[None, :, None]


def ref_forward(vfeat, ffeat, p):
    fusion = _leaky(_ref_conv1d(ffeat, p["ae_e_w"], p["ae_e_b"], 1))
    new_feat = _leaky(_ref_conv1d(fusion, p["ae_d_w"], p["ae_d_b"], 1))

    def chan(x):
        pooled = jnp.mean(x, axis=2, keepdims=True)
        return _leaky(_ref_conv1d(pooled, p["cc_w"], p["cc_b"], 1))

    ca, ba = chan(vfeat), chan(ffeat)
    filt = jax.nn.sigmoid(ca) * jax.nn.sigmoid(ba) * vfeat
    a1 = _leaky(_ref_conv1d(filt, p["a1_w"], p["a1_b"], 1))
    a2 = _leaky(_ref_conv1d(a1, p["a2_w"], p["a2_b"], 1))
    x_atn = jax.nn.sigmoid(_ref_conv1d(a2, p["a3_w"], p["a3_b"], 0))
    return x_atn, filt, new_feat, vfeat


# ----------------------------------------------------------------------------
# Main
# ----------------------------------------------------------------------------
if __name__ == "__main__":
    # Small demo shapes.  n_feature must equal embed_dim (the module's gate
    # broadcast requires it); C = 128 fills the 128-lane vreg axis.
    B, T = 2, 16
    embed_dim = 128
    n_feature = embed_dim
    ae_hidden = embed_dim // 2      # 512 at full CO2-Net size
    attn_hidden = embed_dim // 2    # 512 at full CO2-Net size

    key = jax.random.PRNGKey(0)
    ks = jax.random.split(key, 16)
    init = lambda k, shape: 0.1 * jax.random.normal(k, shape, jnp.float32)

    params = {
        "ae_e_w": init(ks[0], (ae_hidden, n_feature, 3)),
        "ae_e_b": init(ks[1], (ae_hidden,)),
        "ae_d_w": init(ks[2], (n_feature, ae_hidden, 3)),
        "ae_d_b": init(ks[3], (n_feature,)),
        "cc_w":   init(ks[4], (embed_dim, n_feature, 3)),
        "cc_b":   init(ks[5], (embed_dim,)),
        "a1_w":   init(ks[6], (attn_hidden, embed_dim, 3)),
        "a1_b":   init(ks[7], (attn_hidden,)),
        "a2_w":   init(ks[8], (attn_hidden, attn_hidden, 3)),
        "a2_b":   init(ks[9], (attn_hidden,)),
        "a3_w":   init(ks[10], (1, attn_hidden, 1)),
        "a3_b":   init(ks[11], (1,)),
    }

    vfeat = jax.random.normal(ks[12], (B, n_feature, T), jnp.float32)  # NCW
    ffeat = jax.random.normal(ks[13], (B, n_feature, T), jnp.float32)  # NCW

    refs = jax.block_until_ready(ref_forward(vfeat, ffeat, params))

    def run(matmul_dtype):
        last_err = None
        # Prefer single-buffered (Buffered(1)) weight specs; fall back to the
        # default double-buffering if this JAX build does not honour
        # pipeline_mode on top-level pallas_call BlockSpecs.
        for sbw in (True, False):
            fn = jax.jit(functools.partial(pallas_forward,
                                           matmul_dtype=matmul_dtype,
                                           single_buffer_weights=sbw))
            try:
                return jax.block_until_ready(fn(vfeat, ffeat, params))
            except Exception as e:                           # noqa: BLE001
                last_err = e
        raise last_err

    def check(tag, outs, rtol, atol):
        names = ("x_atn", "filter_feat", "new_feat", "vfeat")
        for name, o, r in zip(names, outs, refs):
            assert o.shape == r.shape and o.dtype == r.dtype, (tag, name)
            assert jnp.allclose(o, r, rtol=rtol, atol=atol), \
                f"{tag}: mismatch vs reference: {name}"

    # Structural check: f32 MXU operands, tight tolerance.
    check("f32", run(jnp.float32), 5e-3, 5e-3)
    # Production config: bf16 MXU operands, f32 accumulation (looser tolerance
    # vs the full-f32 lax.conv reference, per the bf16 guidance).
    check("bf16", run(jnp.bfloat16), 5e-2, 5e-2)

    print("KERNEL_OK")
</pallas_src>

<mosaic_0001>
module attributes {stable_mosaic.version = 11 : i64} {
  func.func @_fused_kernel(%arg0: i32, %arg1: memref<1x16x128xf32, #tpu.memory_space<vmem>>, %arg2: memref<1x16x128xf32, #tpu.memory_space<vmem>>, %arg3: memref<3x128x64xf32, #tpu.memory_space<vmem>>, %arg4: memref<1x64xf32, #tpu.memory_space<vmem>>, %arg5: memref<3x64x128xf32, #tpu.memory_space<vmem>>, %arg6: memref<1x128xf32, #tpu.memory_space<vmem>>, %arg7: memref<128x128xf32, #tpu.memory_space<vmem>>, %arg8: memref<1x128xf32, #tpu.memory_space<vmem>>, %arg9: memref<3x128x64xf32, #tpu.memory_space<vmem>>, %arg10: memref<1x64xf32, #tpu.memory_space<vmem>>, %arg11: memref<3x64x64xf32, #tpu.memory_space<vmem>>, %arg12: memref<1x64xf32, #tpu.memory_space<vmem>>, %arg13: memref<1x64xf32, #tpu.memory_space<vmem>>, %arg14: memref<1x1xf32, #tpu.memory_space<vmem>>, %arg15: memref<1x1x16xf32, #tpu.memory_space<vmem>>, %arg16: memref<1x16x128xf32, #tpu.memory_space<vmem>>, %arg17: memref<1x16x128xf32, #tpu.memory_space<vmem>>) attributes {dimension_semantics = [#tpu.dimension_semantics<parallel>], iteration_bounds = array<i64: 2>, scalar_prefetch = 0 : i64, scratch_operands = 0 : i64, tpu.core_type = #tpu.core_type<tc>, window_params = [{transform_indices = @transform_0, window_bounds = array<i64: 1, 16, 128>}, {transform_indices = @transform_1, window_bounds = array<i64: 1, 16, 128>}, {pipeline_mode = #tpu.pipeline_mode<synchronous>, transform_indices = @transform_2, window_bounds = array<i64: 3, 128, 64>}, {pipeline_mode = #tpu.pipeline_mode<synchronous>, transform_indices = @transform_3, window_bounds = array<i64: 1, 64>}, {pipeline_mode = #tpu.pipeline_mode<synchronous>, transform_indices = @transform_4, window_bounds = array<i64: 3, 64, 128>}, {pipeline_mode = #tpu.pipeline_mode<synchronous>, transform_indices = @transform_5, window_bounds = array<i64: 1, 128>}, {pipeline_mode = #tpu.pipeline_mode<synchronous>, transform_indices = @transform_6, window_bounds = array<i64: 128, 128>}, {pipeline_mode = #tpu.pipeline_mode<synchronous>, transform_indices = @transform_7, window_bounds = array<i64: 1, 128>}, {pipeline_mode = #tpu.pipeline_mode<synchronous>, transform_indices = @transform_8, window_bounds = array<i64: 3, 128, 64>}, {pipeline_mode = #tpu.pipeline_mode<synchronous>, transform_indices = @transform_9, window_bounds = array<i64: 1, 64>}, {pipeline_mode = #tpu.pipeline_mode<synchronous>, transform_indices = @transform_10, window_bounds = array<i64: 3, 64, 64>}, {pipeline_mode = #tpu.pipeline_mode<synchronous>, transform_indices = @transform_11, window_bounds = array<i64: 1, 64>}, {pipeline_mode = #tpu.pipeline_mode<synchronous>, transform_indices = @transform_12, window_bounds = array<i64: 1, 64>}, {pipeline_mode = #tpu.pipeline_mode<synchronous>, transform_indices = @transform_13, window_bounds = array<i64: 1, 1>}, {transform_indices = @transform_14, window_bounds = array<i64: 1, 1, 16>}, {transform_indices = @transform_15, window_bounds = array<i64: 1, 16, 128>}, {transform_indices = @transform_16, window_bounds = array<i64: 1, 16, 128>}]} {
    %c0 = arith.constant 0 : index
    %c0_0 = arith.constant 0 : index
    %c0_1 = arith.constant 0 : index
    %0 = vector.load %arg1[%c0, %c0_0, %c0_1] : memref<1x16x128xf32, #tpu.memory_space<vmem>>, vector<1x16x128xf32>
    %1 = vector.shape_cast %0 : vector<1x16x128xf32> to vector<16x128xf32>
    %c0_2 = arith.constant 0 : index
    %c0_3 = arith.constant 0 : index
    %c0_4 = arith.constant 0 : index
    %2 = vector.load %arg2[%c0_2, %c0_3, %c0_4] : memref<1x16x128xf32, #tpu.memory_space<vmem>>, vector<1x16x128xf32>
    %3 = vector.shape_cast %2 : vector<1x16x128xf32> to vector<16x128xf32>
    %cst = arith.constant 0.000000e+00 : f32
    %4 = vector.broadcast %cst : f32 to vector<1x128xf32>
    %5 = vector.extract_strided_slice %3 {offsets = [0, 0], sizes = [15, 128], strides = [1, 1]} : vector<16x128xf32> to vector<15x128xf32>
    %6 = tpu.concatenate %4, %5 in 0 : vector<1x128xf32>, vector<15x128xf32> -> vector<16x128xf32>
    %7 = vector.extract_strided_slice %3 {offsets = [1, 0], sizes = [15, 128], strides = [1, 1]} : vector<16x128xf32> to vector<15x128xf32>
    %8 = tpu.concatenate %7, %4 in 0 : vector<15x128xf32>, vector<1x128xf32> -> vector<16x128xf32>
    %c1 = arith.constant 1 : index
    %c0_5 = arith.constant 0 : index
    %c0_6 = arith.constant 0 : index
    %9 = vector.load %arg3[%c1, %c0_5, %c0_6] : memref<3x128x64xf32, #tpu.memory_space<vmem>>, vector<1x128x64xf32>
    %10 = vector.shape_cast %9 : vector<1x128x64xf32> to vector<128x64xf32>
    %cst_7 = arith.constant dense<0.000000e+00> : vector<16x64xf32>
    %11 = tpu.matmul %3, %10, %cst_7 {dimension_numbers = #tpu.dot_dimension_numbers<[1], [0], [0], [1], [0, 0, 1, 1], [], []>} : vector<16x128xf32>, vector<128x64xf32>, vector<16x64xf32> -> vector<16x64xf32>
    %c0_8 = arith.constant 0 : index
    %c0_9 = arith.constant 0 : index
    %c0_10 = arith.constant 0 : index
    %12 = vector.load %arg3[%c0_8, %c0_9, %c0_10] : memref<3x128x64xf32, #tpu.memory_space<vmem>>, vector<1x128x64xf32>
    %13 = vector.shape_cast %12 : vector<1x128x64xf32> to vector<128x64xf32>
    %cst_11 = arith.constant dense<0.000000e+00> : vector<16x64xf32>
    %14 = tpu.matmul %6, %13, %cst_11 {dimension_numbers = #tpu.dot_dimension_numbers<[1], [0], [0], [1], [0, 0, 1, 1], [], []>} : vector<16x128xf32>, vector<128x64xf32>, vector<16x64xf32> -> vector<16x64xf32>
    %15 = arith.addf %11, %14 : vector<16x64xf32>
    %c2 = arith.constant 2 : index
    %c0_12 = arith.constant 0 : index
    %c0_13 = arith.constant 0 : index
    %16 = vector.load %arg3[%c2, %c0_12, %c0_13] : memref<3x128x64xf32, #tpu.memory_space<vmem>>, vector<1x128x64xf32>
    %17 = vector.shape_cast %16 : vector<1x128x64xf32> to vector<128x64xf32>
    %cst_14 = arith.constant dense<0.000000e+00> : vector<16x64xf32>
    %18 = tpu.matmul %8, %17, %cst_14 {dimension_numbers = #tpu.dot_dimension_numbers<[1], [0], [0], [1], [0, 0, 1, 1], [], []>} : vector<16x128xf32>, vector<128x64xf32>, vector<16x64xf32> -> vector<16x64xf32>
    %19 = arith.addf %15, %18 : vector<16x64xf32>
    %c0_15 = arith.constant 0 : index
    %c0_16 = arith.constant 0 : index
    %20 = vector.load %arg4[%c0_15, %c0_16] : memref<1x64xf32, #tpu.memory_space<vmem>>, vector<1x64xf32>
    %21 = vector.broadcast %20 : vector<1x64xf32> to vector<16x64xf32>
    %22 = arith.addf %19, %21 : vector<16x64xf32>
    %cst_17 = arith.constant 0.000000e+00 : f32
    %23 = vector.broadcast %cst_17 : f32 to vector<16x64xf32>
    %24 = arith.cmpf ogt, %22, %23 : vector<16x64xf32>
    %cst_18 = arith.constant 2.000000e-01 : f32
    %25 = vector.broadcast %cst_18 : f32 to vector<16x64xf32>
    %26 = arith.mulf %25, %22 : vector<16x64xf32>
    %27 = arith.select %24, %22, %26 : vector<16x64xi1>, vector<16x64xf32>
    %cst_19 = arith.constant 0.000000e+00 : f32
    %28 = vector.broadcast %cst_19 : f32 to vector<1x64xf32>
    %29 = vector.extract_strided_slice %27 {offsets = [0, 0], sizes = [15, 64], strides = [1, 1]} : vector<16x64xf32> to vector<15x64xf32>
    %30 = tpu.concatenate %28, %29 in 0 : vector<1x64xf32>, vector<15x64xf32> -> vector<16x64xf32>
    %31 = vector.extract_strided_slice %27 {offsets = [1, 0], sizes = [15, 64], strides = [1, 1]} : vector<16x64xf32> to vector<15x64xf32>
    %32 = tpu.concatenate %31, %28 in 0 : vector<15x64xf32>, vector<1x64xf32> -> vector<16x64xf32>
    %c1_20 = arith.constant 1 : index
    %c0_21 = arith.constant 0 : index
    %c0_22 = arith.constant 0 : index
    %33 = vector.load %arg5[%c1_20, %c0_21, %c0_22] : memref<3x64x128xf32, #tpu.memory_space<vmem>>, vector<1x64x128xf32>
    %34 = vector.shape_cast %33 : vector<1x64x128xf32> to vector<64x128xf32>
    %cst_23 = arith.constant dense<0.000000e+00> : vector<16x128xf32>
    %35 = tpu.matmul %27, %34, %cst_23 {dimension_numbers = #tpu.dot_dimension_numbers<[1], [0], [0], [1], [0, 0, 1, 1], [], []>} : vector<16x64xf32>, vector<64x128xf32>, vector<16x128xf32> -> vector<16x128xf32>
    %c0_24 = arith.constant 0 : index
    %c0_25 = arith.constant 0 : index
    %c0_26 = arith.constant 0 : index
    %36 = vector.load %arg5[%c0_24, %c0_25, %c0_26] : memref<3x64x128xf32, #tpu.memory_space<vmem>>, vector<1x64x128xf32>
    %37 = vector.shape_cast %36 : vector<1x64x128xf32> to vector<64x128xf32>
    %cst_27 = arith.constant dense<0.000000e+00> : vector<16x128xf32>
    %38 = tpu.matmul %30, %37, %cst_27 {dimension_numbers = #tpu.dot_dimension_numbers<[1], [0], [0], [1], [0, 0, 1, 1], [], []>} : vector<16x64xf32>, vector<64x128xf32>, vector<16x128xf32> -> vector<16x128xf32>
    %39 = arith.addf %35, %38 : vector<16x128xf32>
    %c2_28 = arith.constant 2 : index
    %c0_29 = arith.constant 0 : index
    %c0_30 = arith.constant 0 : index
    %40 = vector.load %arg5[%c2_28, %c0_29, %c0_30] : memref<3x64x128xf32, #tpu.memory_space<vmem>>, vector<1x64x128xf32>
    %41 = vector.shape_cast %40 : vector<1x64x128xf32> to vector<64x128xf32>
    %cst_31 = arith.constant dense<0.000000e+00> : vector<16x128xf32>
    %42 = tpu.matmul %32, %41, %cst_31 {dimension_numbers = #tpu.dot_dimension_numbers<[1], [0], [0], [1], [0, 0, 1, 1], [], []>} : vector<16x64xf32>, vector<64x128xf32>, vector<16x128xf32> -> vector<16x128xf32>
    %43 = arith.addf %39, %42 : vector<16x128xf32>
    %c0_32 = arith.constant 0 : index
    %c0_33 = arith.constant 0 : index
    %44 = vector.load %arg6[%c0_32, %c0_33] : memref<1x128xf32, #tpu.memory_space<vmem>>, vector<1x128xf32>
    %45 = vector.broadcast %44 : vector<1x128xf32> to vector<16x128xf32>
    %46 = arith.addf %43, %45 : vector<16x128xf32>
    %cst_34 = arith.constant 0.000000e+00 : f32
    %47 = vector.broadcast %cst_34 : f32 to vector<16x128xf32>
    %48 = arith.cmpf ogt, %46, %47 : vector<16x128xf32>
    %cst_35 = arith.constant 2.000000e-01 : f32
    %49 = vector.broadcast %cst_35 : f32 to vector<16x128xf32>
    %50 = arith.mulf %49, %46 : vector<16x128xf32>
    %51 = arith.select %48, %46, %50 : vector<16x128xi1>, vector<16x128xf32>
    %c0_36 = arith.constant 0 : index
    %c0_37 = arith.constant 0 : index
    %c0_38 = arith.constant 0 : index
    %52 = vector.load %arg17[%c0_36, %c0_37, %c0_38] : memref<1x16x128xf32, #tpu.memory_space<vmem>>, vector<1x16x128xf32>
    %53 = vector.shape_cast %52 : vector<1x16x128xf32> to vector<16x128xf32>
    %54 = vector.shape_cast %51 : vector<16x128xf32> to vector<1x16x128xf32>
    tpu.vector_store %arg17[%c0_36, %c0_37, %c0_38], %54 {strides = array<i32>} : memref<1x16x128xf32, #tpu.memory_space<vmem>>, vector<1x16x128xf32>,
    %c0_39 = arith.constant 0 : index
    %c0_40 = arith.constant 0 : index
    %55 = vector.load %arg7[%c0_39, %c0_40] : memref<128x128xf32, #tpu.memory_space<vmem>>, vector<128x128xf32>
    %cst_41 = arith.constant dense<0.000000e+00> : vector<128xf32>
    %56 = vector.multi_reduction <add>, %1, %cst_41 [0] : vector<16x128xf32> to vector<128xf32>
    %57 = vector.shape_cast %56 : vector<128xf32> to vector<1x128xf32>
    %cst_42 = arith.constant 6.250000e-02 : f32
    %58 = vector.broadcast %cst_42 : f32 to vector<1x128xf32>
    %59 = arith.mulf %57, %58 : vector<1x128xf32>
    %cst_43 = arith.constant dense<0.000000e+00> : vector<128xf32>
    %60 = vector.multi_reduction <add>, %3, %cst_43 [0] : vector<16x128xf32> to vector<128xf32>
    %61 = vector.shape_cast %60 : vector<128xf32> to vector<1x128xf32>
    %cst_44 = arith.constant 6.250000e-02 : f32
    %62 = vector.broadcast %cst_44 : f32 to vector<1x128xf32>
    %63 = arith.mulf %61, %62 : vector<1x128xf32>
    %cst_45 = arith.constant dense<0.000000e+00> : vector<1x128xf32>
    %64 = tpu.matmul %59, %55, %cst_45 {dimension_numbers = #tpu.dot_dimension_numbers<[1], [0], [0], [1], [0, 0, 1, 1], [], []>} : vector<1x128xf32>, vector<128x128xf32>, vector<1x128xf32> -> vector<1x128xf32>
    %c0_46 = arith.constant 0 : index
    %c0_47 = arith.constant 0 : index
    %65 = vector.load %arg8[%c0_46, %c0_47] : memref<1x128xf32, #tpu.memory_space<vmem>>, vector<1x128xf32>
    %66 = arith.addf %64, %65 : vector<1x128xf32>
    %cst_48 = arith.constant 0.000000e+00 : f32
    %67 = vector.broadcast %cst_48 : f32 to vector<1x128xf32>
    %68 = arith.cmpf ogt, %66, %67 : vector<1x128xf32>
    %cst_49 = arith.constant 2.000000e-01 : f32
    %69 = vector.broadcast %cst_49 : f32 to vector<1x128xf32>
    %70 = arith.mulf %69, %66 : vector<1x128xf32>
    %71 = arith.select %68, %66, %70 : vector<1x128xi1>, vector<1x128xf32>
    %cst_50 = arith.constant dense<0.000000e+00> : vector<1x128xf32>
    %72 = tpu.matmul %63, %55, %cst_50 {dimension_numbers = #tpu.dot_dimension_numbers<[1], [0], [0], [1], [0, 0, 1, 1], [], []>} : vector<1x128xf32>, vector<128x128xf32>, vector<1x128xf32> -> vector<1x128xf32>
    %c0_51 = arith.constant 0 : index
    %c0_52 = arith.constant 0 : index
    %73 = vector.load %arg8[%c0_51, %c0_52] : memref<1x128xf32, #tpu.memory_space<vmem>>, vector<1x128xf32>
    %74 = arith.addf %72, %73 : vector<1x128xf32>
    %cst_53 = arith.constant 0.000000e+00 : f32
    %75 = vector.broadcast %cst_53 : f32 to vector<1x128xf32>
    %76 = arith.cmpf ogt, %74, %75 : vector<1x128xf32>
    %cst_54 = arith.constant 2.000000e-01 : f32
    %77 = vector.broadcast %cst_54 : f32 to vector<1x128xf32>
    %78 = arith.mulf %77, %74 : vector<1x128xf32>
    %79 = arith.select %76, %74, %78 : vector<1x128xi1>, vector<1x128xf32>
    %80 = arith.negf %71 : vector<1x128xf32>
    %81 = math.exp %80 : vector<1x128xf32>
    %cst_55 = arith.constant 1.000000e+00 : f32
    %82 = vector.broadcast %cst_55 : f32 to vector<1x128xf32>
    %83 = arith.addf %82, %81 : vector<1x128xf32>
    %84 = arith.divf %82, %83 : vector<1x128xf32>
    %85 = arith.negf %79 : vector<1x128xf32>
    %86 = math.exp %85 : vector<1x128xf32>
    %cst_56 = arith.constant 1.000000e+00 : f32
    %87 = vector.broadcast %cst_56 : f32 to vector<1x128xf32>
    %88 = arith.addf %87, %86 : vector<1x128xf32>
    %89 = arith.divf %87, %88 : vector<1x128xf32>
    %90 = arith.mulf %84, %89 : vector<1x128xf32>
    %91 = vector.broadcast %90 : vector<1x128xf32> to vector<16x128xf32>
    %92 = arith.mulf %91, %1 : vector<16x128xf32>
    %c0_57 = arith.constant 0 : index
    %c0_58 = arith.constant 0 : index
    %c0_59 = arith.constant 0 : index
    %93 = vector.load %arg16[%c0_57, %c0_58, %c0_59] : memref<1x16x128xf32, #tpu.memory_space<vmem>>, vector<1x16x128xf32>
    %94 = vector.shape_cast %93 : vector<1x16x128xf32> to vector<16x128xf32>
    %95 = vector.shape_cast %92 : vector<16x128xf32> to vector<1x16x128xf32>
    tpu.vector_store %arg16[%c0_57, %c0_58, %c0_59], %95 {strides = array<i32>} : memref<1x16x128xf32, #tpu.memory_space<vmem>>, vector<1x16x128xf32>,
    %cst_60 = arith.constant 0.000000e+00 : f32
    %96 = vector.broadcast %cst_60 : f32 to vector<1x128xf32>
    %97 = vector.extract_strided_slice %92 {offsets = [0, 0], sizes = [15, 128], strides = [1, 1]} : vector<16x128xf32> to vector<15x128xf32>
    %98 = tpu.concatenate %96, %97 in 0 : vector<1x128xf32>, vector<15x128xf32> -> vector<16x128xf32>
    %99 = vector.extract_strided_slice %92 {offsets = [1, 0], sizes = [15, 128], strides = [1, 1]} : vector<16x128xf32> to vector<15x128xf32>
    %100 = tpu.concatenate %99, %96 in 0 : vector<15x128xf32>, vector<1x128xf32> -> vector<16x128xf32>
    %c1_61 = arith.constant 1 : index
    %c0_62 = arith.constant 0 : index
    %c0_63 = arith.constant 0 : index
    %101 = vector.load %arg9[%c1_61, %c0_62, %c0_63] : memref<3x128x64xf32, #tpu.memory_space<vmem>>, vector<1x128x64xf32>
    %102 = vector.shape_cast %101 : vector<1x128x64xf32> to vector<128x64xf32>
    %cst_64 = arith.constant dense<0.000000e+00> : vector<16x64xf32>
    %103 = tpu.matmul %92, %102, %cst_64 {dimension_numbers = #tpu.dot_dimension_numbers<[1], [0], [0], [1], [0, 0, 1, 1], [], []>} : vector<16x128xf32>, vector<128x64xf32>, vector<16x64xf32> -> vector<16x64xf32>
    %c0_65 = arith.constant 0 : index
    %c0_66 = arith.constant 0 : index
    %c0_67 = arith.constant 0 : index
    %104 = vector.load %arg9[%c0_65, %c0_66, %c0_67] : memref<3x128x64xf32, #tpu.memory_space<vmem>>, vector<1x128x64xf32>
    %105 = vector.shape_cast %104 : vector<1x128x64xf32> to vector<128x64xf32>
    %cst_68 = arith.constant dense<0.000000e+00> : vector<16x64xf32>
    %106 = tpu.matmul %98, %105, %cst_68 {dimension_numbers = #tpu.dot_dimension_numbers<[1], [0], [0], [1], [0, 0, 1, 1], [], []>} : vector<16x128xf32>, vector<128x64xf32>, vector<16x64xf32> -> vector<16x64xf32>
    %107 = arith.addf %103, %106 : vector<16x64xf32>
    %c2_69 = arith.constant 2 : index
    %c0_70 = arith.constant 0 : index
    %c0_71 = arith.constant 0 : index
    %108 = vector.load %arg9[%c2_69, %c0_70, %c0_71] : memref<3x128x64xf32, #tpu.memory_space<vmem>>, vector<1x128x64xf32>
    %109 = vector.shape_cast %108 : vector<1x128x64xf32> to vector<128x64xf32>
    %cst_72 = arith.constant dense<0.000000e+00> : vector<16x64xf32>
    %110 = tpu.matmul %100, %109, %cst_72 {dimension_numbers = #tpu.dot_dimension_numbers<[1], [0], [0], [1], [0, 0, 1, 1], [], []>} : vector<16x128xf32>, vector<128x64xf32>, vector<16x64xf32> -> vector<16x64xf32>
    %111 = arith.addf %107, %110 : vector<16x64xf32>
    %c0_73 = arith.constant 0 : index
    %c0_74 = arith.constant 0 : index
    %112 = vector.load %arg10[%c0_73, %c0_74] : memref<1x64xf32, #tpu.memory_space<vmem>>, vector<1x64xf32>
    %113 = vector.broadcast %112 : vector<1x64xf32> to vector<16x64xf32>
    %114 = arith.addf %111, %113 : vector<16x64xf32>
    %cst_75 = arith.constant 0.000000e+00 : f32
    %115 = vector.broadcast %cst_75 : f32 to vector<16x64xf32>
    %116 = arith.cmpf ogt, %114, %115 : vector<16x64xf32>
    %cst_76 = arith.constant 2.000000e-01 : f32
    %117 = vector.broadcast %cst_76 : f32 to vector<16x64xf32>
    %118 = arith.mulf %117, %114 : vector<16x64xf32>
    %119 = arith.select %116, %114, %118 : vector<16x64xi1>, vector<16x64xf32>
    %cst_77 = arith.constant 0.000000e+00 : f32
    %120 = vector.broadcast %cst_77 : f32 to vector<1x64xf32>
    %121 = vector.extract_strided_slice %119 {offsets = [0, 0], sizes = [15, 64], strides = [1, 1]} : vector<16x64xf32> to vector<15x64xf32>
    %122 = tpu.concatenate %120, %121 in 0 : vector<1x64xf32>, vector<15x64xf32> -> vector<16x64xf32>
    %123 = vector.extract_strided_slice %119 {offsets = [1, 0], sizes = [15, 64], strides = [1, 1]} : vector<16x64xf32> to vector<15x64xf32>
    %124 = tpu.concatenate %123, %120 in 0 : vector<15x64xf32>, vector<1x64xf32> -> vector<16x64xf32>
    %c1_78 = arith.constant 1 : index
    %c0_79 = arith.constant 0 : index
    %c0_80 = arith.constant 0 : index
    %125 = vector.load %arg11[%c1_78, %c0_79, %c0_80] : memref<3x64x64xf32, #tpu.memory_space<vmem>>, vector<1x64x64xf32>
    %126 = vector.shape_cast %125 : vector<1x64x64xf32> to vector<64x64xf32>
    %cst_81 = arith.constant dense<0.000000e+00> : vector<16x64xf32>
    %127 = tpu.matmul %119, %126, %cst_81 {dimension_numbers = #tpu.dot_dimension_numbers<[1], [0], [0], [1], [0, 0, 1, 1], [], []>} : vector<16x64xf32>, vector<64x64xf32>, vector<16x64xf32> -> vector<16x64xf32>
    %c0_82 = arith.constant 0 : index
    %c0_83 = arith.constant 0 : index
    %c0_84 = arith.constant 0 : index
    %128 = vector.load %arg11[%c0_82, %c0_83, %c0_84] : memref<3x64x64xf32, #tpu.memory_space<vmem>>, vector<1x64x64xf32>
    %129 = vector.shape_cast %128 : vector<1x64x64xf32> to vector<64x64xf32>
    %cst_85 = arith.constant dense<0.000000e+00> : vector<16x64xf32>
    %130 = tpu.matmul %122, %129, %cst_85 {dimension_numbers = #tpu.dot_dimension_numbers<[1], [0], [0], [1], [0, 0, 1, 1], [], []>} : vector<16x64xf32>, vector<64x64xf32>, vector<16x64xf32> -> vector<16x64xf32>
    %131 = arith.addf %127, %130 : vector<16x64xf32>
    %c2_86 = arith.constant 2 : index
    %c0_87 = arith.constant 0 : index
    %c0_88 = arith.constant 0 : index
    %132 = vector.load %arg11[%c2_86, %c0_87, %c0_88] : memref<3x64x64xf32, #tpu.memory_space<vmem>>, vector<1x64x64xf32>
    %133 = vector.shape_cast %132 : vector<1x64x64xf32> to vector<64x64xf32>
    %cst_89 = arith.constant dense<0.000000e+00> : vector<16x64xf32>
    %134 = tpu.matmul %124, %133, %cst_89 {dimension_numbers = #tpu.dot_dimension_numbers<[1], [0], [0], [1], [0, 0, 1, 1], [], []>} : vector<16x64xf32>, vector<64x64xf32>, vector<16x64xf32> -> vector<16x64xf32>
    %135 = arith.addf %131, %134 : vector<16x64xf32>
    %c0_90 = arith.constant 0 : index
    %c0_91 = arith.constant 0 : index
    %136 = vector.load %arg12[%c0_90, %c0_91] : memref<1x64xf32, #tpu.memory_space<vmem>>, vector<1x64xf32>
    %137 = vector.broadcast %136 : vector<1x64xf32> to vector<16x64xf32>
    %138 = arith.addf %135, %137 : vector<16x64xf32>
    %cst_92 = arith.constant 0.000000e+00 : f32
    %139 = vector.broadcast %cst_92 : f32 to vector<16x64xf32>
    %140 = arith.cmpf ogt, %138, %139 : vector<16x64xf32>
    %cst_93 = arith.constant 2.000000e-01 : f32
    %141 = vector.broadcast %cst_93 : f32 to vector<16x64xf32>
    %142 = arith.mulf %141, %138 : vector<16x64xf32>
    %143 = arith.select %140, %138, %142 : vector<16x64xi1>, vector<16x64xf32>
    %c0_94 = arith.constant 0 : index
    %c0_95 = arith.constant 0 : index
    %144 = vector.load %arg13[%c0_94, %c0_95] : memref<1x64xf32, #tpu.memory_space<vmem>>, vector<1x64xf32>
    %cst_96 = arith.constant dense<0.000000e+00> : vector<1x16xf32>
    %145 = tpu.matmul %144, %143, %cst_96 {dimension_numbers = #tpu.dot_dimension_numbers<[1], [1], [0], [0], [0, 0, 1, 0], [], []>} : vector<1x64xf32>, vector<16x64xf32>, vector<1x16xf32> -> vector<1x16xf32>
    %c0_97 = arith.constant 0 : index
    %c0_98 = arith.constant 0 : index
    %146 = vector.load %arg14[%c0_97, %c0_98] : memref<1x1xf32, #tpu.memory_space<vmem>>, vector<1x1xf32>
    %147 = vector.broadcast %146 : vector<1x1xf32> to vector<1x16xf32>
    %148 = arith.addf %145, %147 : vector<1x16xf32>
    %149 = arith.negf %148 : vector<1x16xf32>
    %150 = math.exp %149 : vector<1x16xf32>
    %cst_99 = arith.constant 1.000000e+00 : f32
    %151 = vector.broadcast %cst_99 : f32 to vector<1x16xf32>
    %152 = arith.addf %151, %150 : vector<1x16xf32>
    %153 = arith.divf %151, %152 : vector<1x16xf32>
    %c0_100 = arith.constant 0 : index
    %c0_101 = arith.constant 0 : index
    %c0_102 = arith.constant 0 : index
    %154 = vector.load %arg15[%c0_100, %c0_101, %c0_102] : memref<1x1x16xf32, #tpu.memory_space<vmem>>, vector<1x1x16xf32>
    %155 = vector.shape_cast %154 : vector<1x1x16xf32> to vector<1x16xf32>
    %156 = vector.shape_cast %153 : vector<1x16xf32> to vector<1x1x16xf32>
    tpu.vector_store %arg15[%c0_100, %c0_101, %c0_102], %156 {strides = array<i32>} : memref<1x1x16xf32, #tpu.memory_space<vmem>>, vector<1x1x16xf32>,
    return
  }
  func.func @transform_0(%arg0: i32) -> (i32, i32, i32) {
    %c0_i32 = arith.constant 0 : i32
    %c0_i32_0 = arith.constant 0 : i32
    %c0_i32_1 = arith.constant 0 : i32
    return %arg0, %c0_i32, %c0_i32_0 : i32, i32, i32
  }
  func.func @transform_1(%arg0: i32) -> (i32, i32, i32) {
    %c0_i32 = arith.constant 0 : i32
    %c0_i32_0 = arith.constant 0 : i32
    %c0_i32_1 = arith.constant 0 : i32
    return %arg0, %c0_i32, %c0_i32_0 : i32, i32, i32
  }
  func.func @transform_2(%arg0: i32) -> (i32, i32, i32) {
    %c0_i32 = arith.constant 0 : i32
    %c0_i32_0 = arith.constant 0 : i32
    %c0_i32_1 = arith.constant 0 : i32
    %c0_i32_2 = arith.constant 0 : i32
    return %c0_i32, %c0_i32_0, %c0_i32_1 : i32, i32, i32
  }
  func.func @transform_3(%arg0: i32) -> (i32, i32) {
    %c0_i32 = arith.constant 0 : i32
    %c0_i32_0 = arith.constant 0 : i32
    %c0_i32_1 = arith.constant 0 : i32
    return %c0_i32, %c0_i32_0 : i32, i32
  }
  func.func @transform_4(%arg0: i32) -> (i32, i32, i32) {
    %c0_i32 = arith.constant 0 : i32
    %c0_i32_0 = arith.constant 0 : i32
    %c0_i32_1 = arith.constant 0 : i32
    %c0_i32_2 = arith.constant 0 : i32
    return %c0_i32, %c0_i32_0, %c0_i32_1 : i32, i32, i32
  }
  func.func @transform_5(%arg0: i32) -> (i32, i32) {
    %c0_i32 = arith.constant 0 : i32
    %c0_i32_0 = arith.constant 0 : i32
    %c0_i32_1 = arith.constant 0 : i32
    return %c0_i32, %c0_i32_0 : i32, i32
  }
  func.func @transform_6(%arg0: i32) -> (i32, i32) {
    %c0_i32 = arith.constant 0 : i32
    %c0_i32_0 = arith.constant 0 : i32
    %c0_i32_1 = arith.constant 0 : i32
    return %c0_i32, %c0_i32_0 : i32, i32
  }
  func.func @transform_7(%arg0: i32) -> (i32, i32) {
    %c0_i32 = arith.constant 0 : i32
    %c0_i32_0 = arith.constant 0 : i32
    %c0_i32_1 = arith.constant 0 : i32
    return %c0_i32, %c0_i32_0 : i32, i32
  }
  func.func @transform_8(%arg0: i32) -> (i32, i32, i32) {
    %c0_i32 = arith.constant 0 : i32
    %c0_i32_0 = arith.constant 0 : i32
    %c0_i32_1 = arith.constant 0 : i32
    %c0_i32_2 = arith.constant 0 : i32
    return %c0_i32, %c0_i32_0, %c0_i32_1 : i32, i32, i32
  }
  func.func @transform_9(%arg0: i32) -> (i32, i32) {
    %c0_i32 = arith.constant 0 : i32
    %c0_i32_0 = arith.constant 0 : i32
    %c0_i32_1 = arith.constant 0 : i32
    return %c0_i32, %c0_i32_0 : i32, i32
  }
  func.func @transform_10(%arg0: i32) -> (i32, i32, i32) {
    %c0_i32 = arith.constant 0 : i32
    %c0_i32_0 = arith.constant 0 : i32
    %c0_i32_1 = arith.constant 0 : i32
    %c0_i32_2 = arith.constant 0 : i32
    return %c0_i32, %c0_i32_0, %c0_i32_1 : i32, i32, i32
  }
  func.func @transform_11(%arg0: i32) -> (i32, i32) {
    %c0_i32 = arith.constant 0 : i32
    %c0_i32_0 = arith.constant 0 : i32
    %c0_i32_1 = arith.constant 0 : i32
    return %c0_i32, %c0_i32_0 : i32, i32
  }
  func.func @transform_12(%arg0: i32) -> (i32, i32) {
    %c0_i32 = arith.constant 0 : i32
    %c0_i32_0 = arith.constant 0 : i32
    %c0_i32_1 = arith.constant 0 : i32
    return %c0_i32, %c0_i32_0 : i32, i32
  }
  func.func @transform_13(%arg0: i32) -> (i32, i32) {
    %c0_i32 = arith.constant 0 : i32
    %c0_i32_0 = arith.constant 0 : i32
    %c0_i32_1 = arith.constant 0 : i32
    return %c0_i32, %c0_i32_0 : i32, i32
  }
  func.func @transform_14(%arg0: i32) -> (i32, i32, i32) {
    %c0_i32 = arith.constant 0 : i32
    %c0_i32_0 = arith.constant 0 : i32
    %c0_i32_1 = arith.constant 0 : i32
    return %arg0, %c0_i32, %c0_i32_0 : i32, i32, i32
  }
  func.func @transform_15(%arg0: i32) -> (i32, i32, i32) {
    %c0_i32 = arith.constant 0 : i32
    %c0_i32_0 = arith.constant 0 : i32
    %c0_i32_1 = arith.constant 0 : i32
    return %arg0, %c0_i32, %c0_i32_0 : i32, i32, i32
  }
  func.func @transform_16(%arg0: i32) -> (i32, i32, i32) {
    %c0_i32 = arith.constant 0 : i32
    %c0_i32_0 = arith.constant 0 : i32
    %c0_i32_1 = arith.constant 0 : i32
    return %arg0, %c0_i32, %c0_i32_0 : i32, i32, i32
  }
}

module attributes {stable_mosaic.version = 11 : i64} {
  func.func @_fused_kernel(%arg0: i32, %arg1: memref<1x16x128xf32, #tpu.memory_space<vmem>>, %arg2: memref<1x16x128xf32, #tpu.memory_space<vmem>>, %arg3: memref<3x128x64xf32, #tpu.memory_space<vmem>>, %arg4: memref<1x64xf32, #tpu.memory_space<vmem>>, %arg5: memref<3x64x128xf32, #tpu.memory_space<vmem>>, %arg6: memref<1x128xf32, #tpu.memory_space<vmem>>, %arg7: memref<128x128xf32, #tpu.memory_space<vmem>>, %arg8: memref<1x128xf32, #tpu.memory_space<vmem>>, %arg9: memref<3x128x64xf32, #tpu.memory_space<vmem>>, %arg10: memref<1x64xf32, #tpu.memory_space<vmem>>, %arg11: memref<3x64x64xf32, #tpu.memory_space<vmem>>, %arg12: memref<1x64xf32, #tpu.memory_space<vmem>>, %arg13: memref<1x64xf32, #tpu.memory_space<vmem>>, %arg14: memref<1x1xf32, #tpu.memory_space<vmem>>, %arg15: memref<1x1x16xf32, #tpu.memory_space<vmem>>, %arg16: memref<1x16x128xf32, #tpu.memory_space<vmem>>, %arg17: memref<1x16x128xf32, #tpu.memory_space<vmem>>) attributes {dimension_semantics = [#tpu.dimension_semantics<parallel>], iteration_bounds = array<i64: 2>, scalar_prefetch = 0 : i64, scratch_operands = 0 : i64, tpu.core_type = #tpu.core_type<tc>, window_params = [{transform_indices = @transform_0, window_bounds = array<i64: 1, 16, 128>}, {transform_indices = @transform_1, window_bounds = array<i64: 1, 16, 128>}, {pipeline_mode = #tpu.pipeline_mode<synchronous>, transform_indices = @transform_2, window_bounds = array<i64: 3, 128, 64>}, {pipeline_mode = #tpu.pipeline_mode<synchronous>, transform_indices = @transform_3, window_bounds = array<i64: 1, 64>}, {pipeline_mode = #tpu.pipeline_mode<synchronous>, transform_indices = @transform_4, window_bounds = array<i64: 3, 64, 128>}, {pipeline_mode = #tpu.pipeline_mode<synchronous>, transform_indices = @transform_5, window_bounds = array<i64: 1, 128>}, {pipeline_mode = #tpu.pipeline_mode<synchronous>, transform_indices = @transform_6, window_bounds = array<i64: 128, 128>}, {pipeline_mode = #tpu.pipeline_mode<synchronous>, transform_indices = @transform_7, window_bounds = array<i64: 1, 128>}, {pipeline_mode = #tpu.pipeline_mode<synchronous>, transform_indices = @transform_8, window_bounds = array<i64: 3, 128, 64>}, {pipeline_mode = #tpu.pipeline_mode<synchronous>, transform_indices = @transform_9, window_bounds = array<i64: 1, 64>}, {pipeline_mode = #tpu.pipeline_mode<synchronous>, transform_indices = @transform_10, window_bounds = array<i64: 3, 64, 64>}, {pipeline_mode = #tpu.pipeline_mode<synchronous>, transform_indices = @transform_11, window_bounds = array<i64: 1, 64>}, {pipeline_mode = #tpu.pipeline_mode<synchronous>, transform_indices = @transform_12, window_bounds = array<i64: 1, 64>}, {pipeline_mode = #tpu.pipeline_mode<synchronous>, transform_indices = @transform_13, window_bounds = array<i64: 1, 1>}, {transform_indices = @transform_14, window_bounds = array<i64: 1, 1, 16>}, {transform_indices = @transform_15, window_bounds = array<i64: 1, 16, 128>}, {transform_indices = @transform_16, window_bounds = array<i64: 1, 16, 128>}]} {
    %c0 = arith.constant 0 : index
    %c0_0 = arith.constant 0 : index
    %c0_1 = arith.constant 0 : index
    %0 = vector.load %arg1[%c0, %c0_0, %c0_1] : memref<1x16x128xf32, #tpu.memory_space<vmem>>, vector<1x16x128xf32>
    %1 = vector.shape_cast %0 : vector<1x16x128xf32> to vector<16x128xf32>
    %c0_2 = arith.constant 0 : index
    %c0_3 = arith.constant 0 : index
    %c0_4 = arith.constant 0 : index
    %2 = vector.load %arg2[%c0_2, %c0_3, %c0_4] : memref<1x16x128xf32, #tpu.memory_space<vmem>>, vector<1x16x128xf32>
    %3 = vector.shape_cast %2 : vector<1x16x128xf32> to vector<16x128xf32>
    %cst = arith.constant 0.000000e+00 : f32
    %4 = vector.broadcast %cst : f32 to vector<1x128xf32>
    %5 = vector.extract_strided_slice %3 {offsets = [0, 0], sizes = [15, 128], strides = [1, 1]} : vector<16x128xf32> to vector<15x128xf32>
    %6 = tpu.concatenate %4, %5 in 0 : vector<1x128xf32>, vector<15x128xf32> -> vector<16x128xf32>
    %7 = vector.extract_strided_slice %3 {offsets = [1, 0], sizes = [15, 128], strides = [1, 1]} : vector<16x128xf32> to vector<15x128xf32>
    %8 = tpu.concatenate %7, %4 in 0 : vector<15x128xf32>, vector<1x128xf32> -> vector<16x128xf32>
    %c1 = arith.constant 1 : index
    %c0_5 = arith.constant 0 : index
    %c0_6 = arith.constant 0 : index
    %9 = vector.load %arg3[%c1, %c0_5, %c0_6] : memref<3x128x64xf32, #tpu.memory_space<vmem>>, vector<1x128x64xf32>
    %10 = vector.shape_cast %9 : vector<1x128x64xf32> to vector<128x64xf32>
    %cst_7 = arith.constant dense<0.000000e+00> : vector<16x64xf32>
    %11 = tpu.matmul %3, %10, %cst_7 {dimension_numbers = #tpu.dot_dimension_numbers<[1], [0], [0], [1], [0, 0, 1, 1], [], []>} : vector<16x128xf32>, vector<128x64xf32>, vector<16x64xf32> -> vector<16x64xf32>
    %c0_8 = arith.constant 0 : index
    %c0_9 = arith.constant 0 : index
    %c0_10 = arith.constant 0 : index
    %12 = vector.load %arg3[%c0_8, %c0_9, %c0_10] : memref<3x128x64xf32, #tpu.memory_space<vmem>>, vector<1x128x64xf32>
    %13 = vector.shape_cast %12 : vector<1x128x64xf32> to vector<128x64xf32>
    %cst_11 = arith.constant dense<0.000000e+00> : vector<16x64xf32>
    %14 = tpu.matmul %6, %13, %cst_11 {dimension_numbers = #tpu.dot_dimension_numbers<[1], [0], [0], [1], [0, 0, 1, 1], [], []>} : vector<16x128xf32>, vector<128x64xf32>, vector<16x64xf32> -> vector<16x64xf32>
    %15 = arith.addf %11, %14 : vector<16x64xf32>
    %c2 = arith.constant 2 : index
    %c0_12 = arith.constant 0 : index
    %c0_13 = arith.constant 0 : index
    %16 = vector.load %arg3[%c2, %c0_12, %c0_13] : memref<3x128x64xf32, #tpu.memory_space<vmem>>, vector<1x128x64xf32>
    %17 = vector.shape_cast %16 : vector<1x128x64xf32> to vector<128x64xf32>
    %cst_14 = arith.constant dense<0.000000e+00> : vector<16x64xf32>
    %18 = tpu.matmul %8, %17, %cst_14 {dimension_numbers = #tpu.dot_dimension_numbers<[1], [0], [0], [1], [0, 0, 1, 1], [], []>} : vector<16x128xf32>, vector<128x64xf32>, vector<16x64xf32> -> vector<16x64xf32>
    %19 = arith.addf %15, %18 : vector<16x64xf32>
    %c0_15 = arith.constant 0 : index
    %c0_16 = arith.constant 0 : index
    %20 = vector.load %arg4[%c0_15, %c0_16] : memref<1x64xf32, #tpu.memory_space<vmem>>, vector<1x64xf32>
    %21 = vector.broadcast %20 : vector<1x64xf32> to vector<16x64xf32>
    %22 = arith.addf %19, %21 : vector<16x64xf32>
    %cst_17 = arith.constant 0.000000e+00 : f32
    %23 = vector.broadcast %cst_17 : f32 to vector<16x64xf32>
    %24 = arith.cmpf ogt, %22, %23 : vector<16x64xf32>
    %cst_18 = arith.constant 2.000000e-01 : f32
    %25 = vector.broadcast %cst_18 : f32 to vector<16x64xf32>
    %26 = arith.mulf %25, %22 : vector<16x64xf32>
    %27 = arith.select %24, %22, %26 : vector<16x64xi1>, vector<16x64xf32>
    %cst_19 = arith.constant 0.000000e+00 : f32
    %28 = vector.broadcast %cst_19 : f32 to vector<1x64xf32>
    %29 = vector.extract_strided_slice %27 {offsets = [0, 0], sizes = [15, 64], strides = [1, 1]} : vector<16x64xf32> to vector<15x64xf32>
    %30 = tpu.concatenate %28, %29 in 0 : vector<1x64xf32>, vector<15x64xf32> -> vector<16x64xf32>
    %31 = vector.extract_strided_slice %27 {offsets = [1, 0], sizes = [15, 64], strides = [1, 1]} : vector<16x64xf32> to vector<15x64xf32>
    %32 = tpu.concatenate %31, %28 in 0 : vector<15x64xf32>, vector<1x64xf32> -> vector<16x64xf32>
    %c1_20 = arith.constant 1 : index
    %c0_21 = arith.constant 0 : index
    %c0_22 = arith.constant 0 : index
    %33 = vector.load %arg5[%c1_20, %c0_21, %c0_22] : memref<3x64x128xf32, #tpu.memory_space<vmem>>, vector<1x64x128xf32>
    %34 = vector.shape_cast %33 : vector<1x64x128xf32> to vector<64x128xf32>
    %cst_23 = arith.constant dense<0.000000e+00> : vector<16x128xf32>
    %35 = tpu.matmul %27, %34, %cst_23 {dimension_numbers = #tpu.dot_dimension_numbers<[1], [0], [0], [1], [0, 0, 1, 1], [], []>} : vector<16x64xf32>, vector<64x128xf32>, vector<16x128xf32> -> vector<16x128xf32>
    %c0_24 = arith.constant 0 : index
    %c0_25 = arith.constant 0 : index
    %c0_26 = arith.constant 0 : index
    %36 = vector.load %arg5[%c0_24, %c0_25, %c0_26] : memref<3x64x128xf32, #tpu.memory_space<vmem>>, vector<1x64x128xf32>
    %37 = vector.shape_cast %36 : vector<1x64x128xf32> to vector<64x128xf32>
    %cst_27 = arith.constant dense<0.000000e+00> : vector<16x128xf32>
    %38 = tpu.matmul %30, %37, %cst_27 {dimension_numbers = #tpu.dot_dimension_numbers<[1], [0], [0], [1], [0, 0, 1, 1], [], []>} : vector<16x64xf32>, vector<64x128xf32>, vector<16x128xf32> -> vector<16x128xf32>
    %39 = arith.addf %35, %38 : vector<16x128xf32>
    %c2_28 = arith.constant 2 : index
    %c0_29 = arith.constant 0 : index
    %c0_30 = arith.constant 0 : index
    %40 = vector.load %arg5[%c2_28, %c0_29, %c0_30] : memref<3x64x128xf32, #tpu.memory_space<vmem>>, vector<1x64x128xf32>
    %41 = vector.shape_cast %40 : vector<1x64x128xf32> to vector<64x128xf32>
    %cst_31 = arith.constant dense<0.000000e+00> : vector<16x128xf32>
    %42 = tpu.matmul %32, %41, %cst_31 {dimension_numbers = #tpu.dot_dimension_numbers<[1], [0], [0], [1], [0, 0, 1, 1], [], []>} : vector<16x64xf32>, vector<64x128xf32>, vector<16x128xf32> -> vector<16x128xf32>
    %43 = arith.addf %39, %42 : vector<16x128xf32>
    %c0_32 = arith.constant 0 : index
    %c0_33 = arith.constant 0 : index
    %44 = vector.load %arg6[%c0_32, %c0_33] : memref<1x128xf32, #tpu.memory_space<vmem>>, vector<1x128xf32>
    %45 = vector.broadcast %44 : vector<1x128xf32> to vector<16x128xf32>
    %46 = arith.addf %43, %45 : vector<16x128xf32>
    %cst_34 = arith.constant 0.000000e+00 : f32
    %47 = vector.broadcast %cst_34 : f32 to vector<16x128xf32>
    %48 = arith.cmpf ogt, %46, %47 : vector<16x128xf32>
    %cst_35 = arith.constant 2.000000e-01 : f32
    %49 = vector.broadcast %cst_35 : f32 to vector<16x128xf32>
    %50 = arith.mulf %49, %46 : vector<16x128xf32>
    %51 = arith.select %48, %46, %50 : vector<16x128xi1>, vector<16x128xf32>
    %c0_36 = arith.constant 0 : index
    %c0_37 = arith.constant 0 : index
    %c0_38 = arith.constant 0 : index
    %52 = vector.load %arg17[%c0_36, %c0_37, %c0_38] : memref<1x16x128xf32, #tpu.memory_space<vmem>>, vector<1x16x128xf32>
    %53 = vector.shape_cast %52 : vector<1x16x128xf32> to vector<16x128xf32>
    %54 = vector.shape_cast %51 : vector<16x128xf32> to vector<1x16x128xf32>
    tpu.vector_store %arg17[%c0_36, %c0_37, %c0_38], %54 {strides = array<i32>} : memref<1x16x128xf32, #tpu.memory_space<vmem>>, vector<1x16x128xf32>,
    %c0_39 = arith.constant 0 : index
    %c0_40 = arith.constant 0 : index
    %55 = vector.load %arg7[%c0_39, %c0_40] : memref<128x128xf32, #tpu.memory_space<vmem>>, vector<128x128xf32>
    %cst_41 = arith.constant dense<0.000000e+00> : vector<128xf32>
    %56 = vector.multi_reduction <add>, %1, %cst_41 [0] : vector<16x128xf32> to vector<128xf32>
    %57 = vector.shape_cast %56 : vector<128xf32> to vector<1x128xf32>
    %cst_42 = arith.constant 6.250000e-02 : f32
    %58 = vector.broadcast %cst_42 : f32 to vector<1x128xf32>
    %59 = arith.mulf %57, %58 : vector<1x128xf32>
    %cst_43 = arith.constant dense<0.000000e+00> : vector<128xf32>
    %60 = vector.multi_reduction <add>, %3, %cst_43 [0] : vector<16x128xf32> to vector<128xf32>
    %61 = vector.shape_cast %60 : vector<128xf32> to vector<1x128xf32>
    %cst_44 = arith.constant 6.250000e-02 : f32
    %62 = vector.broadcast %cst_44 : f32 to vector<1x128xf32>
    %63 = arith.mulf %61, %62 : vector<1x128xf32>
    %cst_45 = arith.constant dense<0.000000e+00> : vector<1x128xf32>
    %64 = tpu.matmul %59, %55, %cst_45 {dimension_numbers = #tpu.dot_dimension_numbers<[1], [0], [0], [1], [0, 0, 1, 1], [], []>} : vector<1x128xf32>, vector<128x128xf32>, vector<1x128xf32> -> vector<1x128xf32>
    %c0_46 = arith.constant 0 : index
    %c0_47 = arith.constant 0 : index
    %65 = vector.load %arg8[%c0_46, %c0_47] : memref<1x128xf32, #tpu.memory_space<vmem>>, vector<1x128xf32>
    %66 = arith.addf %64, %65 : vector<1x128xf32>
    %cst_48 = arith.constant 0.000000e+00 : f32
    %67 = vector.broadcast %cst_48 : f32 to vector<1x128xf32>
    %68 = arith.cmpf ogt, %66, %67 : vector<1x128xf32>
    %cst_49 = arith.constant 2.000000e-01 : f32
    %69 = vector.broadcast %cst_49 : f32 to vector<1x128xf32>
    %70 = arith.mulf %69, %66 : vector<1x128xf32>
    %71 = arith.select %68, %66, %70 : vector<1x128xi1>, vector<1x128xf32>
    %cst_50 = arith.constant dense<0.000000e+00> : vector<1x128xf32>
    %72 = tpu.matmul %63, %55, %cst_50 {dimension_numbers = #tpu.dot_dimension_numbers<[1], [0], [0], [1], [0, 0, 1, 1], [], []>} : vector<1x128xf32>, vector<128x128xf32>, vector<1x128xf32> -> vector<1x128xf32>
    %c0_51 = arith.constant 0 : index
    %c0_52 = arith.constant 0 : index
    %73 = vector.load %arg8[%c0_51, %c0_52] : memref<1x128xf32, #tpu.memory_space<vmem>>, vector<1x128xf32>
    %74 = arith.addf %72, %73 : vector<1x128xf32>
    %cst_53 = arith.constant 0.000000e+00 : f32
    %75 = vector.broadcast %cst_53 : f32 to vector<1x128xf32>
    %76 = arith.cmpf ogt, %74, %75 : vector<1x128xf32>
    %cst_54 = arith.constant 2.000000e-01 : f32
    %77 = vector.broadcast %cst_54 : f32 to vector<1x128xf32>
    %78 = arith.mulf %77, %74 : vector<1x128xf32>
    %79 = arith.select %76, %74, %78 : vector<1x128xi1>, vector<1x128xf32>
    %80 = arith.negf %71 : vector<1x128xf32>
    %81 = math.exp %80 : vector<1x128xf32>
    %cst_55 = arith.constant 1.000000e+00 : f32
    %82 = vector.broadcast %cst_55 : f32 to vector<1x128xf32>
    %83 = arith.addf %82, %81 : vector<1x128xf32>
    %84 = arith.divf %82, %83 : vector<1x128xf32>
    %85 = arith.negf %79 : vector<1x128xf32>
    %86 = math.exp %85 : vector<1x128xf32>
    %cst_56 = arith.constant 1.000000e+00 : f32
    %87 = vector.broadcast %cst_56 : f32 to vector<1x128xf32>
    %88 = arith.addf %87, %86 : vector<1x128xf32>
    %89 = arith.divf %87, %88 : vector<1x128xf32>
    %90 = arith.mulf %84, %89 : vector<1x128xf32>
    %91 = vector.broadcast %90 : vector<1x128xf32> to vector<16x128xf32>
    %92 = arith.mulf %91, %1 : vector<16x128xf32>
    %c0_57 = arith.constant 0 : index
    %c0_58 = arith.constant 0 : index
    %c0_59 = arith.constant 0 : index
    %93 = vector.load %arg16[%c0_57, %c0_58, %c0_59] : memref<1x16x128xf32, #tpu.memory_space<vmem>>, vector<1x16x128xf32>
    %94 = vector.shape_cast %93 : vector<1x16x128xf32> to vector<16x128xf32>
    %95 = vector.shape_cast %92 : vector<16x128xf32> to vector<1x16x128xf32>
    tpu.vector_store %arg16[%c0_57, %c0_58, %c0_59], %95 {strides = array<i32>} : memref<1x16x128xf32, #tpu.memory_space<vmem>>, vector<1x16x128xf32>,
    %cst_60 = arith.constant 0.000000e+00 : f32
    %96 = vector.broadcast %cst_60 : f32 to vector<1x128xf32>
    %97 = vector.extract_strided_slice %92 {offsets = [0, 0], sizes = [15, 128], strides = [1, 1]} : vector<16x128xf32> to vector<15x128xf32>
    %98 = tpu.concatenate %96, %97 in 0 : vector<1x128xf32>, vector<15x128xf32> -> vector<16x128xf32>
    %99 = vector.extract_strided_slice %92 {offsets = [1, 0], sizes = [15, 128], strides = [1, 1]} : vector<16x128xf32> to vector<15x128xf32>
    %100 = tpu.concatenate %99, %96 in 0 : vector<15x128xf32>, vector<1x128xf32> -> vector<16x128xf32>
    %c1_61 = arith.constant 1 : index
    %c0_62 = arith.constant 0 : index
    %c0_63 = arith.constant 0 : index
    %101 = vector.load %arg9[%c1_61, %c0_62, %c0_63] : memref<3x128x64xf32, #tpu.memory_space<vmem>>, vector<1x128x64xf32>
    %102 = vector.shape_cast %101 : vector<1x128x64xf32> to vector<128x64xf32>
    %cst_64 = arith.constant dense<0.000000e+00> : vector<16x64xf32>
    %103 = tpu.matmul %92, %102, %cst_64 {dimension_numbers = #tpu.dot_dimension_numbers<[1], [0], [0], [1], [0, 0, 1, 1], [], []>} : vector<16x128xf32>, vector<128x64xf32>, vector<16x64xf32> -> vector<16x64xf32>
    %c0_65 = arith.constant 0 : index
    %c0_66 = arith.constant 0 : index
    %c0_67 = arith.constant 0 : index
    %104 = vector.load %arg9[%c0_65, %c0_66, %c0_67] : memref<3x128x64xf32, #tpu.memory_space<vmem>>, vector<1x128x64xf32>
    %105 = vector.shape_cast %104 : vector<1x128x64xf32> to vector<128x64xf32>
    %cst_68 = arith.constant dense<0.000000e+00> : vector<16x64xf32>
    %106 = tpu.matmul %98, %105, %cst_68 {dimension_numbers = #tpu.dot_dimension_numbers<[1], [0], [0], [1], [0, 0, 1, 1], [], []>} : vector<16x128xf32>, vector<128x64xf32>, vector<16x64xf32> -> vector<16x64xf32>
    %107 = arith.addf %103, %106 : vector<16x64xf32>
    %c2_69 = arith.constant 2 : index
    %c0_70 = arith.constant 0 : index
    %c0_71 = arith.constant 0 : index
    %108 = vector.load %arg9[%c2_69, %c0_70, %c0_71] : memref<3x128x64xf32, #tpu.memory_space<vmem>>, vector<1x128x64xf32>
    %109 = vector.shape_cast %108 : vector<1x128x64xf32> to vector<128x64xf32>
    %cst_72 = arith.constant dense<0.000000e+00> : vector<16x64xf32>
    %110 = tpu.matmul %100, %109, %cst_72 {dimension_numbers = #tpu.dot_dimension_numbers<[1], [0], [0], [1], [0, 0, 1, 1], [], []>} : vector<16x128xf32>, vector<128x64xf32>, vector<16x64xf32> -> vector<16x64xf32>
    %111 = arith.addf %107, %110 : vector<16x64xf32>
    %c0_73 = arith.constant 0 : index
    %c0_74 = arith.constant 0 : index
    %112 = vector.load %arg10[%c0_73, %c0_74] : memref<1x64xf32, #tpu.memory_space<vmem>>, vector<1x64xf32>
    %113 = vector.broadcast %112 : vector<1x64xf32> to vector<16x64xf32>
    %114 = arith.addf %111, %113 : vector<16x64xf32>
    %cst_75 = arith.constant 0.000000e+00 : f32
    %115 = vector.broadcast %cst_75 : f32 to vector<16x64xf32>
    %116 = arith.cmpf ogt, %114, %115 : vector<16x64xf32>
    %cst_76 = arith.constant 2.000000e-01 : f32
    %117 = vector.broadcast %cst_76 : f32 to vector<16x64xf32>
    %118 = arith.mulf %117, %114 : vector<16x64xf32>
    %119 = arith.select %116, %114, %118 : vector<16x64xi1>, vector<16x64xf32>
    %cst_77 = arith.constant 0.000000e+00 : f32
    %120 = vector.broadcast %cst_77 : f32 to vector<1x64xf32>
    %121 = vector.extract_strided_slice %119 {offsets = [0, 0], sizes = [15, 64], strides = [1, 1]} : vector<16x64xf32> to vector<15x64xf32>
    %122 = tpu.concatenate %120, %121 in 0 : vector<1x64xf32>, vector<15x64xf32> -> vector<16x64xf32>
    %123 = vector.extract_strided_slice %119 {offsets = [1, 0], sizes = [15, 64], strides = [1, 1]} : vector<16x64xf32> to vector<15x64xf32>
    %124 = tpu.concatenate %123, %120 in 0 : vector<15x64xf32>, vector<1x64xf32> -> vector<16x64xf32>
    %c1_78 = arith.constant 1 : index
    %c0_79 = arith.constant 0 : index
    %c0_80 = arith.constant 0 : index
    %125 = vector.load %arg11[%c1_78, %c0_79, %c0_80] : memref<3x64x64xf32, #tpu.memory_space<vmem>>, vector<1x64x64xf32>
    %126 = vector.shape_cast %125 : vector<1x64x64xf32> to vector<64x64xf32>
    %cst_81 = arith.constant dense<0.000000e+00> : vector<16x64xf32>
    %127 = tpu.matmul %119, %126, %cst_81 {dimension_numbers = #tpu.dot_dimension_numbers<[1], [0], [0], [1], [0, 0, 1, 1], [], []>} : vector<16x64xf32>, vector<64x64xf32>, vector<16x64xf32> -> vector<16x64xf32>
    %c0_82 = arith.constant 0 : index
    %c0_83 = arith.constant 0 : index
    %c0_84 = arith.constant 0 : index
    %128 = vector.load %arg11[%c0_82, %c0_83, %c0_84] : memref<3x64x64xf32, #tpu.memory_space<vmem>>, vector<1x64x64xf32>
    %129 = vector.shape_cast %128 : vector<1x64x64xf32> to vector<64x64xf32>
    %cst_85 = arith.constant dense<0.000000e+00> : vector<16x64xf32>
    %130 = tpu.matmul %122, %129, %cst_85 {dimension_numbers = #tpu.dot_dimension_numbers<[1], [0], [0], [1], [0, 0, 1, 1], [], []>} : vector<16x64xf32>, vector<64x64xf32>, vector<16x64xf32> -> vector<16x64xf32>
    %131 = arith.addf %127, %130 : vector<16x64xf32>
    %c2_86 = arith.constant 2 : index
    %c0_87 = arith.constant 0 : index
    %c0_88 = arith.constant 0 : index
    %132 = vector.load %arg11[%c2_86, %c0_87, %c0_88] : memref<3x64x64xf32, #tpu.memory_space<vmem>>, vector<1x64x64xf32>
    %133 = vector.shape_cast %132 : vector<1x64x64xf32> to vector<64x64xf32>
    %cst_89 = arith.constant dense<0.000000e+00> : vector<16x64xf32>
    %134 = tpu.matmul %124, %133, %cst_89 {dimension_numbers = #tpu.dot_dimension_numbers<[1], [0], [0], [1], [0, 0, 1, 1], [], []>} : vector<16x64xf32>, vector<64x64xf32>, vector<16x64xf32> -> vector<16x64xf32>
    %135 = arith.addf %131, %134 : vector<16x64xf32>
    %c0_90 = arith.constant 0 : index
    %c0_91 = arith.constant 0 : index
    %136 = vector.load %arg12[%c0_90, %c0_91] : memref<1x64xf32, #tpu.memory_space<vmem>>, vector<1x64xf32>
    %137 = vector.broadcast %136 : vector<1x64xf32> to vector<16x64xf32>
    %138 = arith.addf %135, %137 : vector<16x64xf32>
    %cst_92 = arith.constant 0.000000e+00 : f32
    %139 = vector.broadcast %cst_92 : f32 to vector<16x64xf32>
    %140 = arith.cmpf ogt, %138, %139 : vector<16x64xf32>
    %cst_93 = arith.constant 2.000000e-01 : f32
    %141 = vector.broadcast %cst_93 : f32 to vector<16x64xf32>
    %142 = arith.mulf %141, %138 : vector<16x64xf32>
    %143 = arith.select %140, %138, %142 : vector<16x64xi1>, vector<16x64xf32>
    %c0_94 = arith.constant 0 : index
    %c0_95 = arith.constant 0 : index
    %144 = vector.load %arg13[%c0_94, %c0_95] : memref<1x64xf32, #tpu.memory_space<vmem>>, vector<1x64xf32>
    %cst_96 = arith.constant dense<0.000000e+00> : vector<1x16xf32>
    %145 = tpu.matmul %144, %143, %cst_96 {dimension_numbers = #tpu.dot_dimension_numbers<[1], [1], [0], [0], [0, 0, 1, 0], [], []>} : vector<1x64xf32>, vector<16x64xf32>, vector<1x16xf32> -> vector<1x16xf32>
    %c0_97 = arith.constant 0 : index
    %c0_98 = arith.constant 0 : index
    %146 = vector.load %arg14[%c0_97, %c0_98] : memref<1x1xf32, #tpu.memory_space<vmem>>, vector<1x1xf32>
    %147 = vector.broadcast %146 : vector<1x1xf32> to vector<1x16xf32>
    %148 = arith.addf %145, %147 : vector<1x16xf32>
    %149 = arith.negf %148 : vector<1x16xf32>
    %150 = math.exp %149 : vector<1x16xf32>
    %cst_99 = arith.constant 1.000000e+00 : f32
    %151 = vector.broadcast %cst_99 : f32 to vector<1x16xf32>
    %152 = arith.addf %151, %150 : vector<1x16xf32>
    %153 = arith.divf %151, %152 : vector<1x16xf32>
    %c0_100 = arith.constant 0 : index
    %c0_101 = arith.constant 0 : index
    %c0_102 = arith.constant 0 : index
    %154 = vector.load %arg15[%c0_100, %c0_101, %c0_102] : memref<1x1x16xf32, #tpu.memory_space<vmem>>, vector<1x1x16xf32>
    %155 = vector.shape_cast %154 : vector<1x1x16xf32> to vector<1x16xf32>
    %156 = vector.shape_cast %153 : vector<1x16xf32> to vector<1x1x16xf32>
    tpu.vector_store %arg15[%c0_100, %c0_101, %c0_102], %156 {strides = array<i32>} : memref<1x1x16xf32, #tpu.memory_space<vmem>>, vector<1x1x16xf32>,
    return
  }
  func.func @transform_0(%arg0: i32) -> (i32, i32, i32) {
    %c0_i32 = arith.constant 0 : i32
    %c0_i32_0 = arith.constant 0 : i32
    %c0_i32_1 = arith.constant 0 : i32
    return %arg0, %c0_i32, %c0_i32_0 : i32, i32, i32
  }
  func.func @transform_1(%arg0: i32) -> (i32, i32, i32) {
    %c0_i32 = arith.constant 0 : i32
    %c0_i32_0 = arith.constant 0 : i32
    %c0_i32_1 = arith.constant 0 : i32
    return %arg0, %c0_i32, %c0_i32_0 : i32, i32, i32
  }
  func.func @transform_2(%arg0: i32) -> (i32, i32, i32) {
    %c0_i32 = arith.constant 0 : i32
    %c0_i32_0 = arith.constant 0 : i32
    %c0_i32_1 = arith.constant 0 : i32
    %c0_i32_2 = arith.constant 0 : i32
    return %c0_i32, %c0_i32_0, %c0_i32_1 : i32, i32, i32
  }
  func.func @transform_3(%arg0: i32) -> (i32, i32) {
    %c0_i32 = arith.constant 0 : i32
    %c0_i32_0 = arith.constant 0 : i32
    %c0_i32_1 = arith.constant 0 : i32
    return %c0_i32, %c0_i32_0 : i32, i32
  }
  func.func @transform_4(%arg0: i32) -> (i32, i32, i32) {
    %c0_i32 = arith.constant 0 : i32
    %c0_i32_0 = arith.constant 0 : i32
    %c0_i32_1 = arith.constant 0 : i32
    %c0_i32_2 = arith.constant 0 : i32
    return %c0_i32, %c0_i32_0, %c0_i32_1 : i32, i32, i32
  }
  func.func @transform_5(%arg0: i32) -> (i32, i32) {
    %c0_i32 = arith.constant 0 : i32
    %c0_i32_0 = arith.constant 0 : i32
    %c0_i32_1 = arith.constant 0 : i32
    return %c0_i32, %c0_i32_0 : i32, i32
  }
  func.func @transform_6(%arg0: i32) -> (i32, i32) {
    %c0_i32 = arith.constant 0 : i32
    %c0_i32_0 = arith.constant 0 : i32
    %c0_i32_1 = arith.constant 0 : i32
    return %c0_i32, %c0_i32_0 : i32, i32
  }
  func.func @transform_7(%arg0: i32) -> (i32, i32) {
    %c0_i32 = arith.constant 0 : i32
    %c0_i32_0 = arith.constant 0 : i32
    %c0_i32_1 = arith.constant 0 : i32
    return %c0_i32, %c0_i32_0 : i32, i32
  }
  func.func @transform_8(%arg0: i32) -> (i32, i32, i32) {
    %c0_i32 = arith.constant 0 : i32
    %c0_i32_0 = arith.constant 0 : i32
    %c0_i32_1 = arith.constant 0 : i32
    %c0_i32_2 = arith.constant 0 : i32
    return %c0_i32, %c0_i32_0, %c0_i32_1 : i32, i32, i32
  }
  func.func @transform_9(%arg0: i32) -> (i32, i32) {
    %c0_i32 = arith.constant 0 : i32
    %c0_i32_0 = arith.constant 0 : i32
    %c0_i32_1 = arith.constant 0 : i32
    return %c0_i32, %c0_i32_0 : i32, i32
  }
  func.func @transform_10(%arg0: i32) -> (i32, i32, i32) {
    %c0_i32 = arith.constant 0 : i32
    %c0_i32_0 = arith.constant 0 : i32
    %c0_i32_1 = arith.constant 0 : i32
    %c0_i32_2 = arith.constant 0 : i32
    return %c0_i32, %c0_i32_0, %c0_i32_1 : i32, i32, i32
  }
  func.func @transform_11(%arg0: i32) -> (i32, i32) {
    %c0_i32 = arith.constant 0 : i32
    %c0_i32_0 = arith.constant 0 : i32
    %c0_i32_1 = arith.constant 0 : i32
    return %c0_i32, %c0_i32_0 : i32, i32
  }
  func.func @transform_12(%arg0: i32) -> (i32, i32) {
    %c0_i32 = arith.constant 0 : i32
    %c0_i32_0 = arith.constant 0 : i32
    %c0_i32_1 = arith.constant 0 : i32
    return %c0_i32, %c0_i32_0 : i32, i32
  }
  func.func @transform_13(%arg0: i32) -> (i32, i32) {
    %c0_i32 = arith.constant 0 : i32
    %c0_i32_0 = arith.constant 0 : i32
    %c0_i32_1 = arith.constant 0 : i32
    return %c0_i32, %c0_i32_0 : i32, i32
  }
  func.func @transform_14(%arg0: i32) -> (i32, i32, i32) {
    %c0_i32 = arith.constant 0 : i32
    %c0_i32_0 = arith.constant 0 : i32
    %c0_i32_1 = arith.constant 0 : i32
    return %arg0, %c0_i32, %c0_i32_0 : i32, i32, i32
  }
  func.func @transform_15(%arg0: i32) -> (i32, i32, i32) {
    %c0_i32 = arith.constant 0 : i32
    %c0_i32_0 = arith.constant 0 : i32
    %c0_i32_1 = arith.constant 0 : i32
    return %arg0, %c0_i32, %c0_i32_0 : i32, i32, i32
  }
  func.func @transform_16(%arg0: i32) -> (i32, i32, i32) {
    %c0_i32 = arith.constant 0 : i32
    %c0_i32_0 = arith.constant 0 : i32
    %c0_i32_1 = arith.constant 0 : i32
    return %arg0, %c0_i32, %c0_i32_0 : i32, i32, i32
  }
}

</mosaic_0001>

<bundles_post_ra>
// kernel: pallas_forward.1
= control target key start
LH: loop header
LB: loop body
LE: loop exit
PB: predicated region body
PF: predicated region fallthrough
CT: control target
= control target key end

     0   :  { %s4452_s0 = inlined_call_operand.vmem [shape: f32[2,16,128], index: 0, kind: input, shape index: {}]   ;;  %s4453_s1 = inlined_call_operand.vmem [shape: f32[2,16,128], index: 1, kind: input, shape index: {}]   ;;  %s4454_s2 = inlined_call_operand.vmem [shape: f32[3,128,64], index: 2, kind: input, shape index: {}]   ;;  %s4455_s3 = inlined_call_operand.vmem [shape: f32[1,64], index: 3, kind: input, shape index: {}]   ;;  %s4456_s4 = inlined_call_operand.vmem [shape: f32[3,64,128], index: 4, kind: input, shape index: {}]   ;;  %s4457_s5 = inlined_call_operand.vmem [shape: f32[1,128], index: 5, kind: input, shape index: {}]   ;;  %s4458_s6 = inlined_call_operand.vmem [shape: f32[128,128], index: 6, kind: input, shape index: {}]   ;;  %s4459_s7 = inlined_call_operand.vmem [shape: f32[1,128], index: 7, kind: input, shape index: {}]   ;;  %s4460_s8 = inlined_call_operand.vmem [shape: f32[3,128,64], index: 8, kind: input, shape index: {}]   ;;  %s4461_s9 = inlined_call_operand.vmem [shape: f32[1,64], index: 9, kind: input, shape index: {}]   ;;  %s4462_s10 = inlined_call_operand.vmem [shape: f32[3,64,64], index: 10, kind: input, shape index: {}]   ;;  %s4463_s11 = inlined_call_operand.vmem [shape: f32[1,64], index: 11, kind: input, shape index: {}]   ;;  %s4464_s12 = inlined_call_operand.vmem [shape: f32[1,64], index: 12, kind: input, shape index: {}]   ;;  %s4465_s13 = inlined_call_operand.<no memory space> [shape: f32[1,1], index: 13, kind: input, shape index: {}]   ;;  %s4466_s14 = inlined_call_operand.hbm [shape: f32[2,1,16], index: 14, kind: output, shape index: {0}]   ;;  %s4467_s15 = inlined_call_operand.hbm [shape: f32[2,16,128], index: 15, kind: output, shape index: {1}]   ;;  %s4468_s16 = inlined_call_operand.hbm [shape: f32[2,16,128], index: 16, kind: output, shape index: {2}]  }
   0x1   :  { %4476 = sst [smem:[#allocation15_spill]] %s4452_s0  ;;  %v22_v0 = vstv %s4465_s13 }
   0x2   :  { %4477 = sst [smem:[#allocation16_spill]] %s4453_s1  ;;  %23 = vst [vmem:[#allocation2] sm:$0x1] %v22_v0 }
   0x3   :  { %4478 = sst [smem:[#allocation17_spill]] %s4454_s2 }
   0x4   :  { %4479 = sst [smem:[#allocation18_spill]] %s4455_s3 }
   0x5   :  { %24 = vsyncpa [#allocation4], 0 }
   0x6   :  { %26 = vsyncpa [#allocation4 + $0x1], 0 }
   0x7   :  { %27 = vsyncpa [#allocation6], 0 }
   0x8   :  { %29 = vsyncpa [#allocation6 + $0x1], 0  ;;  %s3647_s23 = smov 0   ;;  %s3649_s24 = smov 0  }
   0x9   :  { %s3651_s25 = smov 0   ;;  %s3653_s26 = smov 0  }
   0xa LB: > { %4480 = sst [smem:[#allocation10_spill]] %s3536_s23  ;;  %s3668_s13 = sadd.s32 4294967295, %s3548_s26   ;;  %s3548_s26 = sphi %s3653_s26, %s4497_s26   ;;  %s3544_s25 = sphi %s3651_s25, %s4499_s25   ;;  %s3540_s24 = sphi %s3649_s24, %s4501_s24   ;;  %s3536_s23 = sphi %s3647_s23, %s4500_s23  }
   0xb   : > { %4481 = sst [smem:[#allocation11_spill]] %s3544_s25  ;;  %s4469_s27 = sadd.s32 4294967294, %s3548_s26  }
   0xc   : > { %s3672_s28 = sadd.s32 1, %s3548_s26   ;;  %s346_s29 = sadd.s32 1, %s3544_s25 }
   0xd   : > { %4482 = sst [smem:[#allocation12_spill]] %s3672_s28  ;;  %s343_s30 = ssub.s32 %s3548_s26, %s3672_s28 }
   0xe   : > { %p356_p0 = scmp.ne.s32.totalorder %s3544_s25, %s3540_s24  ;;  %p344_p1 = scmp.eq.s32.totalorder %s343_s30, 0 }
   0xf   : > { %p357_p2 = scmp.eq.s32.totalorder %s3668_s13, 1  ;;  %p362_p3 = scmp.ne.s32.totalorder %s3540_s24, %s3536_s23 }
  0x10   : > { %p363_p4 = scmp.eq.s32.totalorder %s4469_s27, 1  ;;  %p2252_p7 = scmp.ge.s32.totalorder %s3548_s26, 1 }
  0x11   : > { %s3685_s0 = scalar_select %p344_p1, %s3544_s25, %s346_s29  }
  0x12   : > { %p3687_p5 = por %p357_p2, %p356_p0  ;;  %p3691_p6 = por %p363_p4, %p362_p3 }
  0x13   : > { %4483 = sst [smem:[#allocation13_spill]] %s3685_s0  ;;  %p485_p8 = scmp.lt.s32.totalorder %s3548_s26, 3 }
  0x14   : > { %s4485_s18 = scalar_select %p3691_p6, 1, 0 }
  0x15   : > { %p486_p9 = pnand %p2252_p7, %p485_p8 }
  0x16   : > { %4486 = sst [smem:[#allocation14_spill]] %s4485_s18  ;;  %s4487_s2 = sld [smem:[#allocation17_spill]] (!%p486_p9)  ;;  %vm565_vm0 = vcmask (!%p486_p9), 1040384   ;;  %v892_v26 = vld [vmem:[%s4456_s4] sm:$0xff] (!%p486_p9)  ;;  %v893_v27 = vld [vmem:[%s4456_s4 + $0x8] sm:$0xff] (!%p486_p9)  ;;  %v894_v28 = vld [vmem:[%s4456_s4 + $0x10] sm:$0xff] (!%p486_p9) }
  0x17   : > { %489 = sbr.rel (%p486_p9) target bundleno = 1496 (0x5d8), region = 76  ;;  %p549_p10 = scmp.lt.s32.totalorder (!%p486_p9), %s3668_s13, 1  ;;  %vm3734_vm1 = vmneg (!%p486_p9), %vm565_vm0  ;;  %v895_v29 = vld [vmem:[%s4456_s4 + $0x18] sm:$0xff] (!%p486_p9)  ;;  %v3098_v30 = vpack.c.bf16 (!%p486_p9), %v893_v27, %v892_v26  ;;  %vm572_vm2 = vcmask (!%p486_p9), 1046528   ;;  %v896_v27 = vld [vmem:[%s4456_s4 + $0x20] sm:$0xff] (!%p486_p9)  ;;  %vm900_vm5 = vcmask (!%p486_p9), 523264  }
  0x18   : > { %s4488_s1 = sld [smem:[#allocation16_spill]] (!%p486_p9)  ;;  %v3102_v31 = vpack.c.bf16 (!%p486_p9), %v895_v29, %v894_v28  ;;  %v897_v28 = vld [vmem:[%s4456_s4 + $0x28] sm:$0xff] (!%p486_p9)  ;;  %s4491_s3 = sld [smem:[#allocation18_spill]] (!%p486_p9)  ;;  %vm3551_vm6 = vmmov (!%p486_p9), 0   ;;  %v2326_v13 = vld [vmem:[%s4460_s8 + $0xb0] sm:$0xff] (!%p486_p9)  ;;  %vm3340_vm15 = vmpackc.low (!%p486_p9), %vm900_vm5, %vm900_vm5 }
  0x19   : > { %3099 = vmatprep.subr.bf16.mxu1 (!%p486_p9), %v3098_v30  ;;  %v3106_v29 = vpack.c.bf16 (!%p486_p9), %v897_v28, %v896_v27  ;;  %s4493_s18 = sld [smem:[#allocation15_spill]] (!%p486_p9)  ;;  %v1174_v27 = vld [vmem:[%s4458_s6 + $0x30] sm:$0xff] (!%p486_p9)  ;;  %v1175_v28 = vld [vmem:[%s4458_s6 + $0x38] sm:$0xff] (!%p486_p9)  ;;  %s4099_s30 = sand.u32 (!%p486_p9), 1, %s3540_s24  }
  0x1a   : > { %3101 = vmatpush3.bf16.msra.mxu1 (!%p486_p9), %v3098_v30  ;;  %v898_v30 = vld [vmem:[%s4456_s4 + $0x30] sm:$0xff] (!%p486_p9) }
  0x1b   : > { %3103 = vmatprep.subr.bf16.mxu1 (!%p486_p9), %v3102_v31 }
  0x1c   : > { %v596_v1 = vld [vmem:[%s4487_s2] sm:$0xff] (!%p486_p9)  ;;  %v597_v2 = vld [vmem:[%s4487_s2 + $0x8] sm:$0xff] (!%p486_p9)  ;;  %v598_v3 = vld [vmem:[%s4487_s2 + $0x10] sm:$0xff] (!%p486_p9) }
  0x1d   : > { %v3002_v4 = vpack.c.bf16 (!%p486_p9), %v597_v2, %v596_v1  ;;  %v599_v5 = vld [vmem:[%s4487_s2 + $0x18] sm:$0xff] (!%p486_p9)  ;;  %v600_v7 = vld [vmem:[%s4487_s2 + $0x20] sm:$0xff] (!%p486_p9)  ;;  %v601_v8 = vld [vmem:[%s4487_s2 + $0x28] sm:$0xff] (!%p486_p9) }
  0x1e   : > { %v3006_v6 = vpack.c.bf16 %v599_v5, %v598_v3  ;;  %s3717_s21 = scalar_select %p549_p10, %s3668_s13, 1  ;;  %v3010_v9 = vpack.c.bf16 %v601_v8, %v600_v7  ;;  %v602_v10 = vld [vmem:[%s4487_s2 + $0x30] sm:$0xff]  ;;  %v603_v11 = vld [vmem:[%s4487_s2 + $0x38] sm:$0xff]  ;;  %v604_v18 = vld [vmem:[%s4487_s2 + $0x40] sm:$0xff]  ;;  %3105 = vmatpush3.bf16.msra.mxu1 %v3102_v31 }
  0x1f   : > { %3003 = vmatprep.subr.bf16.mxu0 %v3002_v4  ;;  %v3014_v17 = vpack.c.bf16 %v603_v11, %v602_v10  ;;  %v605_v19 = vld [vmem:[%s4487_s2 + $0x48] sm:$0xff]  ;;  %v606_v21 = vld [vmem:[%s4487_s2 + $0x50] sm:$0xff]  ;;  %v607_v22 = vld [vmem:[%s4487_s2 + $0x58] sm:$0xff]  ;;  %3107 = vmatprep.subr.bf16.mxu1 %v3106_v29 }
  0x20   : > { %3005 = vmatpush3.bf16.msra.mxu0 %v3002_v4  ;;  %s4473_s22 = sshll.u32 %s3717_s21, 4  ;;  %v3018_v20 = vpack.c.bf16 %v605_v19, %v604_v18  ;;  %v3022_v23 = vpack.c.bf16 %v607_v22, %v606_v21  ;;  %v608_v24 = vld [vmem:[%s4487_s2 + $0x60] sm:$0xff]  ;;  %v609_v25 = vld [vmem:[%s4487_s2 + $0x68] sm:$0xff]  ;;  %v610_v33 = vld [vmem:[%s4487_s2 + $0x70] sm:$0xff]  ;;  %s4492_s20 = sshll.u32 %s3717_s21, 4 }
  0x21   : > { %3007 = vmatprep.subr.bf16.mxu0 %v3006_v6  ;;  %s558_s28 = scalar_lea.vmem %s4488_s1, %s4473_s22  ;;  %v3026_v32 = vpack.c.bf16 %v609_v25, %v608_v24  ;;  %v611_v34 = vld [vmem:[%s4487_s2 + $0x78] sm:$0xff]  ;;  %v2259_v36 = vld [vmem:[%s4487_s2 + $0x80] sm:$0xff]  ;;  %v2260_v37 = vld [vmem:[%s4487_s2 + $0x88] sm:$0xff]  ;;  %s553_s0 = scalar_lea.vmem %s4493_s18, %s4492_s20 }
  0x22   : > { %v3731_v12 = vld [vmem:[%s558_s28] sm:$0xff]  ;;  %v3738_v14 = vld [vmem:[%s558_s28 + $0x8] sm:$0xff]  ;;  %v3030_v35 = vpack.c.bf16 %v611_v34, %v610_v33  ;;  %v3034_v39 = vpack.c.bf16 %v2260_v37, %v2259_v36  ;;  %v2261_v40 = vld [vmem:[%s4487_s2 + $0x90] sm:$0xff]  ;;  %3109 = vmatpush3.bf16.msra.mxu1 %v3106_v29  ;;  %s2253_s1 = sshll.u32 %s4099_s30, 4  ;;  %s2394_s21 = sshll.u32 %s3668_s13, 8 }
  0x23   : > { %v566_v15 = vrot.slane %v3731_v12, 7  ;;  %v3743_v16 = vadd.f32 %v3738_v14, %v3731_v12  ;;  %v567_v38 = vrot.slane %v3738_v14, 7  ;;  %v2262_v41 = vld [vmem:[%s4487_s2 + $0x98] sm:$0xff]  ;;  %v2263_v44 = vld [vmem:[%s4487_s2 + $0xa0] sm:$0xff]  ;;  %v2264_v45 = vld [vmem:[%s4487_s2 + $0xa8] sm:$0xff]  ;;  %v573_v1 = vrot.slane %v3731_v12, 1  ;;  %s4336_s27 = scalar_lea.hbm %s4467_s15, %s2394_s21 }
  0x24   : > { %3009 = vmatpush3.bf16.msra.mxu0 %v3006_v6  ;;  %v3038_v43 = vpack.c.bf16 %v2262_v41, %v2261_v40  ;;  %v3042_v46 = vpack.c.bf16 %v2264_v45, %v2263_v44  ;;  %v2265_v47 = vld [vmem:[%s4487_s2 + $0xb0] sm:$0xff]  ;;  %v2266_v48 = vld [vmem:[%s4487_s2 + $0xb8] sm:$0xff]  ;;  %v2267_v50 = vld [vmem:[%s4487_s2 + $0xc0] sm:$0xff]  ;;  %v574_v2 = vrot.slane %v3738_v14, 1  ;;  %s4107_s22 = scalar_lea.vmem [#allocation7], %s2253_s1 }
  0x25   : > { %3011 = vmatprep.subr.bf16.mxu0 %v3010_v9  ;;  %2633 = vmatprep.mubr.msk.f32.mxu0 %vm3734_vm1, %v566_v15  ;;  %v568_v42 = vsel %vm565_vm0, %v566_v15, %v567_v38  ;;  %v3046_v49 = vpack.c.bf16 %v2266_v48, %v2265_v47  ;;  %v2268_v51 = vld [vmem:[%s4487_s2 + $0xc8] sm:$0xff]  ;;  %v2269_v53 = vld [vmem:[%s4487_s2 + $0xd0] sm:$0xff]  ;;  %v2270_v54 = vld [vmem:[%s4487_s2 + $0xd8] sm:$0xff]  ;;  %s2118_s28 = sshll.u32 %s4107_s22, 4  ;;  %s4327_s28 = int_to_ptr.vmem [resolvable:$true] %s2118_s28 }
  0x26   : > { %v3050_v52 = vpack.c.bf16 %v2268_v51, %v2267_v50  ;;  %v3054_v55 = vpack.c.bf16 %v2270_v54, %v2269_v53  ;;  %v2271_v56 = vld [vmem:[%s4487_s2 + $0xe0] sm:$0xff]  ;;  %v2272_v57 = vld [vmem:[%s4487_s2 + $0xe8] sm:$0xff]  ;;  %v2273_v59 = vld [vmem:[%s4487_s2 + $0xf0] sm:$0xff]  ;;  %v575_v6 = vsel %vm572_vm2, %v573_v1, %v574_v2 }
  0x27   : > { %v3058_v58 = vpack.c.bf16 %v2272_v57, %v2271_v56  ;;  %v2274_v60 = vld [vmem:[%s4487_s2 + $0xf8] sm:$0xff]  ;;  %v2277_v62 = vld [vmem:[%s4487_s2 + $0x100] sm:$0xff]  ;;  %v2278_v63 = vld [vmem:[%s4487_s2 + $0x108] sm:$0xff] }
  0x28   : > { %3013 = vmatpush3.bf16.msra.mxu0 %v3010_v9  ;;  %v3062_v61 = vpack.c.bf16 %v2274_v60, %v2273_v59  ;;  %v3066_v0 = vpack.c.bf16 %v2278_v63, %v2277_v62  ;;  %v2279_v3 = vld [vmem:[%s4487_s2 + $0x110] sm:$0xff]  ;;  %v2280_v4 = vld [vmem:[%s4487_s2 + $0x118] sm:$0xff]  ;;  %v2281_v7 = vld [vmem:[%s4487_s2 + $0x120] sm:$0xff] }
  0x29   : > { %3015 = vmatprep.subr.bf16.mxu0 %v3014_v17  ;;  %v3070_v5 = vpack.c.bf16 %v2280_v4, %v2279_v3  ;;  %v2282_v8 = vld [vmem:[%s4487_s2 + $0x128] sm:$0xff]  ;;  %v2283_v10 = vld [vmem:[%s4487_s2 + $0x130] sm:$0xff]  ;;  %v2284_v11 = vld [vmem:[%s4487_s2 + $0x138] sm:$0xff] }
  0x2a   : > { %v3074_v9 = vpack.c.bf16 %v2282_v8, %v2281_v7  ;;  %v2285_v15 = vld [vmem:[%s4487_s2 + $0x140] sm:$0xff]  ;;  %v2287_v18 = vld [vmem:[%s4487_s2 + $0x150] sm:$0xff]  ;;  %v2288_v19 = vld [vmem:[%s4487_s2 + $0x158] sm:$0xff] }
  0x2b   : > { %v2289_v21 = vld [vmem:[%s4487_s2 + $0x160] sm:$0xff]  ;;  %v2290_v22 = vld [vmem:[%s4487_s2 + $0x168] sm:$0xff]  ;;  %v2291_v24 = vld [vmem:[%s4487_s2 + $0x170] sm:$0xff] }
  0x2c   : > { %3017 = vmatpush3.bf16.msra.mxu0 %v3014_v17  ;;  %v2292_v25 = vld [vmem:[%s4487_s2 + $0x178] sm:$0xff]  ;;  %v2295_v33 = vld [vmem:[%s4456_s4 + $0x40] sm:$0xff]  ;;  %v2296_v34 = vld [vmem:[%s4456_s4 + $0x48] sm:$0xff] }
  0x2d   : > { %3019 = vmatprep.subr.bf16.mxu0 %v3018_v20  ;;  %v3094_v26 = vpack.c.bf16 %v2292_v25, %v2291_v24  ;;  %v899_v31 = vld [vmem:[%s4456_s4 + $0x38] sm:$0xff]  ;;  %v2294_v36 = vld [vmem:[%s4491_s3] ss:$0 sm:$0xff]  ;;  %v2297_v47 = vld [vmem:[%s4456_s4 + $0x50] sm:$0xff] }
  0x2e   : > { %v2298_v48 = vld [vmem:[%s4456_s4 + $0x58] sm:$0xff]  ;;  %v2300_v56 = vld [vmem:[%s4456_s4 + $0x68] sm:$0xff]  ;;  %v2311_v3 = vld [vmem:[%s4456_s4 + $0xa0] sm:$0xff] }
  0x2f   : > { %v3118_v53 = vpack.c.bf16 %v2298_v48, %v2297_v47  ;;  %v2302_v59 = vld [vmem:[%s4456_s4 + $0x78] sm:$0xff]  ;;  %v2308_v62 = vld [vmem:[%s4456_s4 + $0x88] sm:$0xff]  ;;  %v1193_v48 = vrot.slane %v3743_v16, 4 }
  0x30   : > { %3021 = vmatpush3.bf16.msra.mxu0 %v3018_v20  ;;  %v3086_v20 = vpack.c.bf16 %v2288_v19, %v2287_v18  ;;  %v2310_v1 = vld [vmem:[%s4456_s4 + $0x98] sm:$0xff]  ;;  %v2312_v4 = vld [vmem:[%s4456_s4 + $0xa8] sm:$0xff] }
  0x31   : > { %3023 = vmatprep.subr.bf16.mxu0 %v3022_v23  ;;  %v2314_v7 = vld [vmem:[%s4456_s4 + $0xb8] sm:$0xff]  ;;  %v1173_v24 = vld [vmem:[%s4458_s6 + $0x28] sm:$0xff] }
  0x32   : > { %v1171_v18 = vld [vmem:[%s4458_s6 + $0x18] sm:$0xff] }
  0x34   : > { %3025 = vmatpush3.bf16.msra.mxu0 %v3022_v23  ;;  %v3090_v23 = vpack.c.bf16 %v2290_v22, %v2289_v21  ;;  %v3552_v22 = vmov 0.0  }
  0x35   : > { %3027 = vmatprep.subr.bf16.mxu0 %v3026_v32 }
  0x38   : > { %3029 = vmatpush3.bf16.msra.mxu0 %v3026_v32  ;;  %v3110_v32 = vpack.c.bf16 %v899_v31, %v898_v30  ;;  %v3156_v30 = vpack.c.bf16 %v1175_v28, %v1174_v27  ;;  %v1176_v31 = vld [vmem:[%s4458_s6 + $0x40] sm:$0xff] }
  0x39   : > { %3031 = vmatprep.subr.bf16.mxu0 %v3030_v35 }
  0x3a   : > { %3111 = vmatprep.subr.bf16.mxu1 %v3110_v32 }
  0x3b   : > { %3113 = vmatpush3.bf16.msra.mxu1 %v3110_v32  ;;  %v1177_v32 = vld [vmem:[%s4458_s6 + $0x48] sm:$0xff] }
  0x3c   : > { %3033 = vmatpush3.bf16.msra.mxu0 %v3030_v35  ;;  %v3114_v35 = vpack.c.bf16 %v2296_v34, %v2295_v33  ;;  %v3159_v34 = vpack.c.bf16 %v1177_v32, %v1176_v31 }
  0x3d   : > { %3035 = vmatprep.subr.bf16.mxu0 %v3034_v39 }
  0x3e   : > { %3115 = vmatprep.subr.bf16.mxu1 %v3114_v35 }
  0x3f   : > { %2634 = vmatmul.mubr.f32.vlgmr.msra.gmra.mrb[0].mxu0 %v568_v42 }
  0x40   : > { %3037 = vmatpush3.bf16.msra.mxu0 %v3034_v39  ;;  %2668 = vmatprep.mubr.f32.mxu0 %v3731_v12  ;;  %v3078_v12 = vpack.c.bf16 %v2284_v11, %v2283_v10  ;;  %v1169_v10 = vld [vmem:[%s4458_s6 + $0x8] sm:$0xff]  ;;  %v3969_v11 = vld [vmem:[%s553_s0] sm:$0xff] }
  0x41   : > { %3039 = vmatprep.subr.bf16.mxu0 %v3038_v43 }
  0x44   : > { %3041 = vmatpush3.bf16.msra.mxu0 %v3038_v43 }
  0x45   : > { %3043 = vmatprep.subr.bf16.mxu0 %v3042_v46 }
  0x48   : > { %3045 = vmatpush3.bf16.msra.mxu0 %v3042_v46 }
  0x49   : > { %3047 = vmatprep.subr.bf16.mxu0 %v3046_v49 }
  0x4c   : > { %3049 = vmatpush3.bf16.msra.mxu0 %v3046_v49 }
  0x4d   : > { %3051 = vmatprep.subr.bf16.mxu0 %v3050_v52 }
  0x50   : > { %3053 = vmatpush3.bf16.msra.mxu0 %v3050_v52 }
  0x51   : > { %3055 = vmatprep.subr.bf16.mxu0 %v3054_v55 }
  0x54   : > { %3057 = vmatpush3.bf16.msra.mxu0 %v3054_v55  ;;  %v2299_v55 = vld [vmem:[%s4456_s4 + $0x60] sm:$0xff] }
  0x55   : > { %3059 = vmatprep.subr.bf16.mxu0 %v3058_v58  ;;  %v3122_v57 = vpack.c.bf16 %v2300_v56, %v2299_v55  ;;  %v1400_v55 = vld [vmem:[%s4460_s8 + $0x8] sm:$0xff] }
  0x58   : > { %3061 = vmatpush3.bf16.msra.mxu0 %v3058_v58  ;;  %v2301_v58 = vld [vmem:[%s4456_s4 + $0x70] sm:$0xff] }
  0x59   : > { %3063 = vmatprep.subr.bf16.mxu0 %v3062_v61  ;;  %v3126_v60 = vpack.c.bf16 %v2302_v59, %v2301_v58  ;;  %v1402_v58 = vld [vmem:[%s4460_s8 + $0x18] sm:$0xff] }
  0x5c   : > { %3065 = vmatpush3.bf16.msra.mxu0 %v3062_v61  ;;  %v2307_v61 = vld [vmem:[%s4456_s4 + $0x80] sm:$0xff] }
  0x5d   : > { %3067 = vmatprep.subr.bf16.mxu0 %v3066_v0  ;;  %v3130_v63 = vpack.c.bf16 %v2308_v62, %v2307_v61  ;;  %v1404_v61 = vld [vmem:[%s4460_s8 + $0x28] sm:$0xff] }
  0x5f   : > { %2669 = vmatmul.mubr.f32.vlgmr.msra.gmra.mrb[0].mxu0 %v3738_v14  ;;  %v2286_v14 = vld [vmem:[%s4487_s2 + $0x148] sm:$0xff] }
  0x60   : > { %3069 = vmatpush3.bf16.msra.mxu0 %v3066_v0  ;;  %2703 = vmatprep.mubr.f32.mxu0 %v575_v6  ;;  %v3082_v17 = vpack.c.bf16 %v2286_v14, %v2285_v15  ;;  %v2309_v0 = vld [vmem:[%s4456_s4 + $0x90] sm:$0xff]  ;;  %v3550_v14 = vmov 0.0|0.0  }
  0x61   : > { %3071 = vmatprep.subr.bf16.mxu0 %v3070_v5  ;;  %v2313_v6 = vld [vmem:[%s4456_s4 + $0xb0] sm:$0xff] }
  0x62   : > { %v3142_v8 = vpack.c.bf16 %v2314_v7, %v2313_v6  ;;  %v1410_v6 = vld [vmem:[%s4460_s8 + $0x58] sm:$0xff] }
  0x64   : > { %3073 = vmatpush3.bf16.msra.mxu0 %v3070_v5  ;;  %v3138_v5 = vpack.c.bf16 %v2312_v4, %v2311_v3  ;;  %v1408_v3 = vld [vmem:[%s4460_s8 + $0x48] sm:$0xff]  ;;  %v1409_v4 = vld [vmem:[%s4460_s8 + $0x50] sm:$0xff] }
  0x65   : > { %3075 = vmatprep.subr.bf16.mxu0 %v3074_v9  ;;  %v3214_v7 = vpack.c.bf16 %v1410_v6, %v1409_v4  ;;  %v2325_v4 = vld [vmem:[%s4460_s8 + $0xa8] sm:$0xff]  ;;  %v2327_v6 = vld [vmem:[%s4460_s8 + $0xb8] sm:$0xff] }
  0x68   : > { %3077 = vmatpush3.bf16.msra.mxu0 %v3074_v9  ;;  %v1168_v9 = vld [vmem:[%s4458_s6] sm:$0xff] }
  0x69   : > { %3079 = vmatprep.subr.bf16.mxu0 %v3078_v12  ;;  %v3147_v15 = vpack.c.bf16 %v1169_v10, %v1168_v9  ;;  %v1412_v9 = vld [vmem:[%s4460_s8 + $0x68] sm:$0xff] }
  0x6c   : > { %3081 = vmatpush3.bf16.msra.mxu0 %v3078_v12  ;;  %v3971_v12 = vld [vmem:[%s553_s0 + $0x8] sm:$0xff]  ;;  %s4143_s0 = scalar_lea.vmem [#allocation5], %s2253_s1  ;;  %s2070_s1 = sand.u32 1, %s3668_s13  }
  0x6d   : > { %3083 = vmatprep.subr.bf16.mxu0 %v3082_v17  ;;  %s2102_s23 = sshll.u32 %s4143_s0, 4  ;;  %s4341_s18 = scalar_lea.sflag [#allocation6], %s2070_s1  ;;  %s4339_s23 = int_to_ptr.vmem [resolvable:$true] %s2102_s23 }
  0x6e   : > { %s3426_s25 = scalar_lea.vmem %s4339_s23, 256 }
  0x6f   : > { %p3427_p11 = scmp.ne.s32.totalorder %s4339_s23, %s3426_s25 }
  0x70   : > { %3085 = vmatpush3.bf16.msra.mxu0 %v3082_v17  ;;  %v1170_v17 = vld [vmem:[%s4458_s6 + $0x10] sm:$0xff] }
  0x71   : > { %3087 = vmatprep.subr.bf16.mxu0 %v3086_v20  ;;  %v3150_v21 = vpack.c.bf16 %v1171_v18, %v1170_v17  ;;  %v1414_v17 = vld [vmem:[%s4460_s8 + $0x78] sm:$0xff]  ;;  %p3428_p12 = pnand %p3427_p11, %p3687_p5 }
  0x73   : > { %p3429_p13 = pneg %p3428_p12 }
  0x74   : > { %3089 = vmatpush3.bf16.msra.mxu0 %v3086_v20  ;;  %v1184_v20 = vadd.f32 %v3971_v12, %v3969_v11 }
  0x75   : > { %3091 = vmatprep.subr.bf16.mxu0 %v3090_v23 }
  0x76   : > { %v1185_v25 = vrot.slane %v1184_v20, 4 }
  0x78   : > { %3093 = vmatpush3.bf16.msra.mxu0 %v3090_v23  ;;  %v1172_v23 = vld [vmem:[%s4458_s6 + $0x20] sm:$0xff]  ;;  %v1186_v29 = vadd.f32 %v1185_v25, %v1184_v20  ;;  %v2321_v20 = vld [vmem:[%s4460_s8 + $0x88] sm:$0xff] }
  0x79   : > { %3095 = vmatprep.subr.bf16.mxu0 %v3094_v26 }
  0x7a   : > { %v1187_v33 = vrot.slane %v1186_v29, 2 }
  0x7c   : > { %3097 = vmatpush3.bf16.msra.mxu0 %v3094_v26  ;;  %v3153_v26 = vpack.c.bf16 %v1173_v24, %v1172_v23  ;;  %v2317_v23 = vld [vmem:[%s4457_s5] ss:$0 sm:$0xff] }
  0x7f   : > { %2704 = vmatmul.mubr.msk.f32.vlgmr.msra.gmra.mrb[0].mxu0 %vm572_vm2, %v574_v2  ;;  %v3134_v2 = vpack.c.bf16 %v2310_v1, %v2309_v0  ;;  %v1406_v0 = vld [vmem:[%s4460_s8 + $0x38] sm:$0xff] }
 0x152   : > { %v2705_v37 = vpop.f32.mrb[0].mxu0 }
 0x153   : > { %v864_v38 = vadd.f32 %v2705_v37, %v2294_v36  ;;  %v845_v39 = vpop.f32.mrb[1].mxu0  ;;  %v1188_v37 = vadd.f32 %v1187_v33, %v1186_v29 }
 0x154   : > { %v863_v40 = vadd.f32 %v2294_v36, %v845_v39  ;;  %v1179_v36 = vld [vmem:[%s4458_s6 + $0x58] sm:$0xff]  ;;  %v1180_v39 = vld [vmem:[%s4458_s6 + $0x60] sm:$0xff] }
 0x155   : > { %vm866_vm3 = vcmp.gt.f32.partialorder %v864_v38, 0.0  ;;  %v868_v41 = vmul.f32 0.2, %v864_v38 }
 0x156   : > { %vm865_vm4 = vcmp.gt.f32.partialorder %v863_v40, 0.0  ;;  %v867_v42 = vmul.f32 0.2, %v863_v40 }
 0x157   : > { %v870_v43 = vsel %vm866_vm3, %v864_v38, %v868_v41  ;;  %v1189_v41 = vrot.slane %v1188_v37, 1 }
 0x158   : > { %v874_v44 = vrot.slane %v870_v43, 7  ;;  %v879_v45 = vrot.slane %v870_v43, 1  ;;  %v869_v46 = vsel %vm865_vm4, %v863_v40, %v867_v42  ;;  %v1181_v40 = vld [vmem:[%s4458_s6 + $0x68] sm:$0xff] }
 0x159   : > { %v873_v49 = vrot.slane %v869_v46, 7  ;;  %v878_v50 = vrot.slane %v869_v46, 1  ;;  %v3165_v42 = vpack.c.bf16 %v1181_v40, %v1180_v39  ;;  %v1200_v40 = vld [vmem:[%s4459_s7] sm:$0x1] }
 0x15a   : > { %v882_v19 = vsel %vm572_vm2, %v879_v45, 0.0 }
 0x15b   : > { %v877_v51 = vsel %vm565_vm0, 0.0, %v873_v49  ;;  %v875_v52 = vsel %vm565_vm0, %v873_v49, %v874_v44  ;;  %v880_v54 = vsel %vm572_vm2, %v878_v50, %v879_v45  ;;  %v1183_v44 = vld [vmem:[%s4458_s6 + $0x78] sm:$0xff]  ;;  %v1190_v45 = vadd.f32 %v1189_v41, %v1188_v37 }
 0x15c   : > { %2722 = vmatprep.mubr.msk.f32.mxu1 %vm900_vm5, %v877_v51  ;;  %v1194_v49 = vadd.f32 %v1193_v48, %v3743_v16 }
 0x15d   : > { %2723 = vmatmul.mubr.msk.f32.vlgmr.msra.gmra.mrb[0].mxu1 %vm900_vm5, %v875_v52  ;;  %v1191_v47 = vmul.f32 0.0625, %v1190_v45 }
 0x15e   : > { %3117 = vmatpush3.bf16.msra.mxu1 %v3114_v35  ;;  %2741 = vmatprep.mubr.msk.f32.mxu1 %vm900_vm5, %v869_v46  ;;  %v1178_v35 = vld [vmem:[%s4458_s6 + $0x50] sm:$0xff]  ;;  %v1195_v50 = vrot.slane %v1194_v49, 2 }
 0x15f   : > { %3119 = vmatprep.subr.bf16.mxu1 %v3118_v53  ;;  %v3162_v38 = vpack.c.bf16 %v1179_v36, %v1178_v35  ;;  %v1696_v35 = vld [vmem:[%s4462_s10 + $0x8] sm:$0xff]  ;;  %v1697_v36 = vld [vmem:[%s4462_s10 + $0x10] sm:$0xff] }
 0x160   : > { %v1196_v51 = vadd.f32 %v1195_v50, %v1194_v49 }
 0x162   : > { %3121 = vmatpush3.bf16.msra.mxu1 %v3118_v53  ;;  %v1197_v52 = vrot.slane %v1196_v51, 1 }
 0x163   : > { %3123 = vmatprep.subr.bf16.mxu1 %v3122_v57 }
 0x164   : > { %v1198_v53 = vadd.f32 %v1197_v52, %v1196_v51 }
 0x166   : > { %3125 = vmatpush3.bf16.msra.mxu1 %v3122_v57  ;;  %v1199_v16 = vmul.f32 0.0625, %v1198_v53  ;;  %v1401_v57 = vld [vmem:[%s4460_s8 + $0x10] sm:$0xff] }
 0x167   : > { %3127 = vmatprep.subr.bf16.mxu1 %v3126_v60  ;;  %v3198_v59 = vpack.c.bf16 %v1402_v58, %v1401_v57 }
 0x16a   : > { %3129 = vmatpush3.bf16.msra.mxu1 %v3126_v60  ;;  %v1403_v60 = vld [vmem:[%s4460_s8 + $0x20] sm:$0xff] }
 0x16b   : > { %3131 = vmatprep.subr.bf16.mxu1 %v3130_v63  ;;  %v3202_v62 = vpack.c.bf16 %v1404_v61, %v1403_v60 }
 0x16d   : > { %2742 = vmatmul.mubr.msk.f32.vlgmr.msra.gmra.mrb[0].mxu1 %vm900_vm5, %v870_v43  ;;  %v1182_v43 = vld [vmem:[%s4458_s6 + $0x70] sm:$0xff] }
 0x16e   : > { %3133 = vmatpush3.bf16.msra.mxu1 %v3130_v63  ;;  %2760 = vmatprep.mubr.msk.f32.mxu1 %vm900_vm5, %v880_v54  ;;  %v3168_v46 = vpack.c.bf16 %v1183_v44, %v1182_v43  ;;  %v1399_v54 = vld [vmem:[%s4460_s8] sm:$0xff]  ;;  %v1405_v63 = vld [vmem:[%s4460_s8 + $0x30] sm:$0xff] }
 0x16f   : > { %3135 = vmatprep.subr.bf16.mxu1 %v3134_v2  ;;  %v3194_v56 = vpack.c.bf16 %v1400_v55, %v1399_v54  ;;  %v3206_v1 = vpack.c.bf16 %v1406_v0, %v1405_v63  ;;  %v1360_v54 = vlaneseq  ;;  %v2322_v63 = vld [vmem:[%s4460_s8 + $0x90] sm:$0xff]  ;;  %v2323_v0 = vld [vmem:[%s4460_s8 + $0x98] sm:$0xff] }
 0x171   : > { %3195 = vmatprep.subr.bf16.mxu0 %v3194_v56  ;;  %v4126_v55 = vshrl.u32 %v1360_v54, 7 }
 0x172   : > { %3137 = vmatpush3.bf16.msra.mxu1 %v3134_v2  ;;  %3197 = vmatpush3.bf16.msra.mxu0 %v3194_v56  ;;  %v1407_v2 = vld [vmem:[%s4460_s8 + $0x40] sm:$0xff] }
 0x173   : > { %3139 = vmatprep.subr.bf16.mxu1 %v3138_v5  ;;  %3199 = vmatprep.subr.bf16.mxu0 %v3198_v59  ;;  %v1362_v57 = vsub.s32 0, %v4126_v55 }
 0x176   : > { %3141 = vmatpush3.bf16.msra.mxu1 %v3138_v5  ;;  %3201 = vmatpush3.bf16.msra.mxu0 %v3198_v59  ;;  %v3210_v5 = vpack.c.bf16 %v1408_v3, %v1407_v2  ;;  %v2324_v3 = vld [vmem:[%s4460_s8 + $0xa0] sm:$0xff] }
 0x177   : > { %3143 = vmatprep.subr.bf16.mxu1 %v3142_v8  ;;  %3203 = vmatprep.subr.bf16.mxu0 %v3202_v62 }
 0x17a   : > { %3145 = vmatpush3.bf16.msra.mxu1 %v3142_v8  ;;  %3205 = vmatpush3.bf16.msra.mxu0 %v3202_v62  ;;  %v1411_v8 = vld [vmem:[%s4460_s8 + $0x60] sm:$0xff] }
 0x17b   : > { %3146 = vmatprep.subr.bf16.mxu1 %v3550_v14  ;;  %3207 = vmatprep.subr.bf16.mxu0 %v3206_v1  ;;  %v3218_v10 = vpack.c.bf16 %v1412_v9, %v1411_v8  ;;  %v2328_v8 = vld [vmem:[%s4460_s8 + $0xc0] sm:$0xff]  ;;  %v2329_v9 = vld [vmem:[%s4460_s8 + $0xc8] sm:$0xff] }
 0x17d   : > { %2761 = vmatmul.mubr.msk.f32.vlgmr.msra.gmra.mrb[0].mxu1 %vm900_vm5, %v882_v19  ;;  %v2320_v19 = vld [vmem:[%s4460_s8 + $0x80] sm:$0xff] }
 0x17e   : > { %3148 = vmatpush3.bf16.msra.mxu1 %v3147_v15  ;;  %2795 = vmatprep.mubr.msk.f32.mxu1 %vm3551_vm6, %v3552_v22 }
 0x17f   : > { %3149 = vmatprep.subr.bf16.mxu1 %v3550_v14  ;;  %3209 = vmatpush3.bf16.msra.mxu0 %v3206_v1 }
 0x180   : > { %3211 = vmatprep.subr.bf16.mxu0 %v3210_v5 }
 0x182   : > { %3151 = vmatpush3.bf16.msra.mxu1 %v3150_v21 }
 0x183   : > { %3152 = vmatprep.subr.bf16.mxu1 %v3550_v14  ;;  %3213 = vmatpush3.bf16.msra.mxu0 %v3210_v5  ;;  %v3234_v5 = vpack.c.bf16 %v2325_v4, %v2324_v3 }
 0x184   : > { %3215 = vmatprep.subr.bf16.mxu0 %v3214_v7 }
 0x186   : > { %3154 = vmatpush3.bf16.msra.mxu1 %v3153_v26 }
 0x187   : > { %3155 = vmatprep.subr.bf16.mxu1 %v3550_v14  ;;  %3217 = vmatpush3.bf16.msra.mxu0 %v3214_v7  ;;  %v3238_v7 = vpack.c.bf16 %v2327_v6, %v2326_v13 }
 0x188   : > { %3219 = vmatprep.subr.bf16.mxu0 %v3218_v10 }
 0x18a   : > { %3157 = vmatpush3.bf16.msra.mxu1 %v3156_v30 }
 0x18b   : > { %3158 = vmatprep.subr.bf16.mxu1 %v3550_v14  ;;  %3221 = vmatpush3.bf16.msra.mxu0 %v3218_v10  ;;  %v3242_v10 = vpack.c.bf16 %v2329_v9, %v2328_v8  ;;  %v2359_v8 = vld [vmem:[%s4462_s10 + $0x58] sm:$0xff] }
 0x18e   : > { %3160 = vmatpush3.bf16.msra.mxu1 %v3159_v34 }
 0x18f   : > { %3161 = vmatprep.subr.bf16.mxu1 %v3550_v14 }
 0x192   : > { %3163 = vmatpush3.bf16.msra.mxu1 %v3162_v38 }
 0x193   : > { %3164 = vmatprep.subr.bf16.mxu1 %v3550_v14 }
 0x196   : > { %3166 = vmatpush3.bf16.msra.mxu1 %v3165_v42 }
 0x197   : > { %3167 = vmatprep.subr.bf16.mxu1 %v3550_v14 }
 0x19a   : > { %3169 = vmatpush3.bf16.msra.mxu1 %v3168_v46 }
 0x19b   : > { %3170 = vmatprep.subr.bf16.mxu1 %v3550_v14 }
 0x19d   : > { %2796 = vmatmul.mubr.f32.vlgmr.msra.gmra.mrb[2].mxu1 %v1191_v47 }
 0x19e   : > { %3172 = vmatpush3.bf16.msra.mxu1 %v3147_v15  ;;  %2830 = vmatprep.mubr.msk.f32.mxu1 %vm3551_vm6, %v3552_v22  ;;  %v1413_v15 = vld [vmem:[%s4460_s8 + $0x70] sm:$0xff] }
 0x19f   : > { %3173 = vmatprep.subr.bf16.mxu1 %v3550_v14  ;;  %v3222_v18 = vpack.c.bf16 %v1414_v17, %v1413_v15  ;;  %v2330_v15 = vld [vmem:[%s4460_s8 + $0xd0] sm:$0xff]  ;;  %v2331_v17 = vld [vmem:[%s4460_s8 + $0xd8] sm:$0xff] }
 0x1a1   : > { %3223 = vmatprep.subr.bf16.mxu0 %v3222_v18 }
 0x1a2   : > { %3175 = vmatpush3.bf16.msra.mxu1 %v3150_v21  ;;  %3225 = vmatpush3.bf16.msra.mxu0 %v3222_v18  ;;  %v4095_v21 = vpack.c.bf16 %v2321_v20, %v2320_v19  ;;  %v3246_v18 = vpack.c.bf16 %v2331_v17, %v2330_v15  ;;  %v2332_v19 = vld [vmem:[%s4460_s8 + $0xe0] sm:$0xff]  ;;  %v2333_v20 = vld [vmem:[%s4460_s8 + $0xe8] sm:$0xff] }
 0x1a3   : > { %3176 = vmatprep.subr.bf16.mxu1 %v3550_v14 }
 0x1a4   : > { %3227 = vmatprep.subr.bf16.mxu0 %v4095_v21 }
 0x1a6   : > { %3178 = vmatpush3.bf16.msra.mxu1 %v3153_v26 }
 0x1a7   : > { %3179 = vmatprep.subr.bf16.mxu1 %v3550_v14 }
 0x1aa   : > { %3181 = vmatpush3.bf16.msra.mxu1 %v3156_v30 }
 0x1ab   : > { %3182 = vmatprep.subr.bf16.mxu1 %v3550_v14 }
 0x1ae   : > { %3184 = vmatpush3.bf16.msra.mxu1 %v3159_v34  ;;  %v1695_v34 = vld [vmem:[%s4462_s10] sm:$0xff] }
 0x1af   : > { %3185 = vmatprep.subr.bf16.mxu1 %v3550_v14  ;;  %v3290_v37 = vpack.c.bf16 %v1696_v35, %v1695_v34  ;;  %v2342_v34 = vld [vmem:[%s4460_s8 + $0x120] sm:$0xff]  ;;  %v2343_v35 = vld [vmem:[%s4460_s8 + $0x128] sm:$0xff] }
 0x1b2   : > { %3187 = vmatpush3.bf16.msra.mxu1 %v3162_v38  ;;  %v1698_v38 = vld [vmem:[%s4462_s10 + $0x18] sm:$0xff] }
 0x1b3   : > { %3188 = vmatprep.subr.bf16.mxu1 %v3550_v14  ;;  %v3294_v39 = vpack.c.bf16 %v1698_v38, %v1697_v36  ;;  %v2344_v38 = vld [vmem:[%s4460_s8 + $0x130] sm:$0xff] }
 0x1b6   : > { %3190 = vmatpush3.bf16.msra.mxu1 %v3165_v42 }
 0x1b7   : > { %3191 = vmatprep.subr.bf16.mxu1 %v3550_v14 }
 0x1ba   : > { %3193 = vmatpush3.bf16.msra.mxu1 %v3168_v46 }
 0x1bb   : > { %3291 = vmatprep.subr.bf16.mxu1 %v3290_v37 }
 0x1bd   : > { %2831 = vmatmul.mubr.f32.vlgmr.msra.gmra.mrb[4].mxu1 %v1199_v16 }
 0x1be   : > { %3293 = vmatpush3.bf16.msra.mxu1 %v3290_v37  ;;  %v3266_v37 = vpack.c.bf16 %v2343_v35, %v2342_v34  ;;  %v2373_v34 = vld [vmem:[%s4462_s10 + $0xa8] sm:$0xff] }
 0x1bf   : > { %3295 = vmatprep.subr.bf16.mxu1 %v3294_v39 }
 0x1c2   : > { %3297 = vmatpush3.bf16.msra.mxu1 %v3294_v39  ;;  %v2345_v39 = vld [vmem:[%s4460_s8 + $0x138] sm:$0xff] }
 0x250   : > { %v2762_v24 = vpop.f32.mrb[0].mxu1 }
 0x251   : > { %v1159_v25 = vadd.f32 %v2762_v24, %v2317_v23  ;;  %v1140_v26 = vpop.f32.mrb[1].mxu1  ;;  %v2335_v24 = vld [vmem:[%s4460_s8 + $0xf8] sm:$0xff] }
 0x252   : > { %v1158_v27 = vadd.f32 %v2317_v23, %v1140_v26  ;;  %v2334_v23 = vld [vmem:[%s4460_s8 + $0xf0] sm:$0xff]  ;;  %v2338_v26 = vld [vmem:[%s4460_s8 + $0x100] sm:$0xff] }
 0x253   : > { %vm1161_vm7 = vcmp.gt.f32.partialorder %v1159_v25, 0.0  ;;  %v1163_v28 = vmul.f32 0.2, %v1159_v25 }
 0x254   : > { %vm1160_vm8 = vcmp.gt.f32.partialorder %v1158_v27, 0.0  ;;  %v1162_v29 = vmul.f32 0.2, %v1158_v27 }
 0x255   : > { %v1165_v30 = vsel %vm1161_vm7, %v1159_v25, %v1163_v28  ;;  %v3254_v25 = vpack.c.bf16 %v2335_v24, %v2334_v23  ;;  %v2362_v24 = vld [vmem:[%s4462_s10 + $0x70] sm:$0xff] }
 0x256   : > { %1167 = vst [vmem:[%s4107_s22 + $0x8] sm:$0xff] %v1165_v30  ;;  %v1164_v31 = vsel %vm1160_vm8, %v1158_v27, %v1162_v29  ;;  %v2339_v27 = vld [vmem:[%s4460_s8 + $0x108] sm:$0xff]  ;;  %v2340_v29 = vld [vmem:[%s4460_s8 + $0x110] sm:$0xff]  ;;  %v2341_v30 = vld [vmem:[%s4460_s8 + $0x118] sm:$0xff] }
 0x257   : > { %1166 = vst [vmem:[%s4107_s22] sm:$0xff] %v1164_v31  ;;  %v3258_v28 = vpack.c.bf16 %v2339_v27, %v2338_v26  ;;  %v2368_v27 = vld [vmem:[%s4462_s10 + $0x80] sm:$0xff]  ;;  %s3554_s22 = smov [#allocation5]  }
 0x258   : > { %s3430_s29 = sshll.u32 %s3554_s22, 4  ;;  %s3431_s29 = int_to_ptr.vmem [resolvable:$false] %s3430_s29 }
 0x259   : > { %s3432_s2 = scalar_lea.vmem %s3431_s29, 512  ;;  %p3433_p0 = scmp.lt.s32.totalorder %s4339_s23, %s3431_s29 }
 0x25a   : > { %p3434_p1 = scmp.lt.s32.totalorder %s3432_s2, %s3426_s25 }
 0x25c   : > { %p3435_p2 = por %p3434_p1, %p3433_p0 }
 0x25e   : > { %p3436_p3 = pnand %p3435_p2, %p3429_p13 }
 0x270   : > { %v1267_v32 = vpop.f32.mrb[2].mxu1 }
 0x271   : > { %v2797_v33 = vpop.f32.mrb[3].mxu1  ;;  %v1268_v41 = vadd.f32 %v1267_v32, %v1200_v40 }
 0x272   : > { %v3262_v33 = vpack.c.bf16 %v2341_v30, %v2340_v29  ;;  %v2370_v30 = vld [vmem:[%s4462_s10 + $0x90] sm:$0xff] }
 0x273   : > { %v1272_v42 = vmul.f32 0.2, %v1268_v41  ;;  %vm1271_vm9 = vcmp.gt.f32.partialorder %v1268_v41, 0.0 }
 0x275   : > { %v1273_v43 = vsel %vm1271_vm9, %v1268_v41, %v1272_v42  ;;  %v2346_v41 = vld [vmem:[%s4460_s8 + $0x140] sm:$0xff]  ;;  %v2347_v42 = vld [vmem:[%s4460_s8 + $0x148] sm:$0xff] }
 0x276   : > { %v2318_v44 = vmul.f32 -1.442695, %v1273_v43  ;;  %v3274_v43 = vpack.c.bf16 %v2347_v42, %v2346_v41  ;;  %v3553_v41 = vmov 0   ;;  %v2378_v42 = vld [vmem:[%s4463_s11] ss:$0 sm:$0xff] }
 0x277   : > { %3413 = vset.pattern.permute.xlu0 %v3553_v41 }
 0x278   : > { %3414 = vpow2.f32 %v2318_v44  ;;  %v2348_v44 = vld [vmem:[%s4460_s8 + $0x150] sm:$0xff] }
 0x282   : > { %v3415_v51 = vpop.eup %3414 }
 0x283   : > { %v1350_v52 = vadd.f32 1.0, %v3415_v51  ;;  %v2353_v51 = vld [vmem:[%s4460_s8 + $0x178] sm:$0xff] }
 0x290   : > { %v1340_v45 = vpop.f32.mrb[4].mxu1 }
 0x291   : > { %v1341_v46 = vadd.f32 %v1340_v45, %v1200_v40  ;;  %v2832_v47 = vpop.f32.mrb[5].mxu1  ;;  %v3270_v40 = vpack.c.bf16 %v2345_v39, %v2344_v38  ;;  %v2349_v45 = vld [vmem:[%s4460_s8 + $0x158] sm:$0xff] }
 0x292   : > { %v2350_v47 = vld [vmem:[%s4460_s8 + $0x160] sm:$0xff] }
 0x293   : > { %vm1344_vm10 = vcmp.gt.f32.partialorder %v1341_v46, 0.0  ;;  %v1345_v48 = vmul.f32 0.2, %v1341_v46 }
 0x295   : > { %v1346_v49 = vsel %vm1344_vm10, %v1341_v46, %v1345_v48  ;;  %v3278_v46 = vpack.c.bf16 %v2349_v45, %v2348_v44  ;;  %v2351_v48 = vld [vmem:[%s4460_s8 + $0x168] sm:$0xff] }
 0x296   : > { %v2319_v50 = vmul.f32 -1.442695, %v1346_v49  ;;  %v3282_v49 = vpack.c.bf16 %v2351_v48, %v2350_v47 }
 0x298   : > { %3416 = vpow2.f32 %v2319_v50  ;;  %v2352_v50 = vld [vmem:[%s4460_s8 + $0x170] sm:$0xff] }
 0x299   : > { %3418 = vrcp.f32 %v1350_v52  ;;  %v3286_v52 = vpack.c.bf16 %v2353_v51, %v2352_v50  ;;  %v1968_v50 = vld [vmem:[%s4464_s12] sm:$0x1] }
 0x2a2   : > { %v3417_v53 = vpop.eup %3416 }
 0x2a3   : > { %v1356_v16 = vadd.f32 1.0, %v3417_v53  ;;  %v3419_v56 = vpop.eup %3418  ;;  %v1699_v53 = vld [vmem:[%s4462_s10 + $0x20] sm:$0xff] }
 0x2a5   : > { %3420 = vrcp.f32 %v1356_v16  ;;  %v1700_v16 = vld [vmem:[%s4462_s10 + $0x28] sm:$0xff] }
 0x2a6   : > { %v3298_v54 = vpack.c.bf16 %v1700_v16, %v1699_v53 }
 0x2a8   : > { %3299 = vmatprep.subr.bf16.mxu1 %v3298_v54 }
 0x2a9   : > { %3301 = vmatpush3.bf16.msra.mxu1 %v3298_v54 }
 0x2af   : > { %v3421_v58 = vpop.eup %3420 }
 0x2b0   : > { %v1359_v59 = vmul.f32 %v3421_v58, %v3419_v56  ;;  %v1701_v56 = vld [vmem:[%s4462_s10 + $0x30] sm:$0xff]  ;;  %v1702_v58 = vld [vmem:[%s4462_s10 + $0x38] sm:$0xff] }
 0x2b2   : > { %v1363_v60 = vrot.slane %v1359_v59, %v1362_v57  ;;  %v3302_v59 = vpack.c.bf16 %v1702_v58, %v1701_v56 }
 0x2b4   : > { %v1364_v61 = vmul.f32 %v1363_v60, %v3969_v11  ;;  %v4133_v62 = vmul.f32 %v1363_v60, %v3971_v12  ;;  %v3230_v12 = vpack.c.bf16 %v2323_v0, %v2322_v63  ;;  %3303 = vmatprep.subr.bf16.mxu1 %v3302_v59  ;;  %v2356_v60 = vld [vmem:[%s4462_s10 + $0x40] sm:$0xff] }
 0x2b5   : > { %3305 = vmatpush3.bf16.msra.mxu1 %v3302_v59  ;;  %v2355_v63 = vld [vmem:[%s4461_s9] ss:$0 sm:$0xff] }
 0x2b6   : > { %v1370_v1 = vrot.slane %v1364_v61, 7  ;;  %1366 = vst [vmem:[%s4143_s0] sm:$0xff] %v1364_v61  ;;  %v1371_v11 = vrot.slane %v4133_v62, 7  ;;  %1367 = vst [vmem:[%s4143_s0 + $0x8] sm:$0xff] %v4133_v62  ;;  %v1376_v31 = vrot.slane %v1364_v61, 1  ;;  %v1377_v32 = vrot.slane %v4133_v62, 1 }
 0x2b8   : > { %2865 = vmatprep.mubr.msk.f32.mxu0 %vm3734_vm1, %v1370_v1  ;;  %v1372_v2 = vsel %vm565_vm0, %v1370_v1, %v1371_v11  ;;  %v1378_v36 = vsel %vm572_vm2, %v1376_v31, %v1377_v32  ;;  %v2371_v31 = vld [vmem:[%s4462_s10 + $0x98] sm:$0xff] }
 0x2b9   : > { %2866 = vmatmul.mubr.f32.vlgmr.msra.gmra.mrb[2].mxu0 %v1372_v2 }
 0x2ba   : > { %3229 = vmatpush3.bf16.msra.mxu0 %v4095_v21  ;;  %2900 = vmatprep.mubr.f32.mxu0 %v1364_v61  ;;  %v3250_v21 = vpack.c.bf16 %v2333_v20, %v2332_v19  ;;  %v2357_v61 = vld [vmem:[%s4462_s10 + $0x48] sm:$0xff]  ;;  %v2360_v20 = vld [vmem:[%s4462_s10 + $0x60] sm:$0xff] }
 0x2bb   : > { %3231 = vmatprep.subr.bf16.mxu0 %v3230_v12 }
 0x2be   : > { %3233 = vmatpush3.bf16.msra.mxu0 %v3230_v12 }
 0x2bf   : > { %3235 = vmatprep.subr.bf16.mxu0 %v3234_v5 }
 0x2c2   : > { %3237 = vmatpush3.bf16.msra.mxu0 %v3234_v5 }
 0x2c3   : > { %3239 = vmatprep.subr.bf16.mxu0 %v3238_v7 }
 0x2c6   : > { %3241 = vmatpush3.bf16.msra.mxu0 %v3238_v7  ;;  %v2358_v7 = vld [vmem:[%s4462_s10 + $0x50] sm:$0xff] }
 0x2c7   : > { %3243 = vmatprep.subr.bf16.mxu0 %v3242_v10 }
 0x2ca   : > { %3245 = vmatpush3.bf16.msra.mxu0 %v3242_v10 }
 0x2cb   : > { %3247 = vmatprep.subr.bf16.mxu0 %v3246_v18 }
 0x2ce   : > { %3249 = vmatpush3.bf16.msra.mxu0 %v3246_v18  ;;  %v3310_v18 = vpack.c.bf16 %v2359_v8, %v2358_v7 }
 0x2cf   : > { %3251 = vmatprep.subr.bf16.mxu0 %v3250_v21 }
 0x2d2   : > { %3253 = vmatpush3.bf16.msra.mxu0 %v3250_v21  ;;  %v2361_v21 = vld [vmem:[%s4462_s10 + $0x68] sm:$0xff] }
 0x2d3   : > { %3255 = vmatprep.subr.bf16.mxu0 %v3254_v25  ;;  %v3314_v23 = vpack.c.bf16 %v2361_v21, %v2360_v20 }
 0x2d6   : > { %3257 = vmatpush3.bf16.msra.mxu0 %v3254_v25  ;;  %v2363_v25 = vld [vmem:[%s4462_s10 + $0x78] sm:$0xff] }
 0x2d7   : > { %3259 = vmatprep.subr.bf16.mxu0 %v3258_v28  ;;  %v3318_v26 = vpack.c.bf16 %v2363_v25, %v2362_v24 }
 0x2d9   : > { %2901 = vmatmul.mubr.f32.vlgmr.msra.gmra.mrb[2].mxu0 %v4133_v62  ;;  %v3306_v62 = vpack.c.bf16 %v2357_v61, %v2356_v60 }
 0x2da   : > { %3261 = vmatpush3.bf16.msra.mxu0 %v3258_v28  ;;  %2935 = vmatprep.mubr.f32.mxu0 %v1378_v36  ;;  %v2369_v28 = vld [vmem:[%s4462_s10 + $0x88] sm:$0xff]  ;;  %v2374_v36 = vld [vmem:[%s4462_s10 + $0xb0] sm:$0xff] }
 0x2db   : > { %3263 = vmatprep.subr.bf16.mxu0 %v3262_v33  ;;  %3307 = vmatprep.subr.bf16.mxu1 %v3306_v62  ;;  %v3322_v29 = vpack.c.bf16 %v2369_v28, %v2368_v27 }
 0x2de   : > { %3265 = vmatpush3.bf16.msra.mxu0 %v3262_v33  ;;  %v2372_v33 = vld [vmem:[%s4462_s10 + $0xa0] sm:$0xff] }
 0x2df   : > { %3267 = vmatprep.subr.bf16.mxu0 %v3266_v37  ;;  %v3330_v35 = vpack.c.bf16 %v2373_v34, %v2372_v33 }
 0x2e2   : > { %3269 = vmatpush3.bf16.msra.mxu0 %v3266_v37  ;;  %v2375_v37 = vld [vmem:[%s4462_s10 + $0xb8] sm:$0xff] }
 0x2e3   : > { %3271 = vmatprep.subr.bf16.mxu0 %v3270_v40  ;;  %v3334_v38 = vpack.c.bf16 %v2375_v37, %v2374_v36 }
 0x2e6   : > { %3273 = vmatpush3.bf16.msra.mxu0 %v3270_v40  ;;  %v1969_v40 = vld [vmem:[#allocation2] sm:$0x1] }
 0x2e7   : > { %3275 = vmatprep.subr.bf16.mxu0 %v3274_v43  ;;  %1972 = vperm.xlu0 %3413, %v1969_v40  }
 0x2ea   : > { %3277 = vmatpush3.bf16.msra.mxu0 %v3274_v43 }
 0x2eb   : > { %3279 = vmatprep.subr.bf16.mxu0 %v3278_v46 }
 0x2ee   : > { %3281 = vmatpush3.bf16.msra.mxu0 %v3278_v46 }
 0x2ef   : > { %3283 = vmatprep.subr.bf16.mxu0 %v3282_v49 }
 0x2f2   : > { %3285 = vmatpush3.bf16.msra.mxu0 %v3282_v49 }
 0x2f3   : > { %3287 = vmatprep.subr.bf16.mxu0 %v3286_v52 }
 0x2f6   : > { %3289 = vmatpush3.bf16.msra.mxu0 %v3286_v52 }
 0x2f9   : > { %2936 = vmatmul.mubr.msk.f32.vlgmr.msra.gmra.mrb[2].mxu0 %vm572_vm2, %v1377_v32  ;;  %v3326_v32 = vpack.c.bf16 %v2371_v31, %v2370_v30 }
 0x3cc   : > { %v2937_v0 = vpop.f32.mrb[2].mxu0 }
 0x3cd   : > { %v1667_v1 = vadd.f32 %v2937_v0, %v2355_v63  ;;  %v1648_v11 = vpop.f32.mrb[3].mxu0 }
 0x3ce   : > { %v1666_v12 = vadd.f32 %v2355_v63, %v1648_v11 }
 0x3cf   : > { %vm1669_vm11 = vcmp.gt.f32.partialorder %v1667_v1, 0.0  ;;  %v1671_v2 = vmul.f32 0.2, %v1667_v1 }
 0x3d0   : > { %vm1668_vm12 = vcmp.gt.f32.partialorder %v1666_v12, 0.0  ;;  %v1670_v3 = vmul.f32 0.2, %v1666_v12 }
 0x3d1   : > { %v1673_v4 = vsel %vm1669_vm11, %v1667_v1, %v1671_v2 }
 0x3d2   : > { %v1677_v5 = vrot.slane %v1673_v4, 7  ;;  %v1682_v13 = vrot.slane %v1673_v4, 1  ;;  %v1672_v6 = vsel %vm1668_vm12, %v1666_v12, %v1670_v3 }
 0x3d3   : > { %v1681_v9 = vrot.slane %v1672_v6, 1  ;;  %v1676_v10 = vrot.slane %v1672_v6, 7 }
 0x3d4   : > { %v1685_v39 = vsel %vm572_vm2, %v1682_v13, 0.0 }
 0x3d5   : > { %v1680_v15 = vsel %vm565_vm0, 0.0, %v1676_v10  ;;  %v1678_v17 = vsel %vm565_vm0, %v1676_v10, %v1677_v5  ;;  %v1683_v19 = vsel %vm572_vm2, %v1681_v9, %v1682_v13 }
 0x3d6   : > { %2954 = vmatprep.mubr.msk.f32.mxu1 %vm900_vm5, %v1680_v15 }
 0x3d7   : > { %2955 = vmatmul.mubr.msk.f32.vlgmr.msra.gmra.mrb[6].mxu1 %vm900_vm5, %v1678_v17 }
 0x3d8   : > { %3309 = vmatpush3.bf16.msra.mxu1 %v3306_v62  ;;  %2973 = vmatprep.mubr.msk.f32.mxu1 %vm900_vm5, %v1672_v6 }
 0x3d9   : > { %3311 = vmatprep.subr.bf16.mxu1 %v3310_v18 }
 0x3dc   : > { %3313 = vmatpush3.bf16.msra.mxu1 %v3310_v18 }
 0x3dd   : > { %3315 = vmatprep.subr.bf16.mxu1 %v3314_v23 }
 0x3e0   : > { %3317 = vmatpush3.bf16.msra.mxu1 %v3314_v23 }
 0x3e1   : > { %3319 = vmatprep.subr.bf16.mxu1 %v3318_v26 }
 0x3e4   : > { %3321 = vmatpush3.bf16.msra.mxu1 %v3318_v26 }
 0x3e5   : > { %3323 = vmatprep.subr.bf16.mxu1 %v3322_v29 }
 0x3e7   : > { %2974 = vmatmul.mubr.msk.f32.vlgmr.msra.gmra.mrb[6].mxu1 %vm900_vm5, %v1673_v4 }
 0x3e8   : > { %3325 = vmatpush3.bf16.msra.mxu1 %v3322_v29  ;;  %2992 = vmatprep.mubr.msk.f32.mxu1 %vm900_vm5, %v1683_v19 }
 0x3e9   : > { %3327 = vmatprep.subr.bf16.mxu1 %v3326_v32 }
 0x3ec   : > { %3329 = vmatpush3.bf16.msra.mxu1 %v3326_v32 }
 0x3ed   : > { %3331 = vmatprep.subr.bf16.mxu1 %v3330_v35 }
 0x3f0   : > { %3333 = vmatpush3.bf16.msra.mxu1 %v3330_v35 }
 0x3f1   : > { %3335 = vmatprep.subr.bf16.mxu1 %v3334_v38 }
 0x3f4   : > { %3337 = vmatpush3.bf16.msra.mxu1 %v3334_v38 }
 0x3f5   : > { %3338 = vmatprep.subr.bf16.mxu1 %v3550_v14 }
 0x3f7   : > { %2993 = vmatmul.mubr.msk.f32.vlgmr.msra.gmra.mrb[6].mxu1 %vm900_vm5, %v1685_v39 }
 0x3f8   : > { %2999 = vmatprep.mubr.msk.f32.mxu1 %vm3551_vm6, %v3552_v22 }
 0x4ca   : > { %v2994_v43 = vpop.f32.mrb[6].mxu1 }
 0x4cb   : > { %v1961_v44 = vadd.f32 %v2994_v43, %v2378_v42  ;;  %v1942_v14 = vpop.f32.mrb[7].mxu1 }
 0x4cc   : > { %v1960_v45 = vadd.f32 %v2378_v42, %v1942_v14 }
 0x4cd   : > { %vm1963_vm13 = vcmp.gt.f32.partialorder %v1961_v44, 0.0  ;;  %v1965_v46 = vmul.f32 0.2, %v1961_v44 }
 0x4ce   : > { %vm1962_vm14 = vcmp.gt.f32.partialorder %v1960_v45, 0.0  ;;  %v1964_v22 = vmul.f32 0.2, %v1960_v45 }
 0x4cf   : > { %v1967_v47 = vsel %vm1963_vm13, %v1961_v44, %v1965_v46 }
 0x4d0   : > { %v1966_v48 = vsel %vm1962_vm14, %v1960_v45, %v1964_v22 }
 0x4d1   : > { %v3339_v49 = vpack.c.bf16 %v1967_v47, %v1966_v48 }
 0x4d3   : > { %3341 = vmatpush3.bf16.xpose.msk.msra.mxu1 %vm3340_vm15, %v3339_v49 }
 0x4da   : > { %3000 = vmatmul.mubr.msk.f32.vlgmr.msra.gmra.mrb[8].mxu1 %vm900_vm5, %v1968_v50 }
 0x4db   : > { %3439 = shalt.err (!%p3436_p3)
}
 0x4dc   : > { %s3440_s0 = scalar_lea.hbm %s4336_s27, 256  ;;  %s3444_s20 = scalar_lea.hbm %s4467_s15, 512 }
 0x4dd   : > { %p3441_p4 = scmp.ne.s32.totalorder %s4336_s27, %s3440_s0  ;;  %p3445_p9 = scmp.lt.u32.totalorder %s4336_s27, %s4467_s15 }
 0x4de   : > { %p3446_p10 = scmp.lt.u32.totalorder %s3444_s20, %s3440_s0  ;;  %p3448_p12 = scmp.lt.u32.totalorder %s3440_s0, %s4336_s27 }
 0x4df   : > { %p3442_p7 = pnand %p3441_p4, %p3687_p5 }
 0x4e0   : > { %p3447_p11 = por %p3446_p10, %p3445_p9 }
 0x4e1   : > { %p3443_p8 = pneg %p3442_p7 }
 0x4e2   : > { %p3449_p13 = por %p3448_p12, %p3447_p11 }
 0x4e4   : > { %p3450_p0 = pnand %p3449_p13, %p3443_p8 }
 0x4e6   : > { %3453 = shalt.err (!%p3450_p0)
}
 0x4e7   : > { %s3555_s2 = smov 128   ;;  %s3556_s25 = smov 8  }
 0x4e8   : > { %3359 = dma.vmem_to_hbm [thread:$0]  (%p3687_p5), %s4339_s23, 256, %s4336_s27, %s4341_s18, %s3555_s2, %s3555_s2, %s3556_s25  }
 0x4e9   : > { %s4373_s19 = scalar_lea.hbm %s4468_s16, %s2394_s21  ;;  %s3454_s20 = scalar_lea.vmem %s4327_s28, 256 }
 0x4ea   : > { %p3455_p1 = scmp.ne.s32.totalorder %s4327_s28, %s3454_s20  ;;  %s3557_s22 = smov [#allocation7]  }
 0x4eb   : > { %s3458_s29 = sshll.u32 %s3557_s22, 4  ;;  %s3459_s29 = int_to_ptr.vmem [resolvable:$false] %s3458_s29 }
 0x4ec   : > { %p3456_p2 = pnand %p3455_p1, %p3687_p5  ;;  %s3460_s3 = scalar_lea.vmem %s3459_s29, 512 }
 0x4ed   : > { %p3461_p4 = scmp.lt.s32.totalorder %s4327_s28, %s3459_s29  ;;  %p3462_p7 = scmp.lt.s32.totalorder %s3460_s3, %s3454_s20 }
 0x4ee   : > { %p3457_p3 = pneg %p3456_p2 }
 0x4ef   : > { %p3463_p8 = por %p3462_p7, %p3461_p4 }
 0x4f1   : > { %p3464_p9 = pnand %p3463_p8, %p3457_p3 }
 0x4f3   : > { %3467 = shalt.err (!%p3464_p9)
}
 0x4f4   : > { %s3468_s21 = scalar_lea.hbm %s4373_s19, 256  ;;  %s3472_s0 = scalar_lea.hbm %s4468_s16, 512 }
 0x4f5   : > { %p3469_p10 = scmp.ne.s32.totalorder %s4373_s19, %s3468_s21  ;;  %p3473_p13 = scmp.lt.u32.totalorder %s4373_s19, %s4468_s16 }
 0x4f6   : > { %p3474_p0 = scmp.lt.u32.totalorder %s3472_s0, %s3468_s21  ;;  %p3476_p2 = scmp.lt.u32.totalorder %s3468_s21, %s4373_s19 }
 0x4f7   : > { %p3470_p11 = pnand %p3469_p10, %p3687_p5 }
 0x4f8   : > { %p3475_p1 = por %p3474_p0, %p3473_p13 }
 0x4f9   : > { %p3471_p12 = pneg %p3470_p11 }
 0x4fa   : > { %p3477_p3 = por %p3476_p2, %p3475_p1 }
 0x4fc   : > { %p3478_p4 = pnand %p3477_p3, %p3471_p12 }
 0x4fe   : > { %3481 = shalt.err (!%p3478_p4)
}
 0x4ff   : > { %3360 = dma.vmem_to_hbm [thread:$0]  (%p3687_p5), %s4327_s28, 256, %s4373_s19, %s4341_s18, %s3555_s2, %s3555_s2, %s3556_s25   ;;  %v1973_v51 = vpop.permute.xlu0 %1972  ;;  %vm2064_vm0 = vcmask 122880  }
 0x500   : > { %v1978_v52 = vrot.slane %v1973_v51, %v1362_v57  ;;  %s2385_s3 = sshll.u32 %s3668_s13, 4  ;;  %s534_s20 = scalar_lea.vmem [#allocation3], %s4099_s30 }
 0x501   : > { %s2089_s29 = sshll.u32 %s534_s20, 4  ;;  %s4407_s18 = scalar_lea.hbm %s4466_s14, %s2385_s3  ;;  %s4409_s29 = int_to_ptr.vmem [resolvable:$true] %s2089_s29 }
 0x502   : > { %s2067_s2 = scalar_lea.sflag [#allocation4], %s4099_s30  ;;  %s3482_s25 = scalar_lea.vmem %s4409_s29, 16 }
 0x503   : > { %p3483_p7 = scmp.ne.s32.totalorder %s4409_s29, %s3482_s25  ;;  %s3558_s13 = smov [#allocation3]  }
 0x504   : > { %s3486_s19 = sshll.u32 %s3558_s13, 4  ;;  %s3487_s19 = int_to_ptr.vmem [resolvable:$false] %s3486_s19 }
 0x505   : > { %p3484_p8 = pnand %p3483_p7, %p3687_p5  ;;  %s3488_s27 = scalar_lea.vmem %s3487_s19, 32 }
 0x506   : > { %p3489_p10 = scmp.lt.s32.totalorder %s4409_s29, %s3487_s19  ;;  %p3490_p11 = scmp.lt.s32.totalorder %s3488_s27, %s3482_s25 }
 0x507   : > { %p3485_p9 = pneg %p3484_p8 }
 0x508   : > { %p3491_p12 = por %p3490_p11, %p3489_p10 }
 0x50a   : > { %p3492_p13 = pnand %p3491_p12, %p3485_p9 }
 0x5ad   : > { %v2054_v53 = vpop.f32.mrb[8].mxu1 }
 0x5ae   : > { %v2055_v16 = vadd.f32 %v2054_v53, %v1978_v52  ;;  %v3001_v54 = vpop.f32.mrb[9].mxu1 }
 0x5b0   : > { %v2382_v56 = vmul.f32 -1.442695, %v2055_v16 }
 0x5b2   : > { %3422 = vpow2.f32 %v2382_v56 }
 0x5bc   : > { %v3423_v58 = vpop.eup %3422 }
 0x5bd   : > { %v2061_v59 = vadd.f32 1.0, %v3423_v58 }
 0x5bf   : > { %3424 = vrcp.f32 %v2061_v59 }
 0x5c9   : > { %v3425_v55 = vpop.eup %3424 }
 0x5ca   : > { %2065 = vst.msk [vmem:[%s534_s20] sm:$0x1] %vm2064_vm0, %v3425_v55 }
 0x5cb   : > { %3495 = shalt.err (!%p3492_p13)
}
 0x5cc   : > { %s3496_s30 = scalar_lea.hbm %s4407_s18, 16  ;;  %s3500_s1 = scalar_lea.hbm %s4466_s14, 32 }
 0x5cd   : > { %p3497_p0 = scmp.ne.s32.totalorder %s4407_s18, %s3496_s30  ;;  %p3501_p3 = scmp.lt.u32.totalorder %s4407_s18, %s4466_s14 }
 0x5ce   : > { %p3502_p4 = scmp.lt.u32.totalorder %s3500_s1, %s3496_s30  ;;  %p3504_p8 = scmp.lt.u32.totalorder %s3496_s30, %s4407_s18 }
 0x5cf   : > { %p3498_p1 = pnand %p3497_p0, %p3687_p5 }
 0x5d0   : > { %p3503_p7 = por %p3502_p4, %p3501_p3 }
 0x5d1   : > { %p3499_p2 = pneg %p3498_p1 }
 0x5d2   : > { %p3505_p9 = por %p3504_p8, %p3503_p7 }
 0x5d4   : > { %p3506_p10 = pnand %p3505_p9, %p3499_p2 }
 0x5d6   : > { %3509 = shalt.err (!%p3506_p10)
}
 0x5d7   : > { %3358 = dma.vmem_to_hbm [thread:$0]  (%p3687_p5), %s4409_s29, 16, %s4407_s18, %s2067_s2  }
 0x5d8 PF: > { %s4494_s20 = sld [smem:[#allocation10_spill]]  ;;  %p3374_p11 = scmp.ge.s32.totalorder %s3548_s26, 2 }
 0x5da   : > { %p3365_p12 = pnand %p3374_p11, %p3691_p6 }
 0x5de   : > { %s2133_s28 = sand.u32 1, %s4494_s20  }
 0x5df   : > { %s2134_s25 = scalar_lea.sflag [#allocation4], %s2133_s28 }
 0x5e0   : > { %3527 = dma.done.wait (!%p3365_p12), %s2134_s25, 16  }
 0x5e1   : > { %3529 = vsyncadd (!%p3365_p12), %s2134_s25, 4294967280  ;;  %s4496_s13 = sadd.s32 4294967294, %s3548_s26  }
 0x5e2   : > { %s2141_s19 = sand.u32 1, %s4496_s13  }
 0x5e3   : > { %s2142_s27 = scalar_lea.sflag [#allocation6], %s2141_s19 }
 0x5e4   : > { %3531 = dma.done.wait (!%p3365_p12), %s2142_s27, 512  }
 0x5e5   : > { %3533 = vsyncadd (!%p3365_p12), %s2142_s27, 4294966784  ;;  %s4497_s26 = sld [smem:[#allocation12_spill]]  ;;  %s4498_s17 = sld [smem:[#allocation11_spill]] }
 0x5e6   : > { %s4499_s25 = sld [smem:[#allocation13_spill]]  ;;  %s4500_s23 = smov %s3540_s24 }
 0x5eb   : > { %p32_p5 = scmp.ge.s32.totalorder %s4497_s26, 4   ;;  %s4501_s24 = smov %s4498_s17 }
 0x5ed   :  { %34 = sbr.rel (!%p32_p5) target bundleno = 10 (0xa), region = 154 }
 0x5f4   :  { %2156 = vsyncpa [#allocation4], 1 }
 0x5f5   :  { %2158 = vsyncpa [#allocation4 + $0x1], 1 }
 0x5f6   :  { %2159 = vsyncpa [#allocation6], 1 }
 0x5f7   :  { %2161 = vsyncpa [#allocation6 + $0x1], 1 }

// kernel: pallas_forward.1
= control target key start
LH: loop header
LB: loop body
LE: loop exit
PB: predicated region body
PF: predicated region fallthrough
CT: control target
= control target key end

     0   :  { %s4452_s0 = inlined_call_operand.vmem [shape: f32[2,16,128], index: 0, kind: input, shape index: {}]   ;;  %s4453_s1 = inlined_call_operand.vmem [shape: f32[2,16,128], index: 1, kind: input, shape index: {}]   ;;  %s4454_s2 = inlined_call_operand.vmem [shape: f32[3,128,64], index: 2, kind: input, shape index: {}]   ;;  %s4455_s3 = inlined_call_operand.vmem [shape: f32[1,64], index: 3, kind: input, shape index: {}]   ;;  %s4456_s4 = inlined_call_operand.vmem [shape: f32[3,64,128], index: 4, kind: input, shape index: {}]   ;;  %s4457_s5 = inlined_call_operand.vmem [shape: f32[1,128], index: 5, kind: input, shape index: {}]   ;;  %s4458_s6 = inlined_call_operand.vmem [shape: f32[128,128], index: 6, kind: input, shape index: {}]   ;;  %s4459_s7 = inlined_call_operand.vmem [shape: f32[1,128], index: 7, kind: input, shape index: {}]   ;;  %s4460_s8 = inlined_call_operand.vmem [shape: f32[3,128,64], index: 8, kind: input, shape index: {}]   ;;  %s4461_s9 = inlined_call_operand.vmem [shape: f32[1,64], index: 9, kind: input, shape index: {}]   ;;  %s4462_s10 = inlined_call_operand.vmem [shape: f32[3,64,64], index: 10, kind: input, shape index: {}]   ;;  %s4463_s11 = inlined_call_operand.vmem [shape: f32[1,64], index: 11, kind: input, shape index: {}]   ;;  %s4464_s12 = inlined_call_operand.vmem [shape: f32[1,64], index: 12, kind: input, shape index: {}]   ;;  %s4465_s13 = inlined_call_operand.<no memory space> [shape: f32[1,1], index: 13, kind: input, shape index: {}]   ;;  %s4466_s14 = inlined_call_operand.hbm [shape: f32[2,1,16], index: 14, kind: output, shape index: {0}]   ;;  %s4467_s15 = inlined_call_operand.hbm [shape: f32[2,16,128], index: 15, kind: output, shape index: {1}]   ;;  %s4468_s16 = inlined_call_operand.hbm [shape: f32[2,16,128], index: 16, kind: output, shape index: {2}]  }
   0x1   :  { %4476 = sst [smem:[#allocation15_spill]] %s4452_s0  ;;  %v22_v0 = vstv %s4465_s13 }
   0x2   :  { %4477 = sst [smem:[#allocation16_spill]] %s4453_s1  ;;  %23 = vst [vmem:[#allocation2] sm:$0x1] %v22_v0 }
   0x3   :  { %4478 = sst [smem:[#allocation17_spill]] %s4454_s2 }
   0x4   :  { %4479 = sst [smem:[#allocation18_spill]] %s4455_s3 }
   0x5   :  { %24 = vsyncpa [#allocation4], 0 }
   0x6   :  { %26 = vsyncpa [#allocation4 + $0x1], 0 }
   0x7   :  { %27 = vsyncpa [#allocation6], 0 }
   0x8   :  { %29 = vsyncpa [#allocation6 + $0x1], 0  ;;  %s3647_s23 = smov 0   ;;  %s3649_s24 = smov 0  }
   0x9   :  { %s3651_s25 = smov 0   ;;  %s3653_s26 = smov 0  }
   0xa LB: > { %4480 = sst [smem:[#allocation10_spill]] %s3536_s23  ;;  %s3668_s13 = sadd.s32 4294967295, %s3548_s26   ;;  %s3548_s26 = sphi %s3653_s26, %s4497_s26   ;;  %s3544_s25 = sphi %s3651_s25, %s4499_s25   ;;  %s3540_s24 = sphi %s3649_s24, %s4501_s24   ;;  %s3536_s23 = sphi %s3647_s23, %s4500_s23  }
   0xb   : > { %4481 = sst [smem:[#allocation11_spill]] %s3544_s25  ;;  %s4469_s27 = sadd.s32 4294967294, %s3548_s26  }
   0xc   : > { %s3672_s28 = sadd.s32 1, %s3548_s26   ;;  %s346_s29 = sadd.s32 1, %s3544_s25 }
   0xd   : > { %4482 = sst [smem:[#allocation12_spill]] %s3672_s28  ;;  %s343_s30 = ssub.s32 %s3548_s26, %s3672_s28 }
   0xe   : > { %p356_p0 = scmp.ne.s32.totalorder %s3544_s25, %s3540_s24  ;;  %p344_p1 = scmp.eq.s32.totalorder %s343_s30, 0 }
   0xf   : > { %p357_p2 = scmp.eq.s32.totalorder %s3668_s13, 1  ;;  %p362_p3 = scmp.ne.s32.totalorder %s3540_s24, %s3536_s23 }
  0x10   : > { %p363_p4 = scmp.eq.s32.totalorder %s4469_s27, 1  ;;  %p2252_p7 = scmp.ge.s32.totalorder %s3548_s26, 1 }
  0x11   : > { %s3685_s0 = scalar_select %p344_p1, %s3544_s25, %s346_s29  }
  0x12   : > { %p3687_p5 = por %p357_p2, %p356_p0  ;;  %p3691_p6 = por %p363_p4, %p362_p3 }
  0x13   : > { %4483 = sst [smem:[#allocation13_spill]] %s3685_s0  ;;  %p485_p8 = scmp.lt.s32.totalorder %s3548_s26, 3 }
  0x14   : > { %s4485_s18 = scalar_select %p3691_p6, 1, 0 }
  0x15   : > { %p486_p9 = pnand %p2252_p7, %p485_p8 }
  0x16   : > { %4486 = sst [smem:[#allocation14_spill]] %s4485_s18  ;;  %s4487_s2 = sld [smem:[#allocation17_spill]] (!%p486_p9)  ;;  %vm565_vm0 = vcmask (!%p486_p9), 1040384   ;;  %v892_v26 = vld [vmem:[%s4456_s4] sm:$0xff] (!%p486_p9)  ;;  %v893_v27 = vld [vmem:[%s4456_s4 + $0x8] sm:$0xff] (!%p486_p9)  ;;  %v894_v28 = vld [vmem:[%s4456_s4 + $0x10] sm:$0xff] (!%p486_p9) }
  0x17   : > { %489 = sbr.rel (%p486_p9) target bundleno = 1496 (0x5d8), region = 76  ;;  %p549_p10 = scmp.lt.s32.totalorder (!%p486_p9), %s3668_s13, 1  ;;  %vm3734_vm1 = vmneg (!%p486_p9), %vm565_vm0  ;;  %v895_v29 = vld [vmem:[%s4456_s4 + $0x18] sm:$0xff] (!%p486_p9)  ;;  %v3098_v30 = vpack.c.bf16 (!%p486_p9), %v893_v27, %v892_v26  ;;  %vm572_vm2 = vcmask (!%p486_p9), 1046528   ;;  %v896_v27 = vld [vmem:[%s4456_s4 + $0x20] sm:$0xff] (!%p486_p9)  ;;  %vm900_vm5 = vcmask (!%p486_p9), 523264  }
  0x18   : > { %s4488_s1 = sld [smem:[#allocation16_spill]] (!%p486_p9)  ;;  %v3102_v31 = vpack.c.bf16 (!%p486_p9), %v895_v29, %v894_v28  ;;  %v897_v28 = vld [vmem:[%s4456_s4 + $0x28] sm:$0xff] (!%p486_p9)  ;;  %s4491_s3 = sld [smem:[#allocation18_spill]] (!%p486_p9)  ;;  %vm3551_vm6 = vmmov (!%p486_p9), 0   ;;  %v2326_v13 = vld [vmem:[%s4460_s8 + $0xb0] sm:$0xff] (!%p486_p9)  ;;  %vm3340_vm15 = vmpackc.low (!%p486_p9), %vm900_vm5, %vm900_vm5 }
  0x19   : > { %3099 = vmatprep.subr.bf16.mxu1 (!%p486_p9), %v3098_v30  ;;  %v3106_v29 = vpack.c.bf16 (!%p486_p9), %v897_v28, %v896_v27  ;;  %s4493_s18 = sld [smem:[#allocation15_spill]] (!%p486_p9)  ;;  %v1174_v27 = vld [vmem:[%s4458_s6 + $0x30] sm:$0xff] (!%p486_p9)  ;;  %v1175_v28 = vld [vmem:[%s4458_s6 + $0x38] sm:$0xff] (!%p486_p9)  ;;  %s4099_s30 = sand.u32 (!%p486_p9), 1, %s3540_s24  }
  0x1a   : > { %3101 = vmatpush3.bf16.msra.mxu1 (!%p486_p9), %v3098_v30  ;;  %v898_v30 = vld [vmem:[%s4456_s4 + $0x30] sm:$0xff] (!%p486_p9) }
  0x1b   : > { %3103 = vmatprep.subr.bf16.mxu1 (!%p486_p9), %v3102_v31 }
  0x1c   : > { %v596_v1 = vld [vmem:[%s4487_s2] sm:$0xff] (!%p486_p9)  ;;  %v597_v2 = vld [vmem:[%s4487_s2 + $0x8] sm:$0xff] (!%p486_p9)  ;;  %v598_v3 = vld [vmem:[%s4487_s2 + $0x10] sm:$0xff] (!%p486_p9) }
  0x1d   : > { %v3002_v4 = vpack.c.bf16 (!%p486_p9), %v597_v2, %v596_v1  ;;  %v599_v5 = vld [vmem:[%s4487_s2 + $0x18] sm:$0xff] (!%p486_p9)  ;;  %v600_v7 = vld [vmem:[%s4487_s2 + $0x20] sm:$0xff] (!%p486_p9)  ;;  %v601_v8 = vld [vmem:[%s4487_s2 + $0x28] sm:$0xff] (!%p486_p9) }
  0x1e   : > { %v3006_v6 = vpack.c.bf16 %v599_v5, %v598_v3  ;;  %s3717_s21 = scalar_select %p549_p10, %s3668_s13, 1  ;;  %v3010_v9 = vpack.c.bf16 %v601_v8, %v600_v7  ;;  %v602_v10 = vld [vmem:[%s4487_s2 + $0x30] sm:$0xff]  ;;  %v603_v11 = vld [vmem:[%s4487_s2 + $0x38] sm:$0xff]  ;;  %v604_v18 = vld [vmem:[%s4487_s2 + $0x40] sm:$0xff]  ;;  %3105 = vmatpush3.bf16.msra.mxu1 %v3102_v31 }
  0x1f   : > { %3003 = vmatprep.subr.bf16.mxu0 %v3002_v4  ;;  %v3014_v17 = vpack.c.bf16 %v603_v11, %v602_v10  ;;  %v605_v19 = vld [vmem:[%s4487_s2 + $0x48] sm:$0xff]  ;;  %v606_v21 = vld [vmem:[%s4487_s2 + $0x50] sm:$0xff]  ;;  %v607_v22 = vld [vmem:[%s4487_s2 + $0x58] sm:$0xff]  ;;  %3107 = vmatprep.subr.bf16.mxu1 %v3106_v29 }
  0x20   : > { %3005 = vmatpush3.bf16.msra.mxu0 %v3002_v4  ;;  %s4473_s22 = sshll.u32 %s3717_s21, 4  ;;  %v3018_v20 = vpack.c.bf16 %v605_v19, %v604_v18  ;;  %v3022_v23 = vpack.c.bf16 %v607_v22, %v606_v21  ;;  %v608_v24 = vld [vmem:[%s4487_s2 + $0x60] sm:$0xff]  ;;  %v609_v25 = vld [vmem:[%s4487_s2 + $0x68] sm:$0xff]  ;;  %v610_v33 = vld [vmem:[%s4487_s2 + $0x70] sm:$0xff]  ;;  %s4492_s20 = sshll.u32 %s3717_s21, 4 }
  0x21   : > { %3007 = vmatprep.subr.bf16.mxu0 %v3006_v6  ;;  %s558_s28 = scalar_lea.vmem %s4488_s1, %s4473_s22  ;;  %v3026_v32 = vpack.c.bf16 %v609_v25, %v608_v24  ;;  %v611_v34 = vld [vmem:[%s4487_s2 + $0x78] sm:$0xff]  ;;  %v2259_v36 = vld [vmem:[%s4487_s2 + $0x80] sm:$0xff]  ;;  %v2260_v37 = vld [vmem:[%s4487_s2 + $0x88] sm:$0xff]  ;;  %s553_s0 = scalar_lea.vmem %s4493_s18, %s4492_s20 }
  0x22   : > { %v3731_v12 = vld [vmem:[%s558_s28] sm:$0xff]  ;;  %v3738_v14 = vld [vmem:[%s558_s28 + $0x8] sm:$0xff]  ;;  %v3030_v35 = vpack.c.bf16 %v611_v34, %v610_v33  ;;  %v3034_v39 = vpack.c.bf16 %v2260_v37, %v2259_v36  ;;  %v2261_v40 = vld [vmem:[%s4487_s2 + $0x90] sm:$0xff]  ;;  %3109 = vmatpush3.bf16.msra.mxu1 %v3106_v29  ;;  %s2253_s1 = sshll.u32 %s4099_s30, 4  ;;  %s2394_s21 = sshll.u32 %s3668_s13, 8 }
  0x23   : > { %v566_v15 = vrot.slane %v3731_v12, 7  ;;  %v3743_v16 = vadd.f32 %v3738_v14, %v3731_v12  ;;  %v567_v38 = vrot.slane %v3738_v14, 7  ;;  %v2262_v41 = vld [vmem:[%s4487_s2 + $0x98] sm:$0xff]  ;;  %v2263_v44 = vld [vmem:[%s4487_s2 + $0xa0] sm:$0xff]  ;;  %v2264_v45 = vld [vmem:[%s4487_s2 + $0xa8] sm:$0xff]  ;;  %v573_v1 = vrot.slane %v3731_v12, 1  ;;  %s4336_s27 = scalar_lea.hbm %s4467_s15, %s2394_s21 }
  0x24   : > { %3009 = vmatpush3.bf16.msra.mxu0 %v3006_v6  ;;  %v3038_v43 = vpack.c.bf16 %v2262_v41, %v2261_v40  ;;  %v3042_v46 = vpack.c.bf16 %v2264_v45, %v2263_v44  ;;  %v2265_v47 = vld [vmem:[%s4487_s2 + $0xb0] sm:$0xff]  ;;  %v2266_v48 = vld [vmem:[%s4487_s2 + $0xb8] sm:$0xff]  ;;  %v2267_v50 = vld [vmem:[%s4487_s2 + $0xc0] sm:$0xff]  ;;  %v574_v2 = vrot.slane %v3738_v14, 1  ;;  %s4107_s22 = scalar_lea.vmem [#allocation7], %s2253_s1 }
  0x25   : > { %3011 = vmatprep.subr.bf16.mxu0 %v3010_v9  ;;  %2633 = vmatprep.mubr.msk.f32.mxu0 %vm3734_vm1, %v566_v15  ;;  %v568_v42 = vsel %vm565_vm0, %v566_v15, %v567_v38  ;;  %v3046_v49 = vpack.c.bf16 %v2266_v48, %v2265_v47  ;;  %v2268_v51 = vld [vmem:[%s4487_s2 + $0xc8] sm:$0xff]  ;;  %v2269_v53 = vld [vmem:[%s4487_s2 + $0xd0] sm:$0xff]  ;;  %v2270_v54 = vld [vmem:[%s4487_s2 + $0xd8] sm:$0xff]  ;;  %s2118_s28 = sshll.u32 %s4107_s22, 4  ;;  %s4327_s28 = int_to_ptr.vmem [resolvable:$true] %s2118_s28 }
  0x26   : > { %v3050_v52 = vpack.c.bf16 %v2268_v51, %v2267_v50  ;;  %v3054_v55 = vpack.c.bf16 %v2270_v54, %v2269_v53  ;;  %v2271_v56 = vld [vmem:[%s4487_s2 + $0xe0] sm:$0xff]  ;;  %v2272_v57 = vld [vmem:[%s4487_s2 + $0xe8] sm:$0xff]  ;;  %v2273_v59 = vld [vmem:[%s4487_s2 + $0xf0] sm:$0xff]  ;;  %v575_v6 = vsel %vm572_vm2, %v573_v1, %v574_v2 }
  0x27   : > { %v3058_v58 = vpack.c.bf16 %v2272_v57, %v2271_v56  ;;  %v2274_v60 = vld [vmem:[%s4487_s2 + $0xf8] sm:$0xff]  ;;  %v2277_v62 = vld [vmem:[%s4487_s2 + $0x100] sm:$0xff]  ;;  %v2278_v63 = vld [vmem:[%s4487_s2 + $0x108] sm:$0xff] }
  0x28   : > { %3013 = vmatpush3.bf16.msra.mxu0 %v3010_v9  ;;  %v3062_v61 = vpack.c.bf16 %v2274_v60, %v2273_v59  ;;  %v3066_v0 = vpack.c.bf16 %v2278_v63, %v2277_v62  ;;  %v2279_v3 = vld [vmem:[%s4487_s2 + $0x110] sm:$0xff]  ;;  %v2280_v4 = vld [vmem:[%s4487_s2 + $0x118] sm:$0xff]  ;;  %v2281_v7 = vld [vmem:[%s4487_s2 + $0x120] sm:$0xff] }
  0x29   : > { %3015 = vmatprep.subr.bf16.mxu0 %v3014_v17  ;;  %v3070_v5 = vpack.c.bf16 %v2280_v4, %v2279_v3  ;;  %v2282_v8 = vld [vmem:[%s4487_s2 + $0x128] sm:$0xff]  ;;  %v2283_v10 = vld [vmem:[%s4487_s2 + $0x130] sm:$0xff]  ;;  %v2284_v11 = vld [vmem:[%s4487_s2 + $0x138] sm:$0xff] }
  0x2a   : > { %v3074_v9 = vpack.c.bf16 %v2282_v8, %v2281_v7  ;;  %v2285_v15 = vld [vmem:[%s4487_s2 + $0x140] sm:$0xff]  ;;  %v2287_v18 = vld [vmem:[%s4487_s2 + $0x150] sm:$0xff]  ;;  %v2288_v19 = vld [vmem:[%s4487_s2 + $0x158] sm:$0xff] }
  0x2b   : > { %v2289_v21 = vld [vmem:[%s4487_s2 + $0x160] sm:$0xff]  ;;  %v2290_v22 = vld [vmem:[%s4487_s2 + $0x168] sm:$0xff]  ;;  %v2291_v24 = vld [vmem:[%s4487_s2 + $0x170] sm:$0xff] }
  0x2c   : > { %3017 = vmatpush3.bf16.msra.mxu0 %v3014_v17  ;;  %v2292_v25 = vld [vmem:[%s4487_s2 + $0x178] sm:$0xff]  ;;  %v2295_v33 = vld [vmem:[%s4456_s4 + $0x40] sm:$0xff]  ;;  %v2296_v34 = vld [vmem:[%s4456_s4 + $0x48] sm:$0xff] }
  0x2d   : > { %3019 = vmatprep.subr.bf16.mxu0 %v3018_v20  ;;  %v3094_v26 = vpack.c.bf16 %v2292_v25, %v2291_v24  ;;  %v899_v31 = vld [vmem:[%s4456_s4 + $0x38] sm:$0xff]  ;;  %v2294_v36 = vld [vmem:[%s4491_s3] ss:$0 sm:$0xff]  ;;  %v2297_v47 = vld [vmem:[%s4456_s4 + $0x50] sm:$0xff] }
  0x2e   : > { %v2298_v48 = vld [vmem:[%s4456_s4 + $0x58] sm:$0xff]  ;;  %v2300_v56 = vld [vmem:[%s4456_s4 + $0x68] sm:$0xff]  ;;  %v2311_v3 = vld [vmem:[%s4456_s4 + $0xa0] sm:$0xff] }
  0x2f   : > { %v3118_v53 = vpack.c.bf16 %v2298_v48, %v2297_v47  ;;  %v2302_v59 = vld [vmem:[%s4456_s4 + $0x78] sm:$0xff]  ;;  %v2308_v62 = vld [vmem:[%s4456_s4 + $0x88] sm:$0xff]  ;;  %v1193_v48 = vrot.slane %v3743_v16, 4 }
  0x30   : > { %3021 = vmatpush3.bf16.msra.mxu0 %v3018_v20  ;;  %v3086_v20 = vpack.c.bf16 %v2288_v19, %v2287_v18  ;;  %v2310_v1 = vld [vmem:[%s4456_s4 + $0x98] sm:$0xff]  ;;  %v2312_v4 = vld [vmem:[%s4456_s4 + $0xa8] sm:$0xff] }
  0x31   : > { %3023 = vmatprep.subr.bf16.mxu0 %v3022_v23  ;;  %v2314_v7 = vld [vmem:[%s4456_s4 + $0xb8] sm:$0xff]  ;;  %v1173_v24 = vld [vmem:[%s4458_s6 + $0x28] sm:$0xff] }
  0x32   : > { %v1171_v18 = vld [vmem:[%s4458_s6 + $0x18] sm:$0xff] }
  0x34   : > { %3025 = vmatpush3.bf16.msra.mxu0 %v3022_v23  ;;  %v3090_v23 = vpack.c.bf16 %v2290_v22, %v2289_v21  ;;  %v3552_v22 = vmov 0.0  }
  0x35   : > { %3027 = vmatprep.subr.bf16.mxu0 %v3026_v32 }
  0x38   : > { %3029 = vmatpush3.bf16.msra.mxu0 %v3026_v32  ;;  %v3110_v32 = vpack.c.bf16 %v899_v31, %v898_v30  ;;  %v3156_v30 = vpack.c.bf16 %v1175_v28, %v1174_v27  ;;  %v1176_v31 = vld [vmem:[%s4458_s6 + $0x40] sm:$0xff] }
  0x39   : > { %3031 = vmatprep.subr.bf16.mxu0 %v3030_v35 }
  0x3a   : > { %3111 = vmatprep.subr.bf16.mxu1 %v3110_v32 }
  0x3b   : > { %3113 = vmatpush3.bf16.msra.mxu1 %v3110_v32  ;;  %v1177_v32 = vld [vmem:[%s4458_s6 + $0x48] sm:$0xff] }
  0x3c   : > { %3033 = vmatpush3.bf16.msra.mxu0 %v3030_v35  ;;  %v3114_v35 = vpack.c.bf16 %v2296_v34, %v2295_v33  ;;  %v3159_v34 = vpack.c.bf16 %v1177_v32, %v1176_v31 }
  0x3d   : > { %3035 = vmatprep.subr.bf16.mxu0 %v3034_v39 }
  0x3e   : > { %3115 = vmatprep.subr.bf16.mxu1 %v3114_v35 }
  0x3f   : > { %2634 = vmatmul.mubr.f32.vlgmr.msra.gmra.mrb[0].mxu0 %v568_v42 }
  0x40   : > { %3037 = vmatpush3.bf16.msra.mxu0 %v3034_v39  ;;  %2668 = vmatprep.mubr.f32.mxu0 %v3731_v12  ;;  %v3078_v12 = vpack.c.bf16 %v2284_v11, %v2283_v10  ;;  %v1169_v10 = vld [vmem:[%s4458_s6 + $0x8] sm:$0xff]  ;;  %v3969_v11 = vld [vmem:[%s553_s0] sm:$0xff] }
  0x41   : > { %3039 = vmatprep.subr.bf16.mxu0 %v3038_v43 }
  0x44   : > { %3041 = vmatpush3.bf16.msra.mxu0 %v3038_v43 }
  0x45   : > { %3043 = vmatprep.subr.bf16.mxu0 %v3042_v46 }
  0x48   : > { %3045 = vmatpush3.bf16.msra.mxu0 %v3042_v46 }
  0x49   : > { %3047 = vmatprep.subr.bf16.mxu0 %v3046_v49 }
  0x4c   : > { %3049 = vmatpush3.bf16.msra.mxu0 %v3046_v49 }
  0x4d   : > { %3051 = vmatprep.subr.bf16.mxu0 %v3050_v52 }
  0x50   : > { %3053 = vmatpush3.bf16.msra.mxu0 %v3050_v52 }
  0x51   : > { %3055 = vmatprep.subr.bf16.mxu0 %v3054_v55 }
  0x54   : > { %3057 = vmatpush3.bf16.msra.mxu0 %v3054_v55  ;;  %v2299_v55 = vld [vmem:[%s4456_s4 + $0x60] sm:$0xff] }
  0x55   : > { %3059 = vmatprep.subr.bf16.mxu0 %v3058_v58  ;;  %v3122_v57 = vpack.c.bf16 %v2300_v56, %v2299_v55  ;;  %v1400_v55 = vld [vmem:[%s4460_s8 + $0x8] sm:$0xff] }
  0x58   : > { %3061 = vmatpush3.bf16.msra.mxu0 %v3058_v58  ;;  %v2301_v58 = vld [vmem:[%s4456_s4 + $0x70] sm:$0xff] }
  0x59   : > { %3063 = vmatprep.subr.bf16.mxu0 %v3062_v61  ;;  %v3126_v60 = vpack.c.bf16 %v2302_v59, %v2301_v58  ;;  %v1402_v58 = vld [vmem:[%s4460_s8 + $0x18] sm:$0xff] }
  0x5c   : > { %3065 = vmatpush3.bf16.msra.mxu0 %v3062_v61  ;;  %v2307_v61 = vld [vmem:[%s4456_s4 + $0x80] sm:$0xff] }
  0x5d   : > { %3067 = vmatprep.subr.bf16.mxu0 %v3066_v0  ;;  %v3130_v63 = vpack.c.bf16 %v2308_v62, %v2307_v61  ;;  %v1404_v61 = vld [vmem:[%s4460_s8 + $0x28] sm:$0xff] }
  0x5f   : > { %2669 = vmatmul.mubr.f32.vlgmr.msra.gmra.mrb[0].mxu0 %v3738_v14  ;;  %v2286_v14 = vld [vmem:[%s4487_s2 + $0x148] sm:$0xff] }
  0x60   : > { %3069 = vmatpush3.bf16.msra.mxu0 %v3066_v0  ;;  %2703 = vmatprep.mubr.f32.mxu0 %v575_v6  ;;  %v3082_v17 = vpack.c.bf16 %v2286_v14, %v2285_v15  ;;  %v2309_v0 = vld [vmem:[%s4456_s4 + $0x90] sm:$0xff]  ;;  %v3550_v14 = vmov 0.0|0.0  }
  0x61   : > { %3071 = vmatprep.subr.bf16.mxu0 %v3070_v5  ;;  %v2313_v6 = vld [vmem:[%s4456_s4 + $0xb0] sm:$0xff] }
  0x62   : > { %v3142_v8 = vpack.c.bf16 %v2314_v7, %v2313_v6  ;;  %v1410_v6 = vld [vmem:[%s4460_s8 + $0x58] sm:$0xff] }
  0x64   : > { %3073 = vmatpush3.bf16.msra.mxu0 %v3070_v5  ;;  %v3138_v5 = vpack.c.bf16 %v2312_v4, %v2311_v3  ;;  %v1408_v3 = vld [vmem:[%s4460_s8 + $0x48] sm:$0xff]  ;;  %v1409_v4 = vld [vmem:[%s4460_s8 + $0x50] sm:$0xff] }
  0x65   : > { %3075 = vmatprep.subr.bf16.mxu0 %v3074_v9  ;;  %v3214_v7 = vpack.c.bf16 %v1410_v6, %v1409_v4  ;;  %v2325_v4 = vld [vmem:[%s4460_s8 + $0xa8] sm:$0xff]  ;;  %v2327_v6 = vld [vmem:[%s4460_s8 + $0xb8] sm:$0xff] }
  0x68   : > { %3077 = vmatpush3.bf16.msra.mxu0 %v3074_v9  ;;  %v1168_v9 = vld [vmem:[%s4458_s6] sm:$0xff] }
  0x69   : > { %3079 = vmatprep.subr.bf16.mxu0 %v3078_v12  ;;  %v3147_v15 = vpack.c.bf16 %v1169_v10, %v1168_v9  ;;  %v1412_v9 = vld [vmem:[%s4460_s8 + $0x68] sm:$0xff] }
  0x6c   : > { %3081 = vmatpush3.bf16.msra.mxu0 %v3078_v12  ;;  %v3971_v12 = vld [vmem:[%s553_s0 + $0x8] sm:$0xff]  ;;  %s4143_s0 = scalar_lea.vmem [#allocation5], %s2253_s1  ;;  %s2070_s1 = sand.u32 1, %s3668_s13  }
  0x6d   : > { %3083 = vmatprep.subr.bf16.mxu0 %v3082_v17  ;;  %s2102_s23 = sshll.u32 %s4143_s0, 4  ;;  %s4341_s18 = scalar_lea.sflag [#allocation6], %s2070_s1  ;;  %s4339_s23 = int_to_ptr.vmem [resolvable:$true] %s2102_s23 }
  0x6e   : > { %s3426_s25 = scalar_lea.vmem %s4339_s23, 256 }
  0x6f   : > { %p3427_p11 = scmp.ne.s32.totalorder %s4339_s23, %s3426_s25 }
  0x70   : > { %3085 = vmatpush3.bf16.msra.mxu0 %v3082_v17  ;;  %v1170_v17 = vld [vmem:[%s4458_s6 + $0x10] sm:$0xff] }
  0x71   : > { %3087 = vmatprep.subr.bf16.mxu0 %v3086_v20  ;;  %v3150_v21 = vpack.c.bf16 %v1171_v18, %v1170_v17  ;;  %v1414_v17 = vld [vmem:[%s4460_s8 + $0x78] sm:$0xff]  ;;  %p3428_p12 = pnand %p3427_p11, %p3687_p5 }
  0x73   : > { %p3429_p13 = pneg %p3428_p12 }
  0x74   : > { %3089 = vmatpush3.bf16.msra.mxu0 %v3086_v20  ;;  %v1184_v20 = vadd.f32 %v3971_v12, %v3969_v11 }
  0x75   : > { %3091 = vmatprep.subr.bf16.mxu0 %v3090_v23 }
  0x76   : > { %v1185_v25 = vrot.slane %v1184_v20, 4 }
  0x78   : > { %3093 = vmatpush3.bf16.msra.mxu0 %v3090_v23  ;;  %v1172_v23 = vld [vmem:[%s4458_s6 + $0x20] sm:$0xff]  ;;  %v1186_v29 = vadd.f32 %v1185_v25, %v1184_v20  ;;  %v2321_v20 = vld [vmem:[%s4460_s8 + $0x88] sm:$0xff] }
  0x79   : > { %3095 = vmatprep.subr.bf16.mxu0 %v3094_v26 }
  0x7a   : > { %v1187_v33 = vrot.slane %v1186_v29, 2 }
  0x7c   : > { %3097 = vmatpush3.bf16.msra.mxu0 %v3094_v26  ;;  %v3153_v26 = vpack.c.bf16 %v1173_v24, %v1172_v23  ;;  %v2317_v23 = vld [vmem:[%s4457_s5] ss:$0 sm:$0xff] }
  0x7f   : > { %2704 = vmatmul.mubr.msk.f32.vlgmr.msra.gmra.mrb[0].mxu0 %vm572_vm2, %v574_v2  ;;  %v3134_v2 = vpack.c.bf16 %v2310_v1, %v2309_v0  ;;  %v1406_v0 = vld [vmem:[%s4460_s8 + $0x38] sm:$0xff] }
 0x152   : > { %v2705_v37 = vpop.f32.mrb[0].mxu0 }
 0x153   : > { %v864_v38 = vadd.f32 %v2705_v37, %v2294_v36  ;;  %v845_v39 = vpop.f32.mrb[1].mxu0  ;;  %v1188_v37 = vadd.f32 %v1187_v33, %v1186_v29 }
 0x154   : > { %v863_v40 = vadd.f32 %v2294_v36, %v845_v39  ;;  %v1179_v36 = vld [vmem:[%s4458_s6 + $0x58] sm:$0xff]  ;;  %v1180_v39 = vld [vmem:[%s4458_s6 + $0x60] sm:$0xff] }
 0x155   : > { %vm866_vm3 = vcmp.gt.f32.partialorder %v864_v38, 0.0  ;;  %v868_v41 = vmul.f32 0.2, %v864_v38 }
 0x156   : > { %vm865_vm4 = vcmp.gt.f32.partialorder %v863_v40, 0.0  ;;  %v867_v42 = vmul.f32 0.2, %v863_v40 }
 0x157   : > { %v870_v43 = vsel %vm866_vm3, %v864_v38, %v868_v41  ;;  %v1189_v41 = vrot.slane %v1188_v37, 1 }
 0x158   : > { %v874_v44 = vrot.slane %v870_v43, 7  ;;  %v879_v45 = vrot.slane %v870_v43, 1  ;;  %v869_v46 = vsel %vm865_vm4, %v863_v40, %v867_v42  ;;  %v1181_v40 = vld [vmem:[%s4458_s6 + $0x68] sm:$0xff] }
 0x159   : > { %v873_v49 = vrot.slane %v869_v46, 7  ;;  %v878_v50 = vrot.slane %v869_v46, 1  ;;  %v3165_v42 = vpack.c.bf16 %v1181_v40, %v1180_v39  ;;  %v1200_v40 = vld [vmem:[%s4459_s7] sm:$0x1] }
 0x15a   : > { %v882_v19 = vsel %vm572_vm2, %v879_v45, 0.0 }
 0x15b   : > { %v877_v51 = vsel %vm565_vm0, 0.0, %v873_v49  ;;  %v875_v52 = vsel %vm565_vm0, %v873_v49, %v874_v44  ;;  %v880_v54 = vsel %vm572_vm2, %v878_v50, %v879_v45  ;;  %v1183_v44 = vld [vmem:[%s4458_s6 + $0x78] sm:$0xff]  ;;  %v1190_v45 = vadd.f32 %v1189_v41, %v1188_v37 }
 0x15c   : > { %2722 = vmatprep.mubr.msk.f32.mxu1 %vm900_vm5, %v877_v51  ;;  %v1194_v49 = vadd.f32 %v1193_v48, %v3743_v16 }
 0x15d   : > { %2723 = vmatmul.mubr.msk.f32.vlgmr.msra.gmra.mrb[0].mxu1 %vm900_vm5, %v875_v52  ;;  %v1191_v47 = vmul.f32 0.0625, %v1190_v45 }
 0x15e   : > { %3117 = vmatpush3.bf16.msra.mxu1 %v3114_v35  ;;  %2741 = vmatprep.mubr.msk.f32.mxu1 %vm900_vm5, %v869_v46  ;;  %v1178_v35 = vld [vmem:[%s4458_s6 + $0x50] sm:$0xff]  ;;  %v1195_v50 = vrot.slane %v1194_v49, 2 }
 0x15f   : > { %3119 = vmatprep.subr.bf16.mxu1 %v3118_v53  ;;  %v3162_v38 = vpack.c.bf16 %v1179_v36, %v1178_v35  ;;  %v1696_v35 = vld [vmem:[%s4462_s10 + $0x8] sm:$0xff]  ;;  %v1697_v36 = vld [vmem:[%s4462_s10 + $0x10] sm:$0xff] }
 0x160   : > { %v1196_v51 = vadd.f32 %v1195_v50, %v1194_v49 }
 0x162   : > { %3121 = vmatpush3.bf16.msra.mxu1 %v3118_v53  ;;  %v1197_v52 = vrot.slane %v1196_v51, 1 }
 0x163   : > { %3123 = vmatprep.subr.bf16.mxu1 %v3122_v57 }
 0x164   : > { %v1198_v53 = vadd.f32 %v1197_v52, %v1196_v51 }
 0x166   : > { %3125 = vmatpush3.bf16.msra.mxu1 %v3122_v57  ;;  %v1199_v16 = vmul.f32 0.0625, %v1198_v53  ;;  %v1401_v57 = vld [vmem:[%s4460_s8 + $0x10] sm:$0xff] }
 0x167   : > { %3127 = vmatprep.subr.bf16.mxu1 %v3126_v60  ;;  %v3198_v59 = vpack.c.bf16 %v1402_v58, %v1401_v57 }
 0x16a   : > { %3129 = vmatpush3.bf16.msra.mxu1 %v3126_v60  ;;  %v1403_v60 = vld [vmem:[%s4460_s8 + $0x20] sm:$0xff] }
 0x16b   : > { %3131 = vmatprep.subr.bf16.mxu1 %v3130_v63  ;;  %v3202_v62 = vpack.c.bf16 %v1404_v61, %v1403_v60 }
 0x16d   : > { %2742 = vmatmul.mubr.msk.f32.vlgmr.msra.gmra.mrb[0].mxu1 %vm900_vm5, %v870_v43  ;;  %v1182_v43 = vld [vmem:[%s4458_s6 + $0x70] sm:$0xff] }
 0x16e   : > { %3133 = vmatpush3.bf16.msra.mxu1 %v3130_v63  ;;  %2760 = vmatprep.mubr.msk.f32.mxu1 %vm900_vm5, %v880_v54  ;;  %v3168_v46 = vpack.c.bf16 %v1183_v44, %v1182_v43  ;;  %v1399_v54 = vld [vmem:[%s4460_s8] sm:$0xff]  ;;  %v1405_v63 = vld [vmem:[%s4460_s8 + $0x30] sm:$0xff] }
 0x16f   : > { %3135 = vmatprep.subr.bf16.mxu1 %v3134_v2  ;;  %v3194_v56 = vpack.c.bf16 %v1400_v55, %v1399_v54  ;;  %v3206_v1 = vpack.c.bf16 %v1406_v0, %v1405_v63  ;;  %v1360_v54 = vlaneseq  ;;  %v2322_v63 = vld [vmem:[%s4460_s8 + $0x90] sm:$0xff]  ;;  %v2323_v0 = vld [vmem:[%s4460_s8 + $0x98] sm:$0xff] }
 0x171   : > { %3195 = vmatprep.subr.bf16.mxu0 %v3194_v56  ;;  %v4126_v55 = vshrl.u32 %v1360_v54, 7 }
 0x172   : > { %3137 = vmatpush3.bf16.msra.mxu1 %v3134_v2  ;;  %3197 = vmatpush3.bf16.msra.mxu0 %v3194_v56  ;;  %v1407_v2 = vld [vmem:[%s4460_s8 + $0x40] sm:$0xff] }
 0x173   : > { %3139 = vmatprep.subr.bf16.mxu1 %v3138_v5  ;;  %3199 = vmatprep.subr.bf16.mxu0 %v3198_v59  ;;  %v1362_v57 = vsub.s32 0, %v4126_v55 }
 0x176   : > { %3141 = vmatpush3.bf16.msra.mxu1 %v3138_v5  ;;  %3201 = vmatpush3.bf16.msra.mxu0 %v3198_v59  ;;  %v3210_v5 = vpack.c.bf16 %v1408_v3, %v1407_v2  ;;  %v2324_v3 = vld [vmem:[%s4460_s8 + $0xa0] sm:$0xff] }
 0x177   : > { %3143 = vmatprep.subr.bf16.mxu1 %v3142_v8  ;;  %3203 = vmatprep.subr.bf16.mxu0 %v3202_v62 }
 0x17a   : > { %3145 = vmatpush3.bf16.msra.mxu1 %v3142_v8  ;;  %3205 = vmatpush3.bf16.msra.mxu0 %v3202_v62  ;;  %v1411_v8 = vld [vmem:[%s4460_s8 + $0x60] sm:$0xff] }
 0x17b   : > { %3146 = vmatprep.subr.bf16.mxu1 %v3550_v14  ;;  %3207 = vmatprep.subr.bf16.mxu0 %v3206_v1  ;;  %v3218_v10 = vpack.c.bf16 %v1412_v9, %v1411_v8  ;;  %v2328_v8 = vld [vmem:[%s4460_s8 + $0xc0] sm:$0xff]  ;;  %v2329_v9 = vld [vmem:[%s4460_s8 + $0xc8] sm:$0xff] }
 0x17d   : > { %2761 = vmatmul.mubr.msk.f32.vlgmr.msra.gmra.mrb[0].mxu1 %vm900_vm5, %v882_v19  ;;  %v2320_v19 = vld [vmem:[%s4460_s8 + $0x80] sm:$0xff] }
 0x17e   : > { %3148 = vmatpush3.bf16.msra.mxu1 %v3147_v15  ;;  %2795 = vmatprep.mubr.msk.f32.mxu1 %vm3551_vm6, %v3552_v22 }
 0x17f   : > { %3149 = vmatprep.subr.bf16.mxu1 %v3550_v14  ;;  %3209 = vmatpush3.bf16.msra.mxu0 %v3206_v1 }
 0x180   : > { %3211 = vmatprep.subr.bf16.mxu0 %v3210_v5 }
 0x182   : > { %3151 = vmatpush3.bf16.msra.mxu1 %v3150_v21 }
 0x183   : > { %3152 = vmatprep.subr.bf16.mxu1 %v3550_v14  ;;  %3213 = vmatpush3.bf16.msra.mxu0 %v3210_v5  ;;  %v3234_v5 = vpack.c.bf16 %v2325_v4, %v2324_v3 }
 0x184   : > { %3215 = vmatprep.subr.bf16.mxu0 %v3214_v7 }
 0x186   : > { %3154 = vmatpush3.bf16.msra.mxu1 %v3153_v26 }
 0x187   : > { %3155 = vmatprep.subr.bf16.mxu1 %v3550_v14  ;;  %3217 = vmatpush3.bf16.msra.mxu0 %v3214_v7  ;;  %v3238_v7 = vpack.c.bf16 %v2327_v6, %v2326_v13 }
 0x188   : > { %3219 = vmatprep.subr.bf16.mxu0 %v3218_v10 }
 0x18a   : > { %3157 = vmatpush3.bf16.msra.mxu1 %v3156_v30 }
 0x18b   : > { %3158 = vmatprep.subr.bf16.mxu1 %v3550_v14  ;;  %3221 = vmatpush3.bf16.msra.mxu0 %v3218_v10  ;;  %v3242_v10 = vpack.c.bf16 %v2329_v9, %v2328_v8  ;;  %v2359_v8 = vld [vmem:[%s4462_s10 + $0x58] sm:$0xff] }
 0x18e   : > { %3160 = vmatpush3.bf16.msra.mxu1 %v3159_v34 }
 0x18f   : > { %3161 = vmatprep.subr.bf16.mxu1 %v3550_v14 }
 0x192   : > { %3163 = vmatpush3.bf16.msra.mxu1 %v3162_v38 }
 0x193   : > { %3164 = vmatprep.subr.bf16.mxu1 %v3550_v14 }
 0x196   : > { %3166 = vmatpush3.bf16.msra.mxu1 %v3165_v42 }
 0x197   : > { %3167 = vmatprep.subr.bf16.mxu1 %v3550_v14 }
 0x19a   : > { %3169 = vmatpush3.bf16.msra.mxu1 %v3168_v46 }
 0x19b   : > { %3170 = vmatprep.subr.bf16.mxu1 %v3550_v14 }
 0x19d   : > { %2796 = vmatmul.mubr.f32.vlgmr.msra.gmra.mrb[2].mxu1 %v1191_v47 }
 0x19e   : > { %3172 = vmatpush3.bf16.msra.mxu1 %v3147_v15  ;;  %2830 = vmatprep.mubr.msk.f32.mxu1 %vm3551_vm6, %v3552_v22  ;;  %v1413_v15 = vld [vmem:[%s4460_s8 + $0x70] sm:$0xff] }
 0x19f   : > { %3173 = vmatprep.subr.bf16.mxu1 %v3550_v14  ;;  %v3222_v18 = vpack.c.bf16 %v1414_v17, %v1413_v15  ;;  %v2330_v15 = vld [vmem:[%s4460_s8 + $0xd0] sm:$0xff]  ;;  %v2331_v17 = vld [vmem:[%s4460_s8 + $0xd8] sm:$0xff] }
 0x1a1   : > { %3223 = vmatprep.subr.bf16.mxu0 %v3222_v18 }
 0x1a2   : > { %3175 = vmatpush3.bf16.msra.mxu1 %v3150_v21  ;;  %3225 = vmatpush3.bf16.msra.mxu0 %v3222_v18  ;;  %v4095_v21 = vpack.c.bf16 %v2321_v20, %v2320_v19  ;;  %v3246_v18 = vpack.c.bf16 %v2331_v17, %v2330_v15  ;;  %v2332_v19 = vld [vmem:[%s4460_s8 + $0xe0] sm:$0xff]  ;;  %v2333_v20 = vld [vmem:[%s4460_s8 + $0xe8] sm:$0xff] }
 0x1a3   : > { %3176 = vmatprep.subr.bf16.mxu1 %v3550_v14 }
 0x1a4   : > { %3227 = vmatprep.subr.bf16.mxu0 %v4095_v21 }
 0x1a6   : > { %3178 = vmatpush3.bf16.msra.mxu1 %v3153_v26 }
 0x1a7   : > { %3179 = vmatprep.subr.bf16.mxu1 %v3550_v14 }
 0x1aa   : > { %3181 = vmatpush3.bf16.msra.mxu1 %v3156_v30 }
 0x1ab   : > { %3182 = vmatprep.subr.bf16.mxu1 %v3550_v14 }
 0x1ae   : > { %3184 = vmatpush3.bf16.msra.mxu1 %v3159_v34  ;;  %v1695_v34 = vld [vmem:[%s4462_s10] sm:$0xff] }
 0x1af   : > { %3185 = vmatprep.subr.bf16.mxu1 %v3550_v14  ;;  %v3290_v37 = vpack.c.bf16 %v1696_v35, %v1695_v34  ;;  %v2342_v34 = vld [vmem:[%s4460_s8 + $0x120] sm:$0xff]  ;;  %v2343_v35 = vld [vmem:[%s4460_s8 + $0x128] sm:$0xff] }
 0x1b2   : > { %3187 = vmatpush3.bf16.msra.mxu1 %v3162_v38  ;;  %v1698_v38 = vld [vmem:[%s4462_s10 + $0x18] sm:$0xff] }
 0x1b3   : > { %3188 = vmatprep.subr.bf16.mxu1 %v3550_v14  ;;  %v3294_v39 = vpack.c.bf16 %v1698_v38, %v1697_v36  ;;  %v2344_v38 = vld [vmem:[%s4460_s8 + $0x130] sm:$0xff] }
 0x1b6   : > { %3190 = vmatpush3.bf16.msra.mxu1 %v3165_v42 }
 0x1b7   : > { %3191 = vmatprep.subr.bf16.mxu1 %v3550_v14 }
 0x1ba   : > { %3193 = vmatpush3.bf16.msra.mxu1 %v3168_v46 }
 0x1bb   : > { %3291 = vmatprep.subr.bf16.mxu1 %v3290_v37 }
 0x1bd   : > { %2831 = vmatmul.mubr.f32.vlgmr.msra.gmra.mrb[4].mxu1 %v1199_v16 }
 0x1be   : > { %3293 = vmatpush3.bf16.msra.mxu1 %v3290_v37  ;;  %v3266_v37 = vpack.c.bf16 %v2343_v35, %v2342_v34  ;;  %v2373_v34 = vld [vmem:[%s4462_s10 + $0xa8] sm:$0xff] }
 0x1bf   : > { %3295 = vmatprep.subr.bf16.mxu1 %v3294_v39 }
 0x1c2   : > { %3297 = vmatpush3.bf16.msra.mxu1 %v3294_v39  ;;  %v2345_v39 = vld [vmem:[%s4460_s8 + $0x138] sm:$0xff] }
 0x250   : > { %v2762_v24 = vpop.f32.mrb[0].mxu1 }
 0x251   : > { %v1159_v25 = vadd.f32 %v2762_v24, %v2317_v23  ;;  %v1140_v26 = vpop.f32.mrb[1].mxu1  ;;  %v2335_v24 = vld [vmem:[%s4460_s8 + $0xf8] sm:$0xff] }
 0x252   : > { %v1158_v27 = vadd.f32 %v2317_v23, %v1140_v26  ;;  %v2334_v23 = vld [vmem:[%s4460_s8 + $0xf0] sm:$0xff]  ;;  %v2338_v26 = vld [vmem:[%s4460_s8 + $0x100] sm:$0xff] }
 0x253   : > { %vm1161_vm7 = vcmp.gt.f32.partialorder %v1159_v25, 0.0  ;;  %v1163_v28 = vmul.f32 0.2, %v1159_v25 }
 0x254   : > { %vm1160_vm8 = vcmp.gt.f32.partialorder %v1158_v27, 0.0  ;;  %v1162_v29 = vmul.f32 0.2, %v1158_v27 }
 0x255   : > { %v1165_v30 = vsel %vm1161_vm7, %v1159_v25, %v1163_v28  ;;  %v3254_v25 = vpack.c.bf16 %v2335_v24, %v2334_v23  ;;  %v2362_v24 = vld [vmem:[%s4462_s10 + $0x70] sm:$0xff] }
 0x256   : > { %1167 = vst [vmem:[%s4107_s22 + $0x8] sm:$0xff] %v1165_v30  ;;  %v1164_v31 = vsel %vm1160_vm8, %v1158_v27, %v1162_v29  ;;  %v2339_v27 = vld [vmem:[%s4460_s8 + $0x108] sm:$0xff]  ;;  %v2340_v29 = vld [vmem:[%s4460_s8 + $0x110] sm:$0xff]  ;;  %v2341_v30 = vld [vmem:[%s4460_s8 + $0x118] sm:$0xff] }
 0x257   : > { %1166 = vst [vmem:[%s4107_s22] sm:$0xff] %v1164_v31  ;;  %v3258_v28 = vpack.c.bf16 %v2339_v27, %v2338_v26  ;;  %v2368_v27 = vld [vmem:[%s4462_s10 + $0x80] sm:$0xff]  ;;  %s3554_s22 = smov [#allocation5]  }
 0x258   : > { %s3430_s29 = sshll.u32 %s3554_s22, 4  ;;  %s3431_s29 = int_to_ptr.vmem [resolvable:$false] %s3430_s29 }
 0x259   : > { %s3432_s2 = scalar_lea.vmem %s3431_s29, 512  ;;  %p3433_p0 = scmp.lt.s32.totalorder %s4339_s23, %s3431_s29 }
 0x25a   : > { %p3434_p1 = scmp.lt.s32.totalorder %s3432_s2, %s3426_s25 }
 0x25c   : > { %p3435_p2 = por %p3434_p1, %p3433_p0 }
 0x25e   : > { %p3436_p3 = pnand %p3435_p2, %p3429_p13 }
 0x270   : > { %v1267_v32 = vpop.f32.mrb[2].mxu1 }
 0x271   : > { %v2797_v33 = vpop.f32.mrb[3].mxu1  ;;  %v1268_v41 = vadd.f32 %v1267_v32, %v1200_v40 }
 0x272   : > { %v3262_v33 = vpack.c.bf16 %v2341_v30, %v2340_v29  ;;  %v2370_v30 = vld [vmem:[%s4462_s10 + $0x90] sm:$0xff] }
 0x273   : > { %v1272_v42 = vmul.f32 0.2, %v1268_v41  ;;  %vm1271_vm9 = vcmp.gt.f32.partialorder %v1268_v41, 0.0 }
 0x275   : > { %v1273_v43 = vsel %vm1271_vm9, %v1268_v41, %v1272_v42  ;;  %v2346_v41 = vld [vmem:[%s4460_s8 + $0x140] sm:$0xff]  ;;  %v2347_v42 = vld [vmem:[%s4460_s8 + $0x148] sm:$0xff] }
 0x276   : > { %v2318_v44 = vmul.f32 -1.442695, %v1273_v43  ;;  %v3274_v43 = vpack.c.bf16 %v2347_v42, %v2346_v41  ;;  %v3553_v41 = vmov 0   ;;  %v2378_v42 = vld [vmem:[%s4463_s11] ss:$0 sm:$0xff] }
 0x277   : > { %3413 = vset.pattern.permute.xlu0 %v3553_v41 }
 0x278   : > { %3414 = vpow2.f32 %v2318_v44  ;;  %v2348_v44 = vld [vmem:[%s4460_s8 + $0x150] sm:$0xff] }
 0x282   : > { %v3415_v51 = vpop.eup %3414 }
 0x283   : > { %v1350_v52 = vadd.f32 1.0, %v3415_v51  ;;  %v2353_v51 = vld [vmem:[%s4460_s8 + $0x178] sm:$0xff] }
 0x290   : > { %v1340_v45 = vpop.f32.mrb[4].mxu1 }
 0x291   : > { %v1341_v46 = vadd.f32 %v1340_v45, %v1200_v40  ;;  %v2832_v47 = vpop.f32.mrb[5].mxu1  ;;  %v3270_v40 = vpack.c.bf16 %v2345_v39, %v2344_v38  ;;  %v2349_v45 = vld [vmem:[%s4460_s8 + $0x158] sm:$0xff] }
 0x292   : > { %v2350_v47 = vld [vmem:[%s4460_s8 + $0x160] sm:$0xff] }
 0x293   : > { %vm1344_vm10 = vcmp.gt.f32.partialorder %v1341_v46, 0.0  ;;  %v1345_v48 = vmul.f32 0.2, %v1341_v46 }
 0x295   : > { %v1346_v49 = vsel %vm1344_vm10, %v1341_v46, %v1345_v48  ;;  %v3278_v46 = vpack.c.bf16 %v2349_v45, %v2348_v44  ;;  %v2351_v48 = vld [vmem:[%s4460_s8 + $0x168] sm:$0xff] }
 0x296   : > { %v2319_v50 = vmul.f32 -1.442695, %v1346_v49  ;;  %v3282_v49 = vpack.c.bf16 %v2351_v48, %v2350_v47 }
 0x298   : > { %3416 = vpow2.f32 %v2319_v50  ;;  %v2352_v50 = vld [vmem:[%s4460_s8 + $0x170] sm:$0xff] }
 0x299   : > { %3418 = vrcp.f32 %v1350_v52  ;;  %v3286_v52 = vpack.c.bf16 %v2353_v51, %v2352_v50  ;;  %v1968_v50 = vld [vmem:[%s4464_s12] sm:$0x1] }
 0x2a2   : > { %v3417_v53 = vpop.eup %3416 }
 0x2a3   : > { %v1356_v16 = vadd.f32 1.0, %v3417_v53  ;;  %v3419_v56 = vpop.eup %3418  ;;  %v1699_v53 = vld [vmem:[%s4462_s10 + $0x20] sm:$0xff] }
 0x2a5   : > { %3420 = vrcp.f32 %v1356_v16  ;;  %v1700_v16 = vld [vmem:[%s4462_s10 + $0x28] sm:$0xff] }
 0x2a6   : > { %v3298_v54 = vpack.c.bf16 %v1700_v16, %v1699_v53 }
 0x2a8   : > { %3299 = vmatprep.subr.bf16.mxu1 %v3298_v54 }
 0x2a9   : > { %3301 = vmatpush3.bf16.msra.mxu1 %v3298_v54 }
 0x2af   : > { %v3421_v58 = vpop.eup %3420 }
 0x2b0   : > { %v1359_v59 = vmul.f32 %v3421_v58, %v3419_v56  ;;  %v1701_v56 = vld [vmem:[%s4462_s10 + $0x30] sm:$0xff]  ;;  %v1702_v58 = vld [vmem:[%s4462_s10 + $0x38] sm:$0xff] }
 0x2b2   : > { %v1363_v60 = vrot.slane %v1359_v59, %v1362_v57  ;;  %v3302_v59 = vpack.c.bf16 %v1702_v58, %v1701_v56 }
 0x2b4   : > { %v1364_v61 = vmul.f32 %v1363_v60, %v3969_v11  ;;  %v4133_v62 = vmul.f32 %v1363_v60, %v3971_v12  ;;  %v3230_v12 = vpack.c.bf16 %v2323_v0, %v2322_v63  ;;  %3303 = vmatprep.subr.bf16.mxu1 %v3302_v59  ;;  %v2356_v60 = vld [vmem:[%s4462_s10 + $0x40] sm:$0xff] }
 0x2b5   : > { %3305 = vmatpush3.bf16.msra.mxu1 %v3302_v59  ;;  %v2355_v63 = vld [vmem:[%s4461_s9] ss:$0 sm:$0xff] }
 0x2b6   : > { %v1370_v1 = vrot.slane %v1364_v61, 7  ;;  %1366 = vst [vmem:[%s4143_s0] sm:$0xff] %v1364_v61  ;;  %v1371_v11 = vrot.slane %v4133_v62, 7  ;;  %1367 = vst [vmem:[%s4143_s0 + $0x8] sm:$0xff] %v4133_v62  ;;  %v1376_v31 = vrot.slane %v1364_v61, 1  ;;  %v1377_v32 = vrot.slane %v4133_v62, 1 }
 0x2b8   : > { %2865 = vmatprep.mubr.msk.f32.mxu0 %vm3734_vm1, %v1370_v1  ;;  %v1372_v2 = vsel %vm565_vm0, %v1370_v1, %v1371_v11  ;;  %v1378_v36 = vsel %vm572_vm2, %v1376_v31, %v1377_v32  ;;  %v2371_v31 = vld [vmem:[%s4462_s10 + $0x98] sm:$0xff] }
 0x2b9   : > { %2866 = vmatmul.mubr.f32.vlgmr.msra.gmra.mrb[2].mxu0 %v1372_v2 }
 0x2ba   : > { %3229 = vmatpush3.bf16.msra.mxu0 %v4095_v21  ;;  %2900 = vmatprep.mubr.f32.mxu0 %v1364_v61  ;;  %v3250_v21 = vpack.c.bf16 %v2333_v20, %v2332_v19  ;;  %v2357_v61 = vld [vmem:[%s4462_s10 + $0x48] sm:$0xff]  ;;  %v2360_v20 = vld [vmem:[%s4462_s10 + $0x60] sm:$0xff] }
 0x2bb   : > { %3231 = vmatprep.subr.bf16.mxu0 %v3230_v12 }
 0x2be   : > { %3233 = vmatpush3.bf16.msra.mxu0 %v3230_v12 }
 0x2bf   : > { %3235 = vmatprep.subr.bf16.mxu0 %v3234_v5 }
 0x2c2   : > { %3237 = vmatpush3.bf16.msra.mxu0 %v3234_v5 }
 0x2c3   : > { %3239 = vmatprep.subr.bf16.mxu0 %v3238_v7 }
 0x2c6   : > { %3241 = vmatpush3.bf16.msra.mxu0 %v3238_v7  ;;  %v2358_v7 = vld [vmem:[%s4462_s10 + $0x50] sm:$0xff] }
 0x2c7   : > { %3243 = vmatprep.subr.bf16.mxu0 %v3242_v10 }
 0x2ca   : > { %3245 = vmatpush3.bf16.msra.mxu0 %v3242_v10 }
 0x2cb   : > { %3247 = vmatprep.subr.bf16.mxu0 %v3246_v18 }
 0x2ce   : > { %3249 = vmatpush3.bf16.msra.mxu0 %v3246_v18  ;;  %v3310_v18 = vpack.c.bf16 %v2359_v8, %v2358_v7 }
 0x2cf   : > { %3251 = vmatprep.subr.bf16.mxu0 %v3250_v21 }
 0x2d2   : > { %3253 = vmatpush3.bf16.msra.mxu0 %v3250_v21  ;;  %v2361_v21 = vld [vmem:[%s4462_s10 + $0x68] sm:$0xff] }
 0x2d3   : > { %3255 = vmatprep.subr.bf16.mxu0 %v3254_v25  ;;  %v3314_v23 = vpack.c.bf16 %v2361_v21, %v2360_v20 }
 0x2d6   : > { %3257 = vmatpush3.bf16.msra.mxu0 %v3254_v25  ;;  %v2363_v25 = vld [vmem:[%s4462_s10 + $0x78] sm:$0xff] }
 0x2d7   : > { %3259 = vmatprep.subr.bf16.mxu0 %v3258_v28  ;;  %v3318_v26 = vpack.c.bf16 %v2363_v25, %v2362_v24 }
 0x2d9   : > { %2901 = vmatmul.mubr.f32.vlgmr.msra.gmra.mrb[2].mxu0 %v4133_v62  ;;  %v3306_v62 = vpack.c.bf16 %v2357_v61, %v2356_v60 }
 0x2da   : > { %3261 = vmatpush3.bf16.msra.mxu0 %v3258_v28  ;;  %2935 = vmatprep.mubr.f32.mxu0 %v1378_v36  ;;  %v2369_v28 = vld [vmem:[%s4462_s10 + $0x88] sm:$0xff]  ;;  %v2374_v36 = vld [vmem:[%s4462_s10 + $0xb0] sm:$0xff] }
 0x2db   : > { %3263 = vmatprep.subr.bf16.mxu0 %v3262_v33  ;;  %3307 = vmatprep.subr.bf16.mxu1 %v3306_v62  ;;  %v3322_v29 = vpack.c.bf16 %v2369_v28, %v2368_v27 }
 0x2de   : > { %3265 = vmatpush3.bf16.msra.mxu0 %v3262_v33  ;;  %v2372_v33 = vld [vmem:[%s4462_s10 + $0xa0] sm:$0xff] }
 0x2df   : > { %3267 = vmatprep.subr.bf16.mxu0 %v3266_v37  ;;  %v3330_v35 = vpack.c.bf16 %v2373_v34, %v2372_v33 }
 0x2e2   : > { %3269 = vmatpush3.bf16.msra.mxu0 %v3266_v37  ;;  %v2375_v37 = vld [vmem:[%s4462_s10 + $0xb8] sm:$0xff] }
 0x2e3   : > { %3271 = vmatprep.subr.bf16.mxu0 %v3270_v40  ;;  %v3334_v38 = vpack.c.bf16 %v2375_v37, %v2374_v36 }
 0x2e6   : > { %3273 = vmatpush3.bf16.msra.mxu0 %v3270_v40  ;;  %v1969_v40 = vld [vmem:[#allocation2] sm:$0x1] }
 0x2e7   : > { %3275 = vmatprep.subr.bf16.mxu0 %v3274_v43  ;;  %1972 = vperm.xlu0 %3413, %v1969_v40  }
 0x2ea   : > { %3277 = vmatpush3.bf16.msra.mxu0 %v3274_v43 }
 0x2eb   : > { %3279 = vmatprep.subr.bf16.mxu0 %v3278_v46 }
 0x2ee   : > { %3281 = vmatpush3.bf16.msra.mxu0 %v3278_v46 }
 0x2ef   : > { %3283 = vmatprep.subr.bf16.mxu0 %v3282_v49 }
 0x2f2   : > { %3285 = vmatpush3.bf16.msra.mxu0 %v3282_v49 }
 0x2f3   : > { %3287 = vmatprep.subr.bf16.mxu0 %v3286_v52 }
 0x2f6   : > { %3289 = vmatpush3.bf16.msra.mxu0 %v3286_v52 }
 0x2f9   : > { %2936 = vmatmul.mubr.msk.f32.vlgmr.msra.gmra.mrb[2].mxu0 %vm572_vm2, %v1377_v32  ;;  %v3326_v32 = vpack.c.bf16 %v2371_v31, %v2370_v30 }
 0x3cc   : > { %v2937_v0 = vpop.f32.mrb[2].mxu0 }
 0x3cd   : > { %v1667_v1 = vadd.f32 %v2937_v0, %v2355_v63  ;;  %v1648_v11 = vpop.f32.mrb[3].mxu0 }
 0x3ce   : > { %v1666_v12 = vadd.f32 %v2355_v63, %v1648_v11 }
 0x3cf   : > { %vm1669_vm11 = vcmp.gt.f32.partialorder %v1667_v1, 0.0  ;;  %v1671_v2 = vmul.f32 0.2, %v1667_v1 }
 0x3d0   : > { %vm1668_vm12 = vcmp.gt.f32.partialorder %v1666_v12, 0.0  ;;  %v1670_v3 = vmul.f32 0.2, %v1666_v12 }
 0x3d1   : > { %v1673_v4 = vsel %vm1669_vm11, %v1667_v1, %v1671_v2 }
 0x3d2   : > { %v1677_v5 = vrot.slane %v1673_v4, 7  ;;  %v1682_v13 = vrot.slane %v1673_v4, 1  ;;  %v1672_v6 = vsel %vm1668_vm12, %v1666_v12, %v1670_v3 }
 0x3d3   : > { %v1681_v9 = vrot.slane %v1672_v6, 1  ;;  %v1676_v10 = vrot.slane %v1672_v6, 7 }
 0x3d4   : > { %v1685_v39 = vsel %vm572_vm2, %v1682_v13, 0.0 }
 0x3d5   : > { %v1680_v15 = vsel %vm565_vm0, 0.0, %v1676_v10  ;;  %v1678_v17 = vsel %vm565_vm0, %v1676_v10, %v1677_v5  ;;  %v1683_v19 = vsel %vm572_vm2, %v1681_v9, %v1682_v13 }
 0x3d6   : > { %2954 = vmatprep.mubr.msk.f32.mxu1 %vm900_vm5, %v1680_v15 }
 0x3d7   : > { %2955 = vmatmul.mubr.msk.f32.vlgmr.msra.gmra.mrb[6].mxu1 %vm900_vm5, %v1678_v17 }
 0x3d8   : > { %3309 = vmatpush3.bf16.msra.mxu1 %v3306_v62  ;;  %2973 = vmatprep.mubr.msk.f32.mxu1 %vm900_vm5, %v1672_v6 }
 0x3d9   : > { %3311 = vmatprep.subr.bf16.mxu1 %v3310_v18 }
 0x3dc   : > { %3313 = vmatpush3.bf16.msra.mxu1 %v3310_v18 }
 0x3dd   : > { %3315 = vmatprep.subr.bf16.mxu1 %v3314_v23 }
 0x3e0   : > { %3317 = vmatpush3.bf16.msra.mxu1 %v3314_v23 }
 0x3e1   : > { %3319 = vmatprep.subr.bf16.mxu1 %v3318_v26 }
 0x3e4   : > { %3321 = vmatpush3.bf16.msra.mxu1 %v3318_v26 }
 0x3e5   : > { %3323 = vmatprep.subr.bf16.mxu1 %v3322_v29 }
 0x3e7   : > { %2974 = vmatmul.mubr.msk.f32.vlgmr.msra.gmra.mrb[6].mxu1 %vm900_vm5, %v1673_v4 }
 0x3e8   : > { %3325 = vmatpush3.bf16.msra.mxu1 %v3322_v29  ;;  %2992 = vmatprep.mubr.msk.f32.mxu1 %vm900_vm5, %v1683_v19 }
 0x3e9   : > { %3327 = vmatprep.subr.bf16.mxu1 %v3326_v32 }
 0x3ec   : > { %3329 = vmatpush3.bf16.msra.mxu1 %v3326_v32 }
 0x3ed   : > { %3331 = vmatprep.subr.bf16.mxu1 %v3330_v35 }
 0x3f0   : > { %3333 = vmatpush3.bf16.msra.mxu1 %v3330_v35 }
 0x3f1   : > { %3335 = vmatprep.subr.bf16.mxu1 %v3334_v38 }
 0x3f4   : > { %3337 = vmatpush3.bf16.msra.mxu1 %v3334_v38 }
 0x3f5   : > { %3338 = vmatprep.subr.bf16.mxu1 %v3550_v14 }
 0x3f7   : > { %2993 = vmatmul.mubr.msk.f32.vlgmr.msra.gmra.mrb[6].mxu1 %vm900_vm5, %v1685_v39 }
 0x3f8   : > { %2999 = vmatprep.mubr.msk.f32.mxu1 %vm3551_vm6, %v3552_v22 }
 0x4ca   : > { %v2994_v43 = vpop.f32.mrb[6].mxu1 }
 0x4cb   : > { %v1961_v44 = vadd.f32 %v2994_v43, %v2378_v42  ;;  %v1942_v14 = vpop.f32.mrb[7].mxu1 }
 0x4cc   : > { %v1960_v45 = vadd.f32 %v2378_v42, %v1942_v14 }
 0x4cd   : > { %vm1963_vm13 = vcmp.gt.f32.partialorder %v1961_v44, 0.0  ;;  %v1965_v46 = vmul.f32 0.2, %v1961_v44 }
 0x4ce   : > { %vm1962_vm14 = vcmp.gt.f32.partialorder %v1960_v45, 0.0  ;;  %v1964_v22 = vmul.f32 0.2, %v1960_v45 }
 0x4cf   : > { %v1967_v47 = vsel %vm1963_vm13, %v1961_v44, %v1965_v46 }
 0x4d0   : > { %v1966_v48 = vsel %vm1962_vm14, %v1960_v45, %v1964_v22 }
 0x4d1   : > { %v3339_v49 = vpack.c.bf16 %v1967_v47, %v1966_v48 }
 0x4d3   : > { %3341 = vmatpush3.bf16.xpose.msk.msra.mxu1 %vm3340_vm15, %v3339_v49 }
 0x4da   : > { %3000 = vmatmul.mubr.msk.f32.vlgmr.msra.gmra.mrb[8].mxu1 %vm900_vm5, %v1968_v50 }
 0x4db   : > { %3439 = shalt.err (!%p3436_p3)
}
 0x4dc   : > { %s3440_s0 = scalar_lea.hbm %s4336_s27, 256  ;;  %s3444_s20 = scalar_lea.hbm %s4467_s15, 512 }
 0x4dd   : > { %p3441_p4 = scmp.ne.s32.totalorder %s4336_s27, %s3440_s0  ;;  %p3445_p9 = scmp.lt.u32.totalorder %s4336_s27, %s4467_s15 }
 0x4de   : > { %p3446_p10 = scmp.lt.u32.totalorder %s3444_s20, %s3440_s0  ;;  %p3448_p12 = scmp.lt.u32.totalorder %s3440_s0, %s4336_s27 }
 0x4df   : > { %p3442_p7 = pnand %p3441_p4, %p3687_p5 }
 0x4e0   : > { %p3447_p11 = por %p3446_p10, %p3445_p9 }
 0x4e1   : > { %p3443_p8 = pneg %p3442_p7 }
 0x4e2   : > { %p3449_p13 = por %p3448_p12, %p3447_p11 }
 0x4e4   : > { %p3450_p0 = pnand %p3449_p13, %p3443_p8 }
 0x4e6   : > { %3453 = shalt.err (!%p3450_p0)
}
 0x4e7   : > { %s3555_s2 = smov 128   ;;  %s3556_s25 = smov 8  }
 0x4e8   : > { %3359 = dma.vmem_to_hbm [thread:$0]  (%p3687_p5), %s4339_s23, 256, %s4336_s27, %s4341_s18, %s3555_s2, %s3555_s2, %s3556_s25  }
 0x4e9   : > { %s4373_s19 = scalar_lea.hbm %s4468_s16, %s2394_s21  ;;  %s3454_s20 = scalar_lea.vmem %s4327_s28, 256 }
 0x4ea   : > { %p3455_p1 = scmp.ne.s32.totalorder %s4327_s28, %s3454_s20  ;;  %s3557_s22 = smov [#allocation7]  }
 0x4eb   : > { %s3458_s29 = sshll.u32 %s3557_s22, 4  ;;  %s3459_s29 = int_to_ptr.vmem [resolvable:$false] %s3458_s29 }
 0x4ec   : > { %p3456_p2 = pnand %p3455_p1, %p3687_p5  ;;  %s3460_s3 = scalar_lea.vmem %s3459_s29, 512 }
 0x4ed   : > { %p3461_p4 = scmp.lt.s32.totalorder %s4327_s28, %s3459_s29  ;;  %p3462_p7 = scmp.lt.s32.totalorder %s3460_s3, %s3454_s20 }
 0x4ee   : > { %p3457_p3 = pneg %p3456_p2 }
 0x4ef   : > { %p3463_p8 = por %p3462_p7, %p3461_p4 }
 0x4f1   : > { %p3464_p9 = pnand %p3463_p8, %p3457_p3 }
 0x4f3   : > { %3467 = shalt.err (!%p3464_p9)
}
 0x4f4   : > { %s3468_s21 = scalar_lea.hbm %s4373_s19, 256  ;;  %s3472_s0 = scalar_lea.hbm %s4468_s16, 512 }
 0x4f5   : > { %p3469_p10 = scmp.ne.s32.totalorder %s4373_s19, %s3468_s21  ;;  %p3473_p13 = scmp.lt.u32.totalorder %s4373_s19, %s4468_s16 }
 0x4f6   : > { %p3474_p0 = scmp.lt.u32.totalorder %s3472_s0, %s3468_s21  ;;  %p3476_p2 = scmp.lt.u32.totalorder %s3468_s21, %s4373_s19 }
 0x4f7   : > { %p3470_p11 = pnand %p3469_p10, %p3687_p5 }
 0x4f8   : > { %p3475_p1 = por %p3474_p0, %p3473_p13 }
 0x4f9   : > { %p3471_p12 = pneg %p3470_p11 }
 0x4fa   : > { %p3477_p3 = por %p3476_p2, %p3475_p1 }
 0x4fc   : > { %p3478_p4 = pnand %p3477_p3, %p3471_p12 }
 0x4fe   : > { %3481 = shalt.err (!%p3478_p4)
}
 0x4ff   : > { %3360 = dma.vmem_to_hbm [thread:$0]  (%p3687_p5), %s4327_s28, 256, %s4373_s19, %s4341_s18, %s3555_s2, %s3555_s2, %s3556_s25   ;;  %v1973_v51 = vpop.permute.xlu0 %1972  ;;  %vm2064_vm0 = vcmask 122880  }
 0x500   : > { %v1978_v52 = vrot.slane %v1973_v51, %v1362_v57  ;;  %s2385_s3 = sshll.u32 %s3668_s13, 4  ;;  %s534_s20 = scalar_lea.vmem [#allocation3], %s4099_s30 }
 0x501   : > { %s2089_s29 = sshll.u32 %s534_s20, 4  ;;  %s4407_s18 = scalar_lea.hbm %s4466_s14, %s2385_s3  ;;  %s4409_s29 = int_to_ptr.vmem [resolvable:$true] %s2089_s29 }
 0x502   : > { %s2067_s2 = scalar_lea.sflag [#allocation4], %s4099_s30  ;;  %s3482_s25 = scalar_lea.vmem %s4409_s29, 16 }
 0x503   : > { %p3483_p7 = scmp.ne.s32.totalorder %s4409_s29, %s3482_s25  ;;  %s3558_s13 = smov [#allocation3]  }
 0x504   : > { %s3486_s19 = sshll.u32 %s3558_s13, 4  ;;  %s3487_s19 = int_to_ptr.vmem [resolvable:$false] %s3486_s19 }
 0x505   : > { %p3484_p8 = pnand %p3483_p7, %p3687_p5  ;;  %s3488_s27 = scalar_lea.vmem %s3487_s19, 32 }
 0x506   : > { %p3489_p10 = scmp.lt.s32.totalorder %s4409_s29, %s3487_s19  ;;  %p3490_p11 = scmp.lt.s32.totalorder %s3488_s27, %s3482_s25 }
 0x507   : > { %p3485_p9 = pneg %p3484_p8 }
 0x508   : > { %p3491_p12 = por %p3490_p11, %p3489_p10 }
 0x50a   : > { %p3492_p13 = pnand %p3491_p12, %p3485_p9 }
 0x5ad   : > { %v2054_v53 = vpop.f32.mrb[8].mxu1 }
 0x5ae   : > { %v2055_v16 = vadd.f32 %v2054_v53, %v1978_v52  ;;  %v3001_v54 = vpop.f32.mrb[9].mxu1 }
 0x5b0   : > { %v2382_v56 = vmul.f32 -1.442695, %v2055_v16 }
 0x5b2   : > { %3422 = vpow2.f32 %v2382_v56 }
 0x5bc   : > { %v3423_v58 = vpop.eup %3422 }
 0x5bd   : > { %v2061_v59 = vadd.f32 1.0, %v3423_v58 }
 0x5bf   : > { %3424 = vrcp.f32 %v2061_v59 }
 0x5c9   : > { %v3425_v55 = vpop.eup %3424 }
 0x5ca   : > { %2065 = vst.msk [vmem:[%s534_s20] sm:$0x1] %vm2064_vm0, %v3425_v55 }
 0x5cb   : > { %3495 = shalt.err (!%p3492_p13)
}
 0x5cc   : > { %s3496_s30 = scalar_lea.hbm %s4407_s18, 16  ;;  %s3500_s1 = scalar_lea.hbm %s4466_s14, 32 }
 0x5cd   : > { %p3497_p0 = scmp.ne.s32.totalorder %s4407_s18, %s3496_s30  ;;  %p3501_p3 = scmp.lt.u32.totalorder %s4407_s18, %s4466_s14 }
 0x5ce   : > { %p3502_p4 = scmp.lt.u32.totalorder %s3500_s1, %s3496_s30  ;;  %p3504_p8 = scmp.lt.u32.totalorder %s3496_s30, %s4407_s18 }
 0x5cf   : > { %p3498_p1 = pnand %p3497_p0, %p3687_p5 }
 0x5d0   : > { %p3503_p7 = por %p3502_p4, %p3501_p3 }
 0x5d1   : > { %p3499_p2 = pneg %p3498_p1 }
 0x5d2   : > { %p3505_p9 = por %p3504_p8, %p3503_p7 }
 0x5d4   : > { %p3506_p10 = pnand %p3505_p9, %p3499_p2 }
 0x5d6   : > { %3509 = shalt.err (!%p3506_p10)
}
 0x5d7   : > { %3358 = dma.vmem_to_hbm [thread:$0]  (%p3687_p5), %s4409_s29, 16, %s4407_s18, %s2067_s2  }
 0x5d8 PF: > { %s4494_s20 = sld [smem:[#allocation10_spill]]  ;;  %p3374_p11 = scmp.ge.s32.totalorder %s3548_s26, 2 }
 0x5da   : > { %p3365_p12 = pnand %p3374_p11, %p3691_p6 }
 0x5de   : > { %s2133_s28 = sand.u32 1, %s4494_s20  }
 0x5df   : > { %s2134_s25 = scalar_lea.sflag [#allocation4], %s2133_s28 }
 0x5e0   : > { %3527 = dma.done.wait (!%p3365_p12), %s2134_s25, 16  }
 0x5e1   : > { %3529 = vsyncadd (!%p3365_p12), %s2134_s25, 4294967280  ;;  %s4496_s13 = sadd.s32 4294967294, %s3548_s26  }
 0x5e2   : > { %s2141_s19 = sand.u32 1, %s4496_s13  }
 0x5e3   : > { %s2142_s27 = scalar_lea.sflag [#allocation6], %s2141_s19 }
 0x5e4   : > { %3531 = dma.done.wait (!%p3365_p12), %s2142_s27, 512  }
 0x5e5   : > { %3533 = vsyncadd (!%p3365_p12), %s2142_s27, 4294966784  ;;  %s4497_s26 = sld [smem:[#allocation12_spill]]  ;;  %s4498_s17 = sld [smem:[#allocation11_spill]] }
 0x5e6   : > { %s4499_s25 = sld [smem:[#allocation13_spill]]  ;;  %s4500_s23 = smov %s3540_s24 }
 0x5eb   : > { %p32_p5 = scmp.ge.s32.totalorder %s4497_s26, 4   ;;  %s4501_s24 = smov %s4498_s17 }
 0x5ed   :  { %34 = sbr.rel (!%p32_p5) target bundleno = 10 (0xa), region = 154 }
 0x5f4   :  { %2156 = vsyncpa [#allocation4], 1 }
 0x5f5   :  { %2158 = vsyncpa [#allocation4 + $0x1], 1 }
 0x5f6   :  { %2159 = vsyncpa [#allocation6], 1 }
 0x5f7   :  { %2161 = vsyncpa [#allocation6 + $0x1], 1 }

</bundles_post_ra>
